<compile_context>
chip_gen: v7x
topology: tpu7x:2x2x1
jax: 0.10.0
libtpu: 0.0.40
codegen_flags: <defaults>
</compile_context>

<pallas_src>
import functools

import jax
import jax.numpy as jnp
from jax.experimental import pallas as pl
from jax.experimental.pallas import tpu as pltpu


def _inverted_residual_kernel(x_ref, w1_ref, wdw_ref, w2_ref,
                              b1_ref, b2_ref, b3_ref,
                              o_ref, pad_ref, *, stride, use_res_connect):
    # x_ref  : (NB, H,  W,  Cin)      o_ref : (NB, Ho, Wo, Cout)
    # pad_ref: (H+2, W+2, Cmid)       persistent VMEM scratch, shared across NB
    NB, H, W, Cin = x_ref.shape
    Cmid = w1_ref.shape[1]
    Cout = w2_ref.shape[1]
    Ho, Wo = o_ref.shape[1], o_ref.shape[2]

    # ---- zero only the 1-wide border of the padded scratch -----------------
    # The interior is fully overwritten for every image below, so only the
    # border needs clearing.  It is cleared every grid step (not once under
    # program_id == 0) so the kernel stays correct when the "parallel" grid
    # axis is sharded across TensorCores, each with its own scratch instance.
    zrow = jnp.zeros((1, W + 2, Cmid), jnp.float32)
    zcol = jnp.zeros((H, 1, Cmid), jnp.float32)
    pad_ref[0:1, :, :] = zrow
    pad_ref[H + 1:H + 2, :, :] = zrow
    pad_ref[1:H + 1, 0:1, :] = zcol
    pad_ref[1:H + 1, W + 1:W + 2, :] = zcol

    x = x_ref[...]                                              # (NB, H, W, Cin)

    # ---- 1x1 expand conv (BN scale pre-folded into w1) + bias + ReLU -------
    # One batched MXU matmul over all NB images: (NB*H*W, Cin) @ (Cin, Cmid).
    h = jnp.dot(x.reshape(NB * H * W, Cin), w1_ref[...],
                preferred_element_type=jnp.float32)
    h = jnp.maximum(h + b1_ref[...], 0.0).reshape(NB, H, W, Cmid)

    for b in range(NB):
        # ---- depthwise 3x3 conv, pad=1, stride in {1,2} (scale in wdw) -----
        pad_ref[1:H + 1, 1:W + 1, :] = h[b]
        acc = jnp.zeros((Ho, Wo, Cmid), dtype=jnp.float32)
        for ky in range(3):
            for kx in range(3):
                tap = wdw_ref[ky * 3 + kx:ky * 3 + kx + 1, :]   # (1, Cmid)
                if stride == 1:
                    win = pad_ref[ky:ky + Ho, kx:kx + Wo, :]
                else:
                    # Read only the strided outputs instead of computing the
                    # full-resolution result and throwing 3/4 of it away.
                    win = pad_ref[pl.ds(ky, Ho, stride=2),
                                  pl.ds(kx, Wo, stride=2), :]
                acc = acc + win * tap
        d = jnp.maximum(acc + b2_ref[...], 0.0)                 # (Ho, Wo, Cmid)

        # ---- 1x1 project conv (BN scale pre-folded into w2) + bias ---------
        y = jnp.dot(d.reshape(Ho * Wo, Cmid), w2_ref[...],
                    preferred_element_type=jnp.float32)
        y = (y + b3_ref[...]).reshape(Ho, Wo, Cout)

        if use_res_connect:                 # requires stride==1 and Cin==Cout
            y = y + x[b]
        o_ref[b] = y


def _fold_bn(gamma, beta, mean, var, eps=1e-5):
    scale = gamma / jnp.sqrt(var + eps)
    bias = beta - mean * scale
    return scale.reshape(1, -1), bias.reshape(1, -1)


def init_params(key, inp, oup, expand_ratio=6):
    mid = inp * expand_ratio
    ks = jax.random.split(key, 6)
    w1 = 0.1 * jax.random.normal(ks[0], (inp, mid), jnp.float32)
    wdw = 0.1 * jax.random.normal(ks[1], (3, 3, mid), jnp.float32)
    w2 = 0.1 * jax.random.normal(ks[2], (mid, oup), jnp.float32)

    def bn(k, c):
        k0, k1, k2, k3 = jax.random.split(k, 4)
        g = 1.0 + 0.1 * jax.random.normal(k0, (c,), jnp.float32)
        b = 0.1 * jax.random.normal(k1, (c,), jnp.float32)
        m = 0.1 * jax.random.normal(k2, (c,), jnp.float32)
        v = jnp.abs(jax.random.normal(k3, (c,), jnp.float32)) + 0.5
        return g, b, m, v

    s1, b1 = _fold_bn(*bn(ks[3], mid))
    s2, b2 = _fold_bn(*bn(ks[4], mid))
    s3, b3 = _fold_bn(*bn(ks[5], oup))
    return dict(w1=w1, wdw=wdw.reshape(9, mid), w2=w2,
                s1=s1, b1=b1, s2=s2, b2=b2, s3=s3, b3=b3)


def _pick_batch_block(n, h, w, cin, cmid, cout, vmem_budget_bytes=6 << 20):
    """Images per grid step: large enough to amortize the ~0.35us/step overhead
    and grow the MXU M-dim, small enough to keep f32 intermediates within a
    modest VMEM budget, and (when possible) leaving >= 2 grid steps so both
    v7x TensorCores receive work via the 'parallel' axis."""
    per_img = 4 * h * w * (2 * cmid + cin + cout)   # h, acc/d, x, y in f32
    nb = max(1, min(n, vmem_budget_bytes // max(per_img, 1)))
    if n >= 2:
        nb = min(nb, n // 2)
    nb = max(nb, 1)
    while n % nb:
        nb -= 1
    return nb


def inverted_residual(x_nchw, params, *, stride, use_res_connect,
                      batch_block=None):
    assert stride in (1, 2)
    x = jnp.transpose(x_nchw, (0, 2, 3, 1)).astype(jnp.float32)  # NCHW -> NHWC
    N, H, W, Cin = x.shape
    Cmid = params["w1"].shape[1]
    Cout = params["w2"].shape[1]
    Ho = (H - 1) // stride + 1
    Wo = (W - 1) // stride + 1
    if use_res_connect:
        assert stride == 1 and Cin == Cout, "residual requires same shape"

    # Fold the eval-mode BatchNorm scales into the conv weights (per output
    # channel); only the per-channel biases are applied inside the kernel.
    w1 = params["w1"] * params["s1"]            # (Cin, Cmid)  * (1, Cmid)
    wdw = params["wdw"] * params["s2"]          # (9, Cmid)    * (1, Cmid)
    w2 = params["w2"] * params["s3"]            # (Cmid, Cout) * (1, Cout)

    nb = batch_block or _pick_batch_block(N, H, W, Cin, Cmid, Cout)
    assert N % nb == 0, (N, nb)

    kernel = functools.partial(_inverted_residual_kernel,
                               stride=stride, use_res_connect=use_res_connect)

    def const_spec(shape):
        return pl.BlockSpec(shape, lambda n: (0,) * len(shape))

    out = pl.pallas_call(
        kernel,
        out_shape=jax.ShapeDtypeStruct((N, Ho, Wo, Cout), jnp.float32),
        grid=(N // nb,),
        in_specs=[
            pl.BlockSpec((nb, H, W, Cin), lambda n: (n, 0, 0, 0)),   # x
            const_spec((Cin, Cmid)),                                 # w1 (folded)
            const_spec((9, Cmid)),                                   # wdw (folded)
            const_spec((Cmid, Cout)),                                # w2 (folded)
            const_spec((1, Cmid)),                                   # b1
            const_spec((1, Cmid)),                                   # b2
            const_spec((1, Cout)),                                   # b3
        ],
        out_specs=pl.BlockSpec((nb, Ho, Wo, Cout), lambda n: (n, 0, 0, 0)),
        scratch_shapes=[pltpu.VMEM((H + 2, W + 2, Cmid), jnp.float32)],
        compiler_params=pltpu.CompilerParams(
            dimension_semantics=("parallel",)),
    )(x, w1, wdw, w2, params["b1"], params["b2"], params["b3"])

    return jnp.transpose(out, (0, 3, 1, 2))                          # NHWC -> NCHW


def _reference(x_nchw, params, *, stride, use_res_connect):
    """Pure-JAX/XLA reference with *unfused* BN scale/bias — independently
    checks both the conv math and the weight folding done in the wrapper."""
    x = jnp.transpose(x_nchw, (0, 2, 3, 1)).astype(jnp.float32)
    Cin = x.shape[-1]
    Cmid = params["w1"].shape[1]
    Cout = params["w2"].shape[1]
    dn = ("NHWC", "HWIO", "NHWC")
    hp = jax.lax.Precision.HIGHEST

    h = jax.lax.conv_general_dilated(
        x, params["w1"].reshape(1, 1, Cin, Cmid), (1, 1), ((0, 0), (0, 0)),
        dimension_numbers=dn, precision=hp)
    h = jnp.maximum(h * params["s1"] + params["b1"], 0.0)

    d = jax.lax.conv_general_dilated(
        h, params["wdw"].reshape(3, 3, 1, Cmid), (stride, stride),
        ((1, 1), (1, 1)), dimension_numbers=dn, feature_group_count=Cmid,
        precision=hp)
    d = jnp.maximum(d * params["s2"] + params["b2"], 0.0)

    y = jax.lax.conv_general_dilated(
        d, params["w2"].reshape(1, 1, Cmid, Cout), (1, 1), ((0, 0), (0, 0)),
        dimension_numbers=dn, precision=hp)
    y = y * params["s3"] + params["b3"]
    if use_res_connect:
        y = y + x
    return jnp.transpose(y, (0, 3, 1, 2))


if __name__ == "__main__":
    key = jax.random.PRNGKey(0)
    kx, kp = jax.random.split(key)

    # inp = oup = 8, expand_ratio = 6 -> hidden channels = 48; stride=1 block
    # with the residual connection (the most common config in the PFLD net).
    N, C, H, W = 4, 8, 16, 16
    x = jax.random.normal(kx, (N, C, H, W), jnp.float32)
    params = init_params(kp, inp=C, oup=C, expand_ratio=6)

    y = inverted_residual(x, params, stride=1, use_res_connect=True)
    jax.block_until_ready(y)
    assert y.shape == (N, C, H, W)
    assert bool(jnp.all(jnp.isfinite(y)))

    y_ref = _reference(x, params, stride=1, use_res_connect=True)
    err = float(jnp.max(jnp.abs(y - y_ref)))
    assert err < 2e-2, f"max |kernel - reference| = {err}"

    print("KERNEL_OK")
</pallas_src>

<mosaic_0001>
module attributes {stable_mosaic.version = 11 : i64} {
  func.func @_inverted_residual_kernel(%arg0: i32, %arg1: memref<2x16x16x8xf32, #tpu.memory_space<vmem>>, %arg2: memref<8x48xf32, #tpu.memory_space<vmem>>, %arg3: memref<9x48xf32, #tpu.memory_space<vmem>>, %arg4: memref<48x8xf32, #tpu.memory_space<vmem>>, %arg5: memref<1x48xf32, #tpu.memory_space<vmem>>, %arg6: memref<1x48xf32, #tpu.memory_space<vmem>>, %arg7: memref<1x8xf32, #tpu.memory_space<vmem>>, %arg8: memref<2x16x16x8xf32, #tpu.memory_space<vmem>>, %arg9: memref<18x18x48xf32, #tpu.memory_space<vmem>>) attributes {dimension_semantics = [#tpu.dimension_semantics<parallel>], iteration_bounds = array<i64: 2>, scalar_prefetch = 0 : i64, scratch_operands = 1 : i64, tpu.core_type = #tpu.core_type<tc>, window_params = [{transform_indices = @transform_0, window_bounds = array<i64: 2, 16, 16, 8>}, {pipeline_mode = #tpu.pipeline_mode<synchronous>, transform_indices = @transform_1, window_bounds = array<i64: 8, 48>}, {pipeline_mode = #tpu.pipeline_mode<synchronous>, transform_indices = @transform_2, window_bounds = array<i64: 9, 48>}, {pipeline_mode = #tpu.pipeline_mode<synchronous>, transform_indices = @transform_3, window_bounds = array<i64: 48, 8>}, {pipeline_mode = #tpu.pipeline_mode<synchronous>, transform_indices = @transform_4, window_bounds = array<i64: 1, 48>}, {pipeline_mode = #tpu.pipeline_mode<synchronous>, transform_indices = @transform_5, window_bounds = array<i64: 1, 48>}, {pipeline_mode = #tpu.pipeline_mode<synchronous>, transform_indices = @transform_6, window_bounds = array<i64: 1, 8>}, {transform_indices = @transform_7, window_bounds = array<i64: 2, 16, 16, 8>}]} {
    %cst = arith.constant 0.000000e+00 : f32
    %0 = vector.broadcast %cst : f32 to vector<1x18x48xf32>
    %cst_0 = arith.constant 0.000000e+00 : f32
    %1 = vector.broadcast %cst_0 : f32 to vector<16x1x48xf32>
    %c0 = arith.constant 0 : index
    %c0_1 = arith.constant 0 : index
    %c0_2 = arith.constant 0 : index
    %2 = vector.load %arg9[%c0, %c0_1, %c0_2] : memref<18x18x48xf32, #tpu.memory_space<vmem>>, vector<1x18x48xf32>
    tpu.vector_store %arg9[%c0, %c0_1, %c0_2], %0 {strides = array<i32>} : memref<18x18x48xf32, #tpu.memory_space<vmem>>, vector<1x18x48xf32>,
    %c17 = arith.constant 17 : index
    %c0_3 = arith.constant 0 : index
    %c0_4 = arith.constant 0 : index
    %3 = vector.load %arg9[%c17, %c0_3, %c0_4] : memref<18x18x48xf32, #tpu.memory_space<vmem>>, vector<1x18x48xf32>
    tpu.vector_store %arg9[%c17, %c0_3, %c0_4], %0 {strides = array<i32>} : memref<18x18x48xf32, #tpu.memory_space<vmem>>, vector<1x18x48xf32>,
    %c1 = arith.constant 1 : index
    %c0_5 = arith.constant 0 : index
    %c0_6 = arith.constant 0 : index
    %4 = vector.load %arg9[%c1, %c0_5, %c0_6] : memref<18x18x48xf32, #tpu.memory_space<vmem>>, vector<16x1x48xf32>
    tpu.vector_store %arg9[%c1, %c0_5, %c0_6], %1 {strides = array<i32>} : memref<18x18x48xf32, #tpu.memory_space<vmem>>, vector<16x1x48xf32>,
    %c1_7 = arith.constant 1 : index
    %c17_8 = arith.constant 17 : index
    %c0_9 = arith.constant 0 : index
    %5 = vector.load %arg9[%c1_7, %c17_8, %c0_9] : memref<18x18x48xf32, #tpu.memory_space<vmem>>, vector<16x1x48xf32>
    tpu.vector_store %arg9[%c1_7, %c17_8, %c0_9], %1 {strides = array<i32>} : memref<18x18x48xf32, #tpu.memory_space<vmem>>, vector<16x1x48xf32>,
    %c0_10 = arith.constant 0 : index
    %c0_11 = arith.constant 0 : index
    %c0_12 = arith.constant 0 : index
    %c0_13 = arith.constant 0 : index
    %6 = vector.load %arg1[%c0_10, %c0_11, %c0_12, %c0_13] : memref<2x16x16x8xf32, #tpu.memory_space<vmem>>, vector<2x16x16x8xf32>
    %7 = vector.shape_cast %6 : vector<2x16x16x8xf32> to vector<512x8xf32>
    %c0_14 = arith.constant 0 : index
    %c0_15 = arith.constant 0 : index
    %8 = vector.load %arg2[%c0_14, %c0_15] : memref<8x48xf32, #tpu.memory_space<vmem>>, vector<8x48xf32>
    %cst_16 = arith.constant dense<0.000000e+00> : vector<512x48xf32>
    %9 = tpu.matmul %7, %8, %cst_16 {dimension_numbers = #tpu.dot_dimension_numbers<[1], [0], [0], [1], [0, 0, 1, 1], [], []>} : vector<512x8xf32>, vector<8x48xf32>, vector<512x48xf32> -> vector<512x48xf32>
    %c0_17 = arith.constant 0 : index
    %c0_18 = arith.constant 0 : index
    %10 = vector.load %arg5[%c0_17, %c0_18] : memref<1x48xf32, #tpu.memory_space<vmem>>, vector<1x48xf32>
    %11 = vector.broadcast %10 : vector<1x48xf32> to vector<512x48xf32>
    %12 = arith.addf %9, %11 : vector<512x48xf32>
    %cst_19 = arith.constant 0.000000e+00 : f32
    %13 = vector.broadcast %cst_19 : f32 to vector<512x48xf32>
    %14 = arith.maximumf %12, %13 : vector<512x48xf32>
    %15 = vector.shape_cast %14 : vector<512x48xf32> to vector<2x16x16x48xf32>
    %16 = vector.extract_strided_slice %15 {offsets = [0, 0, 0, 0], sizes = [1, 16, 16, 48], strides = [1, 1, 1, 1]} : vector<2x16x16x48xf32> to vector<1x16x16x48xf32>
    %17 = vector.shape_cast %16 : vector<1x16x16x48xf32> to vector<16x16x48xf32>
    %c1_20 = arith.constant 1 : index
    %c1_21 = arith.constant 1 : index
    %c0_22 = arith.constant 0 : index
    %18 = vector.load %arg9[%c1_20, %c1_21, %c0_22] : memref<18x18x48xf32, #tpu.memory_space<vmem>>, vector<16x16x48xf32>
    tpu.vector_store %arg9[%c1_20, %c1_21, %c0_22], %17 {strides = array<i32>} : memref<18x18x48xf32, #tpu.memory_space<vmem>>, vector<16x16x48xf32>,
    %cst_23 = arith.constant 0.000000e+00 : f32
    %19 = vector.broadcast %cst_23 : f32 to vector<16x16x48xf32>
    %c0_24 = arith.constant 0 : index
    %c0_25 = arith.constant 0 : index
    %20 = vector.load %arg3[%c0_24, %c0_25] : memref<9x48xf32, #tpu.memory_space<vmem>>, vector<1x48xf32>
    %c0_26 = arith.constant 0 : index
    %c0_27 = arith.constant 0 : index
    %c0_28 = arith.constant 0 : index
    %21 = vector.load %arg9[%c0_26, %c0_27, %c0_28] : memref<18x18x48xf32, #tpu.memory_space<vmem>>, vector<16x16x48xf32>
    %22 = vector.shape_cast %20 : vector<1x48xf32> to vector<1x1x48xf32>
    %23 = vector.broadcast %22 : vector<1x1x48xf32> to vector<16x16x48xf32>
    %24 = arith.mulf %21, %23 : vector<16x16x48xf32>
    %25 = arith.addf %19, %24 : vector<16x16x48xf32>
    %c1_29 = arith.constant 1 : index
    %c0_30 = arith.constant 0 : index
    %26 = vector.load %arg3[%c1_29, %c0_30] : memref<9x48xf32, #tpu.memory_space<vmem>>, vector<1x48xf32>
    %c0_31 = arith.constant 0 : index
    %c1_32 = arith.constant 1 : index
    %c0_33 = arith.constant 0 : index
    %27 = vector.load %arg9[%c0_31, %c1_32, %c0_33] : memref<18x18x48xf32, #tpu.memory_space<vmem>>, vector<16x16x48xf32>
    %28 = vector.shape_cast %26 : vector<1x48xf32> to vector<1x1x48xf32>
    %29 = vector.broadcast %28 : vector<1x1x48xf32> to vector<16x16x48xf32>
    %30 = arith.mulf %27, %29 : vector<16x16x48xf32>
    %31 = arith.addf %25, %30 : vector<16x16x48xf32>
    %c2 = arith.constant 2 : index
    %c0_34 = arith.constant 0 : index
    %32 = vector.load %arg3[%c2, %c0_34] : memref<9x48xf32, #tpu.memory_space<vmem>>, vector<1x48xf32>
    %c0_35 = arith.constant 0 : index
    %c2_36 = arith.constant 2 : index
    %c0_37 = arith.constant 0 : index
    %33 = vector.load %arg9[%c0_35, %c2_36, %c0_37] : memref<18x18x48xf32, #tpu.memory_space<vmem>>, vector<16x16x48xf32>
    %34 = vector.shape_cast %32 : vector<1x48xf32> to vector<1x1x48xf32>
    %35 = vector.broadcast %34 : vector<1x1x48xf32> to vector<16x16x48xf32>
    %36 = arith.mulf %33, %35 : vector<16x16x48xf32>
    %37 = arith.addf %31, %36 : vector<16x16x48xf32>
    %c3 = arith.constant 3 : index
    %c0_38 = arith.constant 0 : index
    %38 = vector.load %arg3[%c3, %c0_38] : memref<9x48xf32, #tpu.memory_space<vmem>>, vector<1x48xf32>
    %c1_39 = arith.constant 1 : index
    %c0_40 = arith.constant 0 : index
    %c0_41 = arith.constant 0 : index
    %39 = vector.load %arg9[%c1_39, %c0_40, %c0_41] : memref<18x18x48xf32, #tpu.memory_space<vmem>>, vector<16x16x48xf32>
    %40 = vector.shape_cast %38 : vector<1x48xf32> to vector<1x1x48xf32>
    %41 = vector.broadcast %40 : vector<1x1x48xf32> to vector<16x16x48xf32>
    %42 = arith.mulf %39, %41 : vector<16x16x48xf32>
    %43 = arith.addf %37, %42 : vector<16x16x48xf32>
    %c4 = arith.constant 4 : index
    %c0_42 = arith.constant 0 : index
    %44 = vector.load %arg3[%c4, %c0_42] : memref<9x48xf32, #tpu.memory_space<vmem>>, vector<1x48xf32>
    %c1_43 = arith.constant 1 : index
    %c1_44 = arith.constant 1 : index
    %c0_45 = arith.constant 0 : index
    %45 = vector.load %arg9[%c1_43, %c1_44, %c0_45] : memref<18x18x48xf32, #tpu.memory_space<vmem>>, vector<16x16x48xf32>
    %46 = vector.shape_cast %44 : vector<1x48xf32> to vector<1x1x48xf32>
    %47 = vector.broadcast %46 : vector<1x1x48xf32> to vector<16x16x48xf32>
    %48 = arith.mulf %45, %47 : vector<16x16x48xf32>
    %49 = arith.addf %43, %48 : vector<16x16x48xf32>
    %c5 = arith.constant 5 : index
    %c0_46 = arith.constant 0 : index
    %50 = vector.load %arg3[%c5, %c0_46] : memref<9x48xf32, #tpu.memory_space<vmem>>, vector<1x48xf32>
    %c1_47 = arith.constant 1 : index
    %c2_48 = arith.constant 2 : index
    %c0_49 = arith.constant 0 : index
    %51 = vector.load %arg9[%c1_47, %c2_48, %c0_49] : memref<18x18x48xf32, #tpu.memory_space<vmem>>, vector<16x16x48xf32>
    %52 = vector.shape_cast %50 : vector<1x48xf32> to vector<1x1x48xf32>
    %53 = vector.broadcast %52 : vector<1x1x48xf32> to vector<16x16x48xf32>
    %54 = arith.mulf %51, %53 : vector<16x16x48xf32>
    %55 = arith.addf %49, %54 : vector<16x16x48xf32>
    %c6 = arith.constant 6 : index
    %c0_50 = arith.constant 0 : index
    %56 = vector.load %arg3[%c6, %c0_50] : memref<9x48xf32, #tpu.memory_space<vmem>>, vector<1x48xf32>
    %c2_51 = arith.constant 2 : index
    %c0_52 = arith.constant 0 : index
    %c0_53 = arith.constant 0 : index
    %57 = vector.load %arg9[%c2_51, %c0_52, %c0_53] : memref<18x18x48xf32, #tpu.memory_space<vmem>>, vector<16x16x48xf32>
    %58 = vector.shape_cast %56 : vector<1x48xf32> to vector<1x1x48xf32>
    %59 = vector.broadcast %58 : vector<1x1x48xf32> to vector<16x16x48xf32>
    %60 = arith.mulf %57, %59 : vector<16x16x48xf32>
    %61 = arith.addf %55, %60 : vector<16x16x48xf32>
    %c7 = arith.constant 7 : index
    %c0_54 = arith.constant 0 : index
    %62 = vector.load %arg3[%c7, %c0_54] : memref<9x48xf32, #tpu.memory_space<vmem>>, vector<1x48xf32>
    %c2_55 = arith.constant 2 : index
    %c1_56 = arith.constant 1 : index
    %c0_57 = arith.constant 0 : index
    %63 = vector.load %arg9[%c2_55, %c1_56, %c0_57] : memref<18x18x48xf32, #tpu.memory_space<vmem>>, vector<16x16x48xf32>
    %64 = vector.shape_cast %62 : vector<1x48xf32> to vector<1x1x48xf32>
    %65 = vector.broadcast %64 : vector<1x1x48xf32> to vector<16x16x48xf32>
    %66 = arith.mulf %63, %65 : vector<16x16x48xf32>
    %67 = arith.addf %61, %66 : vector<16x16x48xf32>
    %c8 = arith.constant 8 : index
    %c0_58 = arith.constant 0 : index
    %68 = vector.load %arg3[%c8, %c0_58] : memref<9x48xf32, #tpu.memory_space<vmem>>, vector<1x48xf32>
    %c2_59 = arith.constant 2 : index
    %c2_60 = arith.constant 2 : index
    %c0_61 = arith.constant 0 : index
    %69 = vector.load %arg9[%c2_59, %c2_60, %c0_61] : memref<18x18x48xf32, #tpu.memory_space<vmem>>, vector<16x16x48xf32>
    %70 = vector.shape_cast %68 : vector<1x48xf32> to vector<1x1x48xf32>
    %71 = vector.broadcast %70 : vector<1x1x48xf32> to vector<16x16x48xf32>
    %72 = arith.mulf %69, %71 : vector<16x16x48xf32>
    %73 = arith.addf %67, %72 : vector<16x16x48xf32>
    %c0_62 = arith.constant 0 : index
    %c0_63 = arith.constant 0 : index
    %74 = vector.load %arg6[%c0_62, %c0_63] : memref<1x48xf32, #tpu.memory_space<vmem>>, vector<1x48xf32>
    %75 = vector.shape_cast %74 : vector<1x48xf32> to vector<1x1x48xf32>
    %76 = vector.broadcast %75 : vector<1x1x48xf32> to vector<16x16x48xf32>
    %77 = arith.addf %73, %76 : vector<16x16x48xf32>
    %cst_64 = arith.constant 0.000000e+00 : f32
    %78 = vector.broadcast %cst_64 : f32 to vector<16x16x48xf32>
    %79 = arith.maximumf %77, %78 : vector<16x16x48xf32>
    %80 = vector.shape_cast %79 : vector<16x16x48xf32> to vector<256x48xf32>
    %c0_65 = arith.constant 0 : index
    %c0_66 = arith.constant 0 : index
    %81 = vector.load %arg4[%c0_65, %c0_66] : memref<48x8xf32, #tpu.memory_space<vmem>>, vector<48x8xf32>
    %cst_67 = arith.constant dense<0.000000e+00> : vector<256x8xf32>
    %82 = tpu.matmul %80, %81, %cst_67 {dimension_numbers = #tpu.dot_dimension_numbers<[1], [0], [0], [1], [0, 0, 1, 1], [], []>} : vector<256x48xf32>, vector<48x8xf32>, vector<256x8xf32> -> vector<256x8xf32>
    %c0_68 = arith.constant 0 : index
    %c0_69 = arith.constant 0 : index
    %83 = vector.load %arg7[%c0_68, %c0_69] : memref<1x8xf32, #tpu.memory_space<vmem>>, vector<1x8xf32>
    %84 = vector.broadcast %83 : vector<1x8xf32> to vector<256x8xf32>
    %85 = arith.addf %82, %84 : vector<256x8xf32>
    %86 = vector.shape_cast %85 : vector<256x8xf32> to vector<16x16x8xf32>
    %87 = vector.extract_strided_slice %6 {offsets = [0, 0, 0, 0], sizes = [1, 16, 16, 8], strides = [1, 1, 1, 1]} : vector<2x16x16x8xf32> to vector<1x16x16x8xf32>
    %88 = vector.shape_cast %87 : vector<1x16x16x8xf32> to vector<16x16x8xf32>
    %89 = arith.addf %86, %88 : vector<16x16x8xf32>
    %c0_70 = arith.constant 0 : index
    %c0_71 = arith.constant 0 : index
    %c0_72 = arith.constant 0 : index
    %c0_73 = arith.constant 0 : index
    %90 = vector.load %arg8[%c0_70, %c0_71, %c0_72, %c0_73] : memref<2x16x16x8xf32, #tpu.memory_space<vmem>>, vector<1x16x16x8xf32>
    %91 = vector.shape_cast %90 : vector<1x16x16x8xf32> to vector<16x16x8xf32>
    %92 = vector.shape_cast %89 : vector<16x16x8xf32> to vector<1x16x16x8xf32>
    tpu.vector_store %arg8[%c0_70, %c0_71, %c0_72, %c0_73], %92 {strides = array<i32>} : memref<2x16x16x8xf32, #tpu.memory_space<vmem>>, vector<1x16x16x8xf32>,
    %93 = vector.extract_strided_slice %15 {offsets = [1, 0, 0, 0], sizes = [1, 16, 16, 48], strides = [1, 1, 1, 1]} : vector<2x16x16x48xf32> to vector<1x16x16x48xf32>
    %94 = vector.shape_cast %93 : vector<1x16x16x48xf32> to vector<16x16x48xf32>
    %c1_74 = arith.constant 1 : index
    %c1_75 = arith.constant 1 : index
    %c0_76 = arith.constant 0 : index
    %95 = vector.load %arg9[%c1_74, %c1_75, %c0_76] : memref<18x18x48xf32, #tpu.memory_space<vmem>>, vector<16x16x48xf32>
    tpu.vector_store %arg9[%c1_74, %c1_75, %c0_76], %94 {strides = array<i32>} : memref<18x18x48xf32, #tpu.memory_space<vmem>>, vector<16x16x48xf32>,
    %cst_77 = arith.constant 0.000000e+00 : f32
    %96 = vector.broadcast %cst_77 : f32 to vector<16x16x48xf32>
    %c0_78 = arith.constant 0 : index
    %c0_79 = arith.constant 0 : index
    %97 = vector.load %arg3[%c0_78, %c0_79] : memref<9x48xf32, #tpu.memory_space<vmem>>, vector<1x48xf32>
    %c0_80 = arith.constant 0 : index
    %c0_81 = arith.constant 0 : index
    %c0_82 = arith.constant 0 : index
    %98 = vector.load %arg9[%c0_80, %c0_81, %c0_82] : memref<18x18x48xf32, #tpu.memory_space<vmem>>, vector<16x16x48xf32>
    %99 = vector.shape_cast %97 : vector<1x48xf32> to vector<1x1x48xf32>
    %100 = vector.broadcast %99 : vector<1x1x48xf32> to vector<16x16x48xf32>
    %101 = arith.mulf %98, %100 : vector<16x16x48xf32>
    %102 = arith.addf %96, %101 : vector<16x16x48xf32>
    %c1_83 = arith.constant 1 : index
    %c0_84 = arith.constant 0 : index
    %103 = vector.load %arg3[%c1_83, %c0_84] : memref<9x48xf32, #tpu.memory_space<vmem>>, vector<1x48xf32>
    %c0_85 = arith.constant 0 : index
    %c1_86 = arith.constant 1 : index
    %c0_87 = arith.constant 0 : index
    %104 = vector.load %arg9[%c0_85, %c1_86, %c0_87] : memref<18x18x48xf32, #tpu.memory_space<vmem>>, vector<16x16x48xf32>
    %105 = vector.shape_cast %103 : vector<1x48xf32> to vector<1x1x48xf32>
    %106 = vector.broadcast %105 : vector<1x1x48xf32> to vector<16x16x48xf32>
    %107 = arith.mulf %104, %106 : vector<16x16x48xf32>
    %108 = arith.addf %102, %107 : vector<16x16x48xf32>
    %c2_88 = arith.constant 2 : index
    %c0_89 = arith.constant 0 : index
    %109 = vector.load %arg3[%c2_88, %c0_89] : memref<9x48xf32, #tpu.memory_space<vmem>>, vector<1x48xf32>
    %c0_90 = arith.constant 0 : index
    %c2_91 = arith.constant 2 : index
    %c0_92 = arith.constant 0 : index
    %110 = vector.load %arg9[%c0_90, %c2_91, %c0_92] : memref<18x18x48xf32, #tpu.memory_space<vmem>>, vector<16x16x48xf32>
    %111 = vector.shape_cast %109 : vector<1x48xf32> to vector<1x1x48xf32>
    %112 = vector.broadcast %111 : vector<1x1x48xf32> to vector<16x16x48xf32>
    %113 = arith.mulf %110, %112 : vector<16x16x48xf32>
    %114 = arith.addf %108, %113 : vector<16x16x48xf32>
    %c3_93 = arith.constant 3 : index
    %c0_94 = arith.constant 0 : index
    %115 = vector.load %arg3[%c3_93, %c0_94] : memref<9x48xf32, #tpu.memory_space<vmem>>, vector<1x48xf32>
    %c1_95 = arith.constant 1 : index
    %c0_96 = arith.constant 0 : index
    %c0_97 = arith.constant 0 : index
    %116 = vector.load %arg9[%c1_95, %c0_96, %c0_97] : memref<18x18x48xf32, #tpu.memory_space<vmem>>, vector<16x16x48xf32>
    %117 = vector.shape_cast %115 : vector<1x48xf32> to vector<1x1x48xf32>
    %118 = vector.broadcast %117 : vector<1x1x48xf32> to vector<16x16x48xf32>
    %119 = arith.mulf %116, %118 : vector<16x16x48xf32>
    %120 = arith.addf %114, %119 : vector<16x16x48xf32>
    %c4_98 = arith.constant 4 : index
    %c0_99 = arith.constant 0 : index
    %121 = vector.load %arg3[%c4_98, %c0_99] : memref<9x48xf32, #tpu.memory_space<vmem>>, vector<1x48xf32>
    %c1_100 = arith.constant 1 : index
    %c1_101 = arith.constant 1 : index
    %c0_102 = arith.constant 0 : index
    %122 = vector.load %arg9[%c1_100, %c1_101, %c0_102] : memref<18x18x48xf32, #tpu.memory_space<vmem>>, vector<16x16x48xf32>
    %123 = vector.shape_cast %121 : vector<1x48xf32> to vector<1x1x48xf32>
    %124 = vector.broadcast %123 : vector<1x1x48xf32> to vector<16x16x48xf32>
    %125 = arith.mulf %122, %124 : vector<16x16x48xf32>
    %126 = arith.addf %120, %125 : vector<16x16x48xf32>
    %c5_103 = arith.constant 5 : index
    %c0_104 = arith.constant 0 : index
    %127 = vector.load %arg3[%c5_103, %c0_104] : memref<9x48xf32, #tpu.memory_space<vmem>>, vector<1x48xf32>
    %c1_105 = arith.constant 1 : index
    %c2_106 = arith.constant 2 : index
    %c0_107 = arith.constant 0 : index
    %128 = vector.load %arg9[%c1_105, %c2_106, %c0_107] : memref<18x18x48xf32, #tpu.memory_space<vmem>>, vector<16x16x48xf32>
    %129 = vector.shape_cast %127 : vector<1x48xf32> to vector<1x1x48xf32>
    %130 = vector.broadcast %129 : vector<1x1x48xf32> to vector<16x16x48xf32>
    %131 = arith.mulf %128, %130 : vector<16x16x48xf32>
    %132 = arith.addf %126, %131 : vector<16x16x48xf32>
    %c6_108 = arith.constant 6 : index
    %c0_109 = arith.constant 0 : index
    %133 = vector.load %arg3[%c6_108, %c0_109] : memref<9x48xf32, #tpu.memory_space<vmem>>, vector<1x48xf32>
    %c2_110 = arith.constant 2 : index
    %c0_111 = arith.constant 0 : index
    %c0_112 = arith.constant 0 : index
    %134 = vector.load %arg9[%c2_110, %c0_111, %c0_112] : memref<18x18x48xf32, #tpu.memory_space<vmem>>, vector<16x16x48xf32>
    %135 = vector.shape_cast %133 : vector<1x48xf32> to vector<1x1x48xf32>
    %136 = vector.broadcast %135 : vector<1x1x48xf32> to vector<16x16x48xf32>
    %137 = arith.mulf %134, %136 : vector<16x16x48xf32>
    %138 = arith.addf %132, %137 : vector<16x16x48xf32>
    %c7_113 = arith.constant 7 : index
    %c0_114 = arith.constant 0 : index
    %139 = vector.load %arg3[%c7_113, %c0_114] : memref<9x48xf32, #tpu.memory_space<vmem>>, vector<1x48xf32>
    %c2_115 = arith.constant 2 : index
    %c1_116 = arith.constant 1 : index
    %c0_117 = arith.constant 0 : index
    %140 = vector.load %arg9[%c2_115, %c1_116, %c0_117] : memref<18x18x48xf32, #tpu.memory_space<vmem>>, vector<16x16x48xf32>
    %141 = vector.shape_cast %139 : vector<1x48xf32> to vector<1x1x48xf32>
    %142 = vector.broadcast %141 : vector<1x1x48xf32> to vector<16x16x48xf32>
    %143 = arith.mulf %140, %142 : vector<16x16x48xf32>
    %144 = arith.addf %138, %143 : vector<16x16x48xf32>
    %c8_118 = arith.constant 8 : index
    %c0_119 = arith.constant 0 : index
    %145 = vector.load %arg3[%c8_118, %c0_119] : memref<9x48xf32, #tpu.memory_space<vmem>>, vector<1x48xf32>
    %c2_120 = arith.constant 2 : index
    %c2_121 = arith.constant 2 : index
    %c0_122 = arith.constant 0 : index
    %146 = vector.load %arg9[%c2_120, %c2_121, %c0_122] : memref<18x18x48xf32, #tpu.memory_space<vmem>>, vector<16x16x48xf32>
    %147 = vector.shape_cast %145 : vector<1x48xf32> to vector<1x1x48xf32>
    %148 = vector.broadcast %147 : vector<1x1x48xf32> to vector<16x16x48xf32>
    %149 = arith.mulf %146, %148 : vector<16x16x48xf32>
    %150 = arith.addf %144, %149 : vector<16x16x48xf32>
    %c0_123 = arith.constant 0 : index
    %c0_124 = arith.constant 0 : index
    %151 = vector.load %arg6[%c0_123, %c0_124] : memref<1x48xf32, #tpu.memory_space<vmem>>, vector<1x48xf32>
    %152 = vector.shape_cast %151 : vector<1x48xf32> to vector<1x1x48xf32>
    %153 = vector.broadcast %152 : vector<1x1x48xf32> to vector<16x16x48xf32>
    %154 = arith.addf %150, %153 : vector<16x16x48xf32>
    %cst_125 = arith.constant 0.000000e+00 : f32
    %155 = vector.broadcast %cst_125 : f32 to vector<16x16x48xf32>
    %156 = arith.maximumf %154, %155 : vector<16x16x48xf32>
    %157 = vector.shape_cast %156 : vector<16x16x48xf32> to vector<256x48xf32>
    %c0_126 = arith.constant 0 : index
    %c0_127 = arith.constant 0 : index
    %158 = vector.load %arg4[%c0_126, %c0_127] : memref<48x8xf32, #tpu.memory_space<vmem>>, vector<48x8xf32>
    %cst_128 = arith.constant dense<0.000000e+00> : vector<256x8xf32>
    %159 = tpu.matmul %157, %158, %cst_128 {dimension_numbers = #tpu.dot_dimension_numbers<[1], [0], [0], [1], [0, 0, 1, 1], [], []>} : vector<256x48xf32>, vector<48x8xf32>, vector<256x8xf32> -> vector<256x8xf32>
    %c0_129 = arith.constant 0 : index
    %c0_130 = arith.constant 0 : index
    %160 = vector.load %arg7[%c0_129, %c0_130] : memref<1x8xf32, #tpu.memory_space<vmem>>, vector<1x8xf32>
    %161 = vector.broadcast %160 : vector<1x8xf32> to vector<256x8xf32>
    %162 = arith.addf %159, %161 : vector<256x8xf32>
    %163 = vector.shape_cast %162 : vector<256x8xf32> to vector<16x16x8xf32>
    %164 = vector.extract_strided_slice %6 {offsets = [1, 0, 0, 0], sizes = [1, 16, 16, 8], strides = [1, 1, 1, 1]} : vector<2x16x16x8xf32> to vector<1x16x16x8xf32>
    %165 = vector.shape_cast %164 : vector<1x16x16x8xf32> to vector<16x16x8xf32>
    %166 = arith.addf %163, %165 : vector<16x16x8xf32>
    %c1_131 = arith.constant 1 : index
    %c0_132 = arith.constant 0 : index
    %c0_133 = arith.constant 0 : index
    %c0_134 = arith.constant 0 : index
    %167 = vector.load %arg8[%c1_131, %c0_132, %c0_133, %c0_134] : memref<2x16x16x8xf32, #tpu.memory_space<vmem>>, vector<1x16x16x8xf32>
    %168 = vector.shape_cast %167 : vector<1x16x16x8xf32> to vector<16x16x8xf32>
    %169 = vector.shape_cast %166 : vector<16x16x8xf32> to vector<1x16x16x8xf32>
    tpu.vector_store %arg8[%c1_131, %c0_132, %c0_133, %c0_134], %169 {strides = array<i32>} : memref<2x16x16x8xf32, #tpu.memory_space<vmem>>, vector<1x16x16x8xf32>,
    return
  }
  func.func @transform_0(%arg0: i32) -> (i32, i32, i32, i32) {
    %c0_i32 = arith.constant 0 : i32
    %c0_i32_0 = arith.constant 0 : i32
    %c0_i32_1 = arith.constant 0 : i32
    %c0_i32_2 = arith.constant 0 : i32
    return %arg0, %c0_i32, %c0_i32_0, %c0_i32_1 : i32, i32, i32, i32
  }
  func.func @transform_1(%arg0: i32) -> (i32, i32) {
    %c0_i32 = arith.constant 0 : i32
    %c0_i32_0 = arith.constant 0 : i32
    %c0_i32_1 = arith.constant 0 : i32
    return %c0_i32, %c0_i32_0 : i32, i32
  }
  func.func @transform_2(%arg0: i32) -> (i32, i32) {
    %c0_i32 = arith.constant 0 : i32
    %c0_i32_0 = arith.constant 0 : i32
    %c0_i32_1 = arith.constant 0 : i32
    return %c0_i32, %c0_i32_0 : i32, i32
  }
  func.func @transform_3(%arg0: i32) -> (i32, i32) {
    %c0_i32 = arith.constant 0 : i32
    %c0_i32_0 = arith.constant 0 : i32
    %c0_i32_1 = arith.constant 0 : i32
    return %c0_i32, %c0_i32_0 : i32, i32
  }
  func.func @transform_4(%arg0: i32) -> (i32, i32) {
    %c0_i32 = arith.constant 0 : i32
    %c0_i32_0 = arith.constant 0 : i32
    %c0_i32_1 = arith.constant 0 : i32
    return %c0_i32, %c0_i32_0 : i32, i32
  }
  func.func @transform_5(%arg0: i32) -> (i32, i32) {
    %c0_i32 = arith.constant 0 : i32
    %c0_i32_0 = arith.constant 0 : i32
    %c0_i32_1 = arith.constant 0 : i32
    return %c0_i32, %c0_i32_0 : i32, i32
  }
  func.func @transform_6(%arg0: i32) -> (i32, i32) {
    %c0_i32 = arith.constant 0 : i32
    %c0_i32_0 = arith.constant 0 : i32
    %c0_i32_1 = arith.constant 0 : i32
    return %c0_i32, %c0_i32_0 : i32, i32
  }
  func.func @transform_7(%arg0: i32) -> (i32, i32, i32, i32) {
    %c0_i32 = arith.constant 0 : i32
    %c0_i32_0 = arith.constant 0 : i32
    %c0_i32_1 = arith.constant 0 : i32
    %c0_i32_2 = arith.constant 0 : i32
    return %arg0, %c0_i32, %c0_i32_0, %c0_i32_1 : i32, i32, i32, i32
  }
}

</mosaic_0001>

<bundles_post_ra>
// kernel: tpu_custom_call.1
= control target key start
LH: loop header
LB: loop body
LE: loop exit
PB: predicated region body
PF: predicated region fallthrough
CT: control target
= control target key end

     0   :  { %s4655_s24 = smov 0   ;;  %s7315_s0 = inlined_call_operand.vmem [shape: f32[4,16,16,8], index: 0, kind: input, shape index: {}]   ;;  %s7316_s1 = inlined_call_operand.vmem [shape: f32[8,48], index: 1, kind: input, shape index: {}]   ;;  %s7317_s2 = inlined_call_operand.vmem [shape: f32[9,48], index: 2, kind: input, shape index: {}]   ;;  %s7318_s3 = inlined_call_operand.vmem [shape: f32[48,8], index: 3, kind: input, shape index: {}]   ;;  %s7319_s4 = inlined_call_operand.vmem [shape: f32[1,48], index: 4, kind: input, shape index: {}]   ;;  %s7320_s5 = inlined_call_operand.vmem [shape: f32[1,48], index: 5, kind: input, shape index: {}]   ;;  %s7321_s6 = inlined_call_operand.vmem [shape: f32[1,8], index: 6, kind: input, shape index: {}]   ;;  %s7322_s7 = inlined_call_operand.vmem [shape: f32[4,16,16,8], index: 7, kind: output, shape index: {}]  }
   0x1 LB: > { %s3924_s25 = sadd.s32 4294967295, %s4612_s24   ;;  %p3928_p0 = scmp.ge.s32.totalorder %s4612_s24, 1  ;;  %s4612_s24 = sphi %s4655_s24, %s17_s24  }
   0x2   : > { %p239_p1 = scmp.lt.s32.totalorder %s4612_s24, 3 }
   0x4   : > { %p240_p2 = pnand %p3928_p0, %p239_p1 }
   0x6   : > { %243 = sbr.rel (%p240_p2) target bundleno = 809 (0x329), region = 48 }
   0xd   : > { %v394_v0 = vld [vmem:[%s7316_s1] sm:$0xff]  ;;  %s3929_s28 = sshll.u32 %s3924_s25, 1  ;;  %vm402_vm0 = vcmask 64512   ;;  %vm287_vm1 = vcmask 392192   ;;  %v4614_v47 = vmov 0.0   ;;  %vm290_vm2 = vcmask 386048  }
   0xe   : > { %4263 = vmatprep.subr.mxu0 %v394_v0  ;;  %p274_p3 = scmp.lt.s32.totalorder %s3929_s28, 3  ;;  %288 = vst.msk [vmem:[#allocation2] sm:$0xff] %vm287_vm1, %v4614_v47  ;;  %289 = vst.msk [vmem:[#allocation2 + $0x8] sm:$0xff] %vm287_vm1, %v4614_v47  ;;  %vm297_vm3 = vcmask 385024   ;;  %v2057_v56 = vld [vmem:[%s7318_s3] sm:$0xff]  ;;  %v2058_v57 = vld [vmem:[%s7318_s3 + $0x8] sm:$0xff] }
   0xf   : > { %4264 = vmatpush3.msra.mxu0 %v394_v0  ;;  %293 = vst.msk [vmem:[#allocation2 + $0x198] sm:$0xff] %vm287_vm1, %v4614_v47  ;;  %294 = vst.msk [vmem:[#allocation2 + $0x1a0] sm:$0xff] %vm287_vm1, %v4614_v47  ;;  %v4826_v59 = vpack.c.bf16 %v2058_v57, %v2057_v56  ;;  %v2059_v61 = vld [vmem:[%s7318_s3 + $0x10] sm:$0xff]  ;;  %v2060_v62 = vld [vmem:[%s7318_s3 + $0x18] sm:$0xff] }
  0x10   : > { %s7348_s28 = smov (!%p274_p3, %s3929_s28), 3  ;;  %291 = vst.msk [vmem:[#allocation2 + $0x10] sm:$0x3] %vm290_vm2, %v4614_v47  ;;  %295 = vst.msk [vmem:[#allocation2 + $0x1a8] sm:$0x3] %vm290_vm2, %v4614_v47  ;;  %v4841_v0 = vpack.c.bf16 %v2060_v62, %v2059_v61 }
  0x11   : > { %s4120_s29 = sshll.u32 %s7348_s28, 8  ;;  %298 = vst.msk [vmem:[#allocation2 + $0x18] sm:$0x1] %vm297_vm3, %v4614_v47  ;;  %299 = vst.msk [vmem:[#allocation2 + $0x30] sm:$0x1] %vm297_vm3, %v4614_v47  ;;  %4482 = vmatprep.subr.bf16.mxu0 %v4826_v59  ;;  %4505 = vmatprep.subr.bf16.mxu1 %v4826_v59 }
  0x12   : > { %s4674_s9 = scalar_lea.vmem %s7315_s0, %s4120_s29  ;;  %300 = vst.msk [vmem:[#allocation2 + $0x48] sm:$0x1] %vm297_vm3, %v4614_v47  ;;  %301 = vst.msk [vmem:[#allocation2 + $0x60] sm:$0x1] %vm297_vm3, %v4614_v47  ;;  %4508 = vmatpush3.bf16.msra.mxu1 %v4826_v59  ;;  %s7032_s21 = scalar_lea.vmem %s7322_s7, %s4120_s29 }
  0x13   : > { %v330_v1 = vld [vmem:[%s4674_s9] sm:$0xff]  ;;  %v331_v2 = vld [vmem:[%s4674_s9 + $0x8] sm:$0xff]  ;;  %v332_v3 = vld [vmem:[%s4674_s9 + $0x10] sm:$0xff]  ;;  %302 = vst.msk [vmem:[#allocation2 + $0x78] sm:$0x1] %vm297_vm3, %v4614_v47  ;;  %4506 = vmatprep.subr.bf16.mxu1 %v4841_v0 }
  0x14   : > { %4265 = vmatprep.mubr.msk.f32.mxu0 %vm402_vm0, %v330_v1  ;;  %v333_v4 = vld [vmem:[%s4674_s9 + $0x18] sm:$0xff]  ;;  %v334_v5 = vld [vmem:[%s4674_s9 + $0x20] sm:$0xff]  ;;  %v335_v6 = vld [vmem:[%s4674_s9 + $0x28] sm:$0xff]  ;;  %303 = vst.msk [vmem:[#allocation2 + $0x90] sm:$0x1] %vm297_vm3, %v4614_v47 }
  0x15   : > { %4266 = vmatmul.mubr.msk.f32.vlgmr.msra.gmra.mrb[0].mxu0 %vm402_vm0, %v331_v2  ;;  %v336_v7 = vld [vmem:[%s4674_s9 + $0x30] sm:$0xff]  ;;  %v337_v8 = vld [vmem:[%s4674_s9 + $0x38] sm:$0xff]  ;;  %v338_v9 = vld [vmem:[%s4674_s9 + $0x40] sm:$0xff]  ;;  %304 = vst.msk [vmem:[#allocation2 + $0xa8] sm:$0x1] %vm297_vm3, %v4614_v47 }
  0x16   : > { %4268 = vmatprep.mubr.msk.f32.mxu0 %vm402_vm0, %v332_v3  ;;  %v339_v10 = vld [vmem:[%s4674_s9 + $0x48] sm:$0xff]  ;;  %v340_v11 = vld [vmem:[%s4674_s9 + $0x50] sm:$0xff]  ;;  %v341_v12 = vld [vmem:[%s4674_s9 + $0x58] sm:$0xff]  ;;  %305 = vst.msk [vmem:[#allocation2 + $0xc0] sm:$0x1] %vm297_vm3, %v4614_v47  ;;  %4484 = vmatpush3.bf16.msra.mxu0 %v4826_v59 }
  0x17   : > { %v342_v13 = vld [vmem:[%s4674_s9 + $0x60] sm:$0xff]  ;;  %v343_v14 = vld [vmem:[%s4674_s9 + $0x68] sm:$0xff]  ;;  %v344_v15 = vld [vmem:[%s4674_s9 + $0x70] sm:$0xff]  ;;  %306 = vst.msk [vmem:[#allocation2 + $0xd8] sm:$0x1] %vm297_vm3, %v4614_v47  ;;  %4486 = vmatprep.subr.bf16.mxu0 %v4841_v0  ;;  %4509 = vmatpush3.bf16.msra.mxu1 %v4841_v0 }
  0x18   : > { %v345_v16 = vld [vmem:[%s4674_s9 + $0x78] sm:$0xff]  ;;  %v346_v17 = vld [vmem:[%s4674_s9 + $0x80] sm:$0xff]  ;;  %v347_v18 = vld [vmem:[%s4674_s9 + $0x88] sm:$0xff]  ;;  %307 = vst.msk [vmem:[#allocation2 + $0xf0] sm:$0x1] %vm297_vm3, %v4614_v47 }
  0x19   : > { %4269 = vmatmul.mubr.msk.f32.gmra.mrb[2].mxu0 %vm402_vm0, %v333_v4  ;;  %v348_v19 = vld [vmem:[%s4674_s9 + $0x90] sm:$0xff]  ;;  %v349_v20 = vld [vmem:[%s4674_s9 + $0x98] sm:$0xff]  ;;  %v350_v21 = vld [vmem:[%s4674_s9 + $0xa0] sm:$0xff]  ;;  %308 = vst.msk [vmem:[#allocation2 + $0x108] sm:$0x1] %vm297_vm3, %v4614_v47 }
  0x1a   : > { %4271 = vmatprep.mubr.msk.f32.mxu0 %vm402_vm0, %v334_v5  ;;  %v351_v22 = vld [vmem:[%s4674_s9 + $0xa8] sm:$0xff]  ;;  %v352_v23 = vld [vmem:[%s4674_s9 + $0xb0] sm:$0xff]  ;;  %v353_v24 = vld [vmem:[%s4674_s9 + $0xb8] sm:$0xff]  ;;  %309 = vst.msk [vmem:[#allocation2 + $0x120] sm:$0x1] %vm297_vm3, %v4614_v47  ;;  %4488 = vmatpush3.bf16.msra.mxu0 %v4841_v0 }
  0x1b   : > { %v354_v25 = vld [vmem:[%s4674_s9 + $0xc0] sm:$0xff]  ;;  %v355_v26 = vld [vmem:[%s4674_s9 + $0xc8] sm:$0xff]  ;;  %v356_v27 = vld [vmem:[%s4674_s9 + $0xd0] sm:$0xff]  ;;  %310 = vst.msk [vmem:[#allocation2 + $0x138] sm:$0x1] %vm297_vm3, %v4614_v47 }
  0x1c   : > { %v357_v28 = vld [vmem:[%s4674_s9 + $0xd8] sm:$0xff]  ;;  %v358_v29 = vld [vmem:[%s4674_s9 + $0xe0] sm:$0xff]  ;;  %v359_v30 = vld [vmem:[%s4674_s9 + $0xe8] sm:$0xff]  ;;  %311 = vst.msk [vmem:[#allocation2 + $0x150] sm:$0x1] %vm297_vm3, %v4614_v47 }
  0x1d   : > { %4272 = vmatmul.mubr.msk.f32.gmra.mrb[4].mxu0 %vm402_vm0, %v335_v6  ;;  %v360_v31 = vld [vmem:[%s4674_s9 + $0xf0] sm:$0xff]  ;;  %v361_v32 = vld [vmem:[%s4674_s9 + $0xf8] sm:$0xff]  ;;  %v362_v33 = vld [vmem:[%s4674_s9 + $0x100] sm:$0xff]  ;;  %312 = vst.msk [vmem:[#allocation2 + $0x168] sm:$0x1] %vm297_vm3, %v4614_v47 }
  0x1e   : > { %4274 = vmatprep.mubr.msk.f32.mxu0 %vm402_vm0, %v336_v7  ;;  %v363_v34 = vld [vmem:[%s4674_s9 + $0x108] sm:$0xff]  ;;  %v364_v35 = vld [vmem:[%s4674_s9 + $0x110] sm:$0xff]  ;;  %v365_v36 = vld [vmem:[%s4674_s9 + $0x118] sm:$0xff]  ;;  %313 = vst.msk [vmem:[#allocation2 + $0x180] sm:$0x1] %vm297_vm3, %v4614_v47 }
  0x1f   : > { %v366_v37 = vld [vmem:[%s4674_s9 + $0x120] sm:$0xff]  ;;  %v367_v38 = vld [vmem:[%s4674_s9 + $0x128] sm:$0xff]  ;;  %v368_v39 = vld [vmem:[%s4674_s9 + $0x130] sm:$0xff]  ;;  %314 = vst.msk [vmem:[#allocation2 + $0x29] sm:$0x1] %vm297_vm3, %v4614_v47 }
  0x20   : > { %v369_v40 = vld [vmem:[%s4674_s9 + $0x138] sm:$0xff]  ;;  %v370_v41 = vld [vmem:[%s4674_s9 + $0x140] sm:$0xff]  ;;  %v371_v42 = vld [vmem:[%s4674_s9 + $0x148] sm:$0xff]  ;;  %315 = vst.msk [vmem:[#allocation2 + $0x41] sm:$0x1] %vm297_vm3, %v4614_v47 }
  0x21   : > { %4275 = vmatmul.mubr.msk.f32.gmra.mrb[6].mxu0 %vm402_vm0, %v337_v8  ;;  %v372_v43 = vld [vmem:[%s4674_s9 + $0x150] sm:$0xff]  ;;  %v373_v44 = vld [vmem:[%s4674_s9 + $0x158] sm:$0xff]  ;;  %v374_v45 = vld [vmem:[%s4674_s9 + $0x160] sm:$0xff]  ;;  %316 = vst.msk [vmem:[#allocation2 + $0x59] sm:$0x1] %vm297_vm3, %v4614_v47 }
  0x22   : > { %4277 = vmatprep.mubr.msk.f32.mxu0 %vm402_vm0, %v338_v9  ;;  %v375_v46 = vld [vmem:[%s4674_s9 + $0x168] sm:$0xff]  ;;  %v376_v48 = vld [vmem:[%s4674_s9 + $0x170] sm:$0xff]  ;;  %317 = vst.msk [vmem:[#allocation2 + $0x71] sm:$0x1] %vm297_vm3, %v4614_v47  ;;  %318 = vst.msk [vmem:[#allocation2 + $0x89] sm:$0x1] %vm297_vm3, %v4614_v47 }
  0x23   : > { %319 = vst.msk [vmem:[#allocation2 + $0xa1] sm:$0x1] %vm297_vm3, %v4614_v47  ;;  %320 = vst.msk [vmem:[#allocation2 + $0xb9] sm:$0x1] %vm297_vm3, %v4614_v47  ;;  %v377_v49 = vld [vmem:[%s4674_s9 + $0x178] sm:$0xff]  ;;  %v378_v50 = vld [vmem:[%s4674_s9 + $0x180] sm:$0xff] }
  0x24   : > { %321 = vst.msk [vmem:[#allocation2 + $0xd1] sm:$0x1] %vm297_vm3, %v4614_v47  ;;  %322 = vst.msk [vmem:[#allocation2 + $0xe9] sm:$0x1] %vm297_vm3, %v4614_v47  ;;  %v379_v51 = vld [vmem:[%s4674_s9 + $0x188] sm:$0xff]  ;;  %v380_v52 = vld [vmem:[%s4674_s9 + $0x190] sm:$0xff] }
  0x25   : > { %4278 = vmatmul.mubr.msk.f32.gmra.mrb[8].mxu0 %vm402_vm0, %v339_v10  ;;  %323 = vst.msk [vmem:[#allocation2 + $0x101] sm:$0x1] %vm297_vm3, %v4614_v47  ;;  %324 = vst.msk [vmem:[#allocation2 + $0x119] sm:$0x1] %vm297_vm3, %v4614_v47  ;;  %v381_v53 = vld [vmem:[%s4674_s9 + $0x198] sm:$0xff]  ;;  %v382_v54 = vld [vmem:[%s4674_s9 + $0x1a0] sm:$0xff] }
  0x26   : > { %4280 = vmatprep.mubr.msk.f32.mxu0 %vm402_vm0, %v340_v11  ;;  %325 = vst.msk [vmem:[#allocation2 + $0x131] sm:$0x1] %vm297_vm3, %v4614_v47  ;;  %326 = vst.msk [vmem:[#allocation2 + $0x149] sm:$0x1] %vm297_vm3, %v4614_v47  ;;  %v383_v55 = vld [vmem:[%s4674_s9 + $0x1a8] sm:$0xff]  ;;  %v384_v58 = vld [vmem:[%s4674_s9 + $0x1b0] sm:$0xff] }
  0x27   : > { %327 = vst.msk [vmem:[#allocation2 + $0x161] sm:$0x1] %vm297_vm3, %v4614_v47  ;;  %328 = vst.msk [vmem:[#allocation2 + $0x179] sm:$0x1] %vm297_vm3, %v4614_v47  ;;  %v385_v60 = vld [vmem:[%s4674_s9 + $0x1b8] sm:$0xff]  ;;  %v386_v63 = vld [vmem:[%s4674_s9 + $0x1c0] sm:$0xff] }
  0x28   : > { %329 = vst.msk [vmem:[#allocation2 + $0x191] sm:$0x1] %vm297_vm3, %v4614_v47  ;;  %v387_v1 = vld [vmem:[%s4674_s9 + $0x1c8] sm:$0xff]  ;;  %v2061_v2 = vld [vmem:[%s7318_s3 + $0x20] sm:$0xff]  ;;  %v388_v4 = vld [vmem:[%s4674_s9 + $0x1d0] sm:$0xff] }
  0x29   : > { %4281 = vmatmul.mubr.msk.f32.gmra.mrb[10].mxu0 %vm402_vm0, %v341_v12  ;;  %v2062_v3 = vld [vmem:[%s7318_s3 + $0x28] sm:$0xff]  ;;  %v389_v6 = vld [vmem:[%s4674_s9 + $0x1d8] sm:$0xff]  ;;  %v390_v7 = vld [vmem:[%s4674_s9 + $0x1e0] sm:$0xff] }
  0x2a   : > { %4283 = vmatprep.mubr.msk.f32.mxu0 %vm402_vm0, %v342_v13  ;;  %v4489_v5 = vpack.c.bf16 %v2062_v3, %v2061_v2  ;;  %v391_v8 = vld [vmem:[%s4674_s9 + $0x1e8] sm:$0xff]  ;;  %v392_v9 = vld [vmem:[%s4674_s9 + $0x1f0] sm:$0xff]  ;;  %v393_v10 = vld [vmem:[%s4674_s9 + $0x1f8] sm:$0xff] }
  0x2b   : > { %v4874_v11 = vld [vmem:[%s7319_s4] ss:$0 sm:$0xff] }
  0x2c   : > { %4490 = vmatprep.subr.bf16.mxu0 %v4489_v5  ;;  %4507 = vmatprep.subr.bf16.mxu1 %v4489_v5  ;;  %v4879_v13 = vld [vmem:[%s7317_s2] ss:$0 sm:$0xff] }
  0x2d   : > { %4284 = vmatmul.mubr.msk.f32.gmra.mrb[12].mxu0 %vm402_vm0, %v343_v14  ;;  %4510 = vmatpush3.bf16.msra.mxu1 %v4489_v5  ;;  %v1077_v14 = vld [vmem:[#allocation2] sm:$0xff] }
  0x2e   : > { %4286 = vmatprep.mubr.msk.f32.mxu0 %vm402_vm0, %v344_v15  ;;  %4492 = vmatpush3.bf16.msra.mxu0 %v4489_v5  ;;  %v4884_v15 = vld [vmem:[%s7317_s2 + $0x1] ss:$0 sm:$0xff]  ;;  %v4940_v5 = vld [vmem:[%s7317_s2 + $0x7] ss:$0 sm:$0xff] }
  0x2f   : > { %4494 = vmatprep.subr.bf16.mxu1 %v4826_v59 }
  0x31   : > { %4287 = vmatmul.mubr.msk.f32.gmra.mrb[14].mxu0 %vm402_vm0, %v345_v16 }
  0x32   : > { %4289 = vmatprep.mubr.msk.f32.mxu0 %vm402_vm0, %v346_v17 }
  0x35   : > { %4290 = vmatmul.mubr.msk.f32.gmra.mrb[16].mxu0 %vm402_vm0, %v347_v18  ;;  %v1178_v18 = vld [vmem:[#allocation2 + $0x1] sm:$0xff] }
  0x36   : > { %4292 = vmatprep.mubr.msk.f32.mxu0 %vm402_vm0, %v348_v19  ;;  %v1078_v19 = vld [vmem:[#allocation2 + $0x8] sm:$0xff] }
  0x39   : > { %4293 = vmatmul.mubr.msk.f32.gmra.mrb[18].mxu0 %vm402_vm0, %v349_v20  ;;  %v1179_v20 = vld [vmem:[#allocation2 + $0x9] sm:$0xff] }
  0x3a   : > { %4295 = vmatprep.mubr.msk.f32.mxu0 %vm402_vm0, %v350_v21 }
  0x3d   : > { %4296 = vmatmul.mubr.msk.f32.gmra.mrb[20].mxu0 %vm402_vm0, %v351_v22 }
  0x3e   : > { %4298 = vmatprep.mubr.msk.f32.mxu0 %vm402_vm0, %v352_v23  ;;  %v1113_v23 = vmul.f32 %v4879_v13, %v1077_v14 }
  0x41   : > { %4299 = vmatmul.mubr.msk.f32.gmra.mrb[22].mxu0 %vm402_vm0, %v353_v24 }
  0x42   : > { %4301 = vmatprep.mubr.msk.f32.mxu0 %vm402_vm0, %v354_v25 }
  0x45   : > { %4302 = vmatmul.mubr.msk.f32.gmra.mrb[24].mxu0 %vm402_vm0, %v355_v26  ;;  %v1214_v26 = vmul.f32 %v4884_v15, %v1178_v18 }
  0x46   : > { %4304 = vmatprep.mubr.msk.f32.mxu0 %vm402_vm0, %v356_v27  ;;  %v4893_v27 = vld [vmem:[%s7317_s2 + $0x2] ss:$0 sm:$0xff] }
  0x49   : > { %4305 = vmatmul.mubr.msk.f32.gmra.mrb[26].mxu0 %vm402_vm0, %v357_v28  ;;  %v1279_v28 = vld [vmem:[#allocation2 + $0x2] sm:$0xff] }
  0x4a   : > { %4307 = vmatprep.mubr.msk.f32.mxu0 %vm402_vm0, %v358_v29  ;;  %v1114_v29 = vmul.f32 %v4879_v13, %v1078_v19 }
  0x4d   : > { %4308 = vmatmul.mubr.msk.f32.gmra.mrb[28].mxu0 %vm402_vm0, %v359_v30  ;;  %v1215_v30 = vmul.f32 %v4884_v15, %v1179_v20 }
  0x4e   : > { %4310 = vmatprep.mubr.msk.f32.mxu0 %vm402_vm0, %v360_v31 }
  0x51   : > { %4311 = vmatmul.mubr.msk.f32.gmra.mrb[30].mxu0 %vm402_vm0, %v361_v32 }
  0x52   : > { %4313 = vmatprep.mubr.msk.f32.mxu0 %vm402_vm0, %v362_v33  ;;  %v1280_v33 = vld [vmem:[#allocation2 + $0xa] sm:$0xff] }
  0x55   : > { %4314 = vmatmul.mubr.msk.f32.gmra.mrb[32].mxu0 %vm402_vm0, %v363_v34 }
  0x56   : > { %4316 = vmatprep.mubr.msk.f32.mxu0 %vm402_vm0, %v364_v35 }
  0x59   : > { %4317 = vmatmul.mubr.msk.f32.gmra.mrb[34].mxu0 %vm402_vm0, %v365_v36  ;;  %v1315_v36 = vmul.f32 %v4893_v27, %v1279_v28 }
  0x5a   : > { %4319 = vmatprep.mubr.msk.f32.mxu0 %vm402_vm0, %v366_v37 }
  0x5d   : > { %4320 = vmatmul.mubr.msk.f32.gmra.mrb[36].mxu0 %vm402_vm0, %v367_v38 }
  0x5e   : > { %4322 = vmatprep.mubr.msk.f32.mxu0 %vm402_vm0, %v368_v39  ;;  %v1246_v39 = vadd.f32 %v1214_v26, %v1113_v23 }
  0x61   : > { %4323 = vmatmul.mubr.msk.f32.gmra.mrb[38].mxu0 %vm402_vm0, %v369_v40  ;;  %v1247_v40 = vadd.f32 %v1215_v30, %v1114_v29 }
  0x62   : > { %4325 = vmatprep.mubr.msk.f32.mxu0 %vm402_vm0, %v370_v41  ;;  %v1316_v41 = vmul.f32 %v4893_v27, %v1280_v33 }
  0x65   : > { %4326 = vmatmul.mubr.msk.f32.gmra.mrb[40].mxu0 %vm402_vm0, %v371_v42 }
  0x66   : > { %4328 = vmatprep.mubr.msk.f32.mxu0 %vm402_vm0, %v372_v43 }
  0x69   : > { %4329 = vmatmul.mubr.msk.f32.gmra.mrb[42].mxu0 %vm402_vm0, %v373_v44 }
  0x6a   : > { %4331 = vmatprep.mubr.msk.f32.mxu0 %vm402_vm0, %v374_v45  ;;  %v4910_v45 = vld [vmem:[%s7317_s2 + $0x4] ss:$0 sm:$0xff] }
  0x6d   : > { %4332 = vmatmul.mubr.msk.f32.gmra.mrb[44].mxu0 %vm402_vm0, %v375_v46  ;;  %v4915_v46 = vld [vmem:[%s7317_s2 + $0x5] ss:$0 sm:$0xff] }
  0x6e   : > { %4334 = vmatprep.mubr.msk.f32.mxu0 %vm402_vm0, %v376_v48  ;;  %v4920_v48 = vld [vmem:[%s7317_s2 + $0x3] ss:$0 sm:$0xff] }
  0x71   : > { %4335 = vmatmul.mubr.msk.f32.gmra.mrb[46].mxu0 %vm402_vm0, %v377_v49 }
  0x72   : > { %4337 = vmatprep.mubr.msk.f32.mxu0 %vm402_vm0, %v378_v50 }
  0x75   : > { %4338 = vmatmul.mubr.msk.f32.gmra.mrb[48].mxu0 %vm402_vm0, %v379_v51  ;;  %v1347_v51 = vadd.f32 %v1315_v36, %v1246_v39 }
  0x76   : > { %4340 = vmatprep.mubr.msk.f32.mxu0 %vm402_vm0, %v380_v52  ;;  %v1348_v52 = vadd.f32 %v1316_v41, %v1247_v40 }
  0x79   : > { %4341 = vmatmul.mubr.msk.f32.gmra.mrb[50].mxu0 %vm402_vm0, %v381_v53 }
  0x7a   : > { %4343 = vmatprep.mubr.msk.f32.mxu0 %vm402_vm0, %v382_v54 }
  0x7d   : > { %4344 = vmatmul.mubr.msk.f32.gmra.mrb[52].mxu0 %vm402_vm0, %v383_v55 }
  0x7e   : > { %4346 = vmatprep.mubr.msk.f32.mxu0 %vm402_vm0, %v384_v58 }
  0x81   : > { %4347 = vmatmul.mubr.msk.f32.gmra.mrb[54].mxu0 %vm402_vm0, %v385_v60 }
  0x82   : > { %4349 = vmatprep.mubr.msk.f32.mxu0 %vm402_vm0, %v386_v63 }
  0x85   : > { %4350 = vmatmul.mubr.msk.f32.gmra.mrb[56].mxu0 %vm402_vm0, %v387_v1 }
  0x86   : > { %4352 = vmatprep.mubr.msk.f32.mxu0 %vm402_vm0, %v388_v4 }
  0x89   : > { %4353 = vmatmul.mubr.msk.f32.gmra.mrb[58].mxu0 %vm402_vm0, %v389_v6  ;;  %v4945_v6 = vld [vmem:[%s7317_s2 + $0x8] ss:$0 sm:$0xff] }
  0x8a   : > { %4355 = vmatprep.mubr.msk.f32.mxu0 %vm402_vm0, %v390_v7 }
  0x8d   : > { %4356 = vmatmul.mubr.msk.f32.gmra.mrb[60].mxu0 %vm402_vm0, %v391_v8 }
  0x8e   : > { %4358 = vmatprep.mubr.msk.f32.mxu0 %vm402_vm0, %v392_v9  ;;  %v4950_v9 = vld [vmem:[%s7317_s2 + $0x6] ss:$0 sm:$0xff] }
  0x91   : > { %4359 = vmatmul.mubr.msk.f32.gmra.mrb[62].mxu0 %vm402_vm0, %v393_v10 }
  0xe8   : > { %v4267_v12 = vpop.f32.mrb[0].mxu0 }
  0xe9   : > { %v667_v16 = vadd.f32 %v4267_v12, %v4874_v11  ;;  %v661_v17 = vpop.f32.mrb[1].mxu0 }
  0xea   : > { %v662_v21 = vadd.f32 %v4874_v11, %v661_v17 }
  0xeb   : > { %v981_v22 = vmax.f32 %v667_v16, 0.0 }
  0xec   : > { %v980_v24 = vmax.f32 %v662_v21, 0.0  ;;  %v4270_v25 = vpop.f32.mrb[2].mxu0 }
  0xed   : > { %1045 = vst.msk [vmem:[#allocation2 + $0x21] sm:$0xff] %vm287_vm1, %v981_v22  ;;  %v677_v31 = vadd.f32 %v4270_v25, %v4874_v11  ;;  %v671_v32 = vpop.f32.mrb[3].mxu0 }
  0xee   : > { %1044 = vst.msk [vmem:[#allocation2 + $0x19] sm:$0xff] %vm287_vm1, %v980_v24  ;;  %v672_v34 = vadd.f32 %v4874_v11, %v671_v32 }
  0xef   : > { %v983_v35 = vmax.f32 %v677_v31, 0.0 }
  0xf0   : > { %v982_v37 = vmax.f32 %v672_v34, 0.0  ;;  %v4273_v38 = vpop.f32.mrb[4].mxu0 }
  0xf1   : > { %1047 = vst.msk [vmem:[#allocation2 + $0x39] sm:$0xff] %vm287_vm1, %v983_v35  ;;  %v687_v42 = vadd.f32 %v4273_v38, %v4874_v11  ;;  %v681_v43 = vpop.f32.mrb[5].mxu0 }
  0xf2   : > { %1046 = vst.msk [vmem:[#allocation2 + $0x31] sm:$0xff] %vm287_vm1, %v982_v37  ;;  %v682_v44 = vadd.f32 %v4874_v11, %v681_v43 }
  0xf3   : > { %v985_v47 = vmax.f32 %v687_v42, 0.0 }
  0xf4   : > { %v984_v49 = vmax.f32 %v682_v44, 0.0  ;;  %v4276_v50 = vpop.f32.mrb[6].mxu0  ;;  %v1482_v53 = vld [vmem:[#allocation2 + $0x21] sm:$0xff] }
  0xf5   : > { %v4922_v54 = vld [vmem:[#allocation2 + $0x22] sm:$0xff]  ;;  %1049 = vst.msk [vmem:[#allocation2 + $0x51] sm:$0xff] %vm287_vm1, %v985_v47  ;;  %v697_v55 = vadd.f32 %v4276_v50, %v4874_v11  ;;  %v691_v56 = vpop.f32.mrb[7].mxu0  ;;  %v1380_v57 = vld [vmem:[#allocation2 + $0x18] sm:$0xff]  ;;  %v1518_v61 = vmul.f32 %v4910_v45, %v1482_v53  ;;  %v4930_v63 = vmul.f32 %v4884_v15, %v1482_v53 }
  0xf6   : > { %v1481_v58 = vld [vmem:[#allocation2 + $0x19] sm:$0xff]  ;;  %v1619_v62 = vmul.f32 %v4915_v46, %v4922_v54  ;;  %1048 = vst.msk [vmem:[#allocation2 + $0x49] sm:$0xff] %vm287_vm1, %v984_v49  ;;  %v692_v1 = vadd.f32 %v4874_v11, %v691_v56  ;;  %v1416_v2 = vmul.f32 %v4920_v48, %v1380_v57  ;;  %v1115_v12 = vmul.f32 %v4879_v13, %v1380_v57 }
  0xf7   : > { %v1582_v60 = vld [vmem:[#allocation2 + $0x1a] sm:$0xff]  ;;  %v1517_v3 = vmul.f32 %v4910_v45, %v1481_v58  ;;  %v987_v8 = vmax.f32 %v697_v55, 0.0  ;;  %v1216_v14 = vmul.f32 %v4884_v15, %v1481_v58 }
  0xf8   : > { %v1618_v4 = vmul.f32 %v4915_v46, %v1582_v60  ;;  %v1381_v7 = vld [vmem:[#allocation2 + $0x20] sm:$0xff]  ;;  %v986_v16 = vmax.f32 %v692_v1, 0.0  ;;  %v4279_v17 = vpop.f32.mrb[8].mxu0  ;;  %v1448_v18 = vadd.f32 %v1416_v2, %v1347_v51  ;;  %v1317_v21 = vmul.f32 %v4893_v27, %v1582_v60 }
  0xf9   : > { %v1417_v10 = vmul.f32 %v4920_v48, %v1381_v7  ;;  %v4955_v19 = vld [vmem:[#allocation2 + $0x39] sm:$0xff]  ;;  %v1116_v22 = vmul.f32 %v4879_v13, %v1381_v7  ;;  %1051 = vst.msk [vmem:[#allocation2 + $0x69] sm:$0xff] %vm287_vm1, %v987_v8  ;;  %v707_v23 = vadd.f32 %v4279_v17, %v4874_v11  ;;  %v701_v24 = vpop.f32.mrb[9].mxu0  ;;  %v4963_v25 = vld [vmem:[#allocation2 + $0x30] sm:$0xff]  ;;  %v1248_v44 = vadd.f32 %v1216_v14, %v1115_v12 }
  0xfa   : > { %v4957_v20 = vld [vmem:[#allocation2 + $0x3a] sm:$0xff]  ;;  %v4965_v26 = vld [vmem:[#allocation2 + $0x31] sm:$0xff]  ;;  %v1822_v30 = vmul.f32 %v4940_v5, %v4955_v19  ;;  %1050 = vst.msk [vmem:[#allocation2 + $0x61] sm:$0xff] %vm287_vm1, %v986_v16  ;;  %v702_v32 = vadd.f32 %v4874_v11, %v701_v24  ;;  %v1549_v33 = vadd.f32 %v1517_v3, %v1448_v18  ;;  %v1720_v34 = vmul.f32 %v4950_v9, %v4963_v25 }
  0xfb   : > { %v4967_v28 = vld [vmem:[#allocation2 + $0x32] sm:$0xff]  ;;  %v1449_v29 = vadd.f32 %v1417_v10, %v1348_v52  ;;  %v1923_v31 = vmul.f32 %v4945_v6, %v4957_v20  ;;  %v1821_v35 = vmul.f32 %v4940_v5, %v4965_v26  ;;  %v989_v37 = vmax.f32 %v707_v23, 0.0  ;;  %v5015_v18 = vld [vmem:[%s7320_s5] ss:$0 sm:$0xff] }
  0xfc   : > { %v4979_v36 = vld [vmem:[#allocation2 + $0x38] sm:$0xff]  ;;  %v1922_v38 = vmul.f32 %v4945_v6, %v4967_v28  ;;  %v988_v41 = vmax.f32 %v702_v32, 0.0  ;;  %v4282_v42 = vpop.f32.mrb[10].mxu0  ;;  %v1650_v43 = vadd.f32 %v1618_v4, %v1549_v33  ;;  %v1418_v47 = vmul.f32 %v4920_v48, %v4963_v25 }
  0xfd   : > { %v1550_v39 = vadd.f32 %v1518_v61, %v1449_v29  ;;  %v1721_v40 = vmul.f32 %v4950_v9, %v4979_v36  ;;  %1053 = vst.msk [vmem:[#allocation2 + $0x81] sm:$0xff] %vm287_vm1, %v989_v37  ;;  %v717_v49 = vadd.f32 %v4282_v42, %v4874_v11  ;;  %v711_v50 = vpop.f32.mrb[11].mxu0  ;;  %v1519_v52 = vmul.f32 %v4910_v45, %v4965_v26  ;;  %v4993_v55 = vld [vmem:[#allocation2 + $0x48] sm:$0xff]  ;;  %v5021_v29 = vld [vmem:[#allocation2 + $0x50] sm:$0xff] }
  0xfe   : > { %v1620_v53 = vmul.f32 %v4915_v46, %v4967_v28  ;;  %v4995_v56 = vld [vmem:[#allocation2 + $0x49] sm:$0xff]  ;;  %1052 = vst.msk [vmem:[#allocation2 + $0x79] sm:$0xff] %vm287_vm1, %v988_v41  ;;  %v712_v58 = vadd.f32 %v4874_v11, %v711_v50  ;;  %v1752_v60 = vadd.f32 %v1720_v34, %v1650_v43  ;;  %v1349_v61 = vadd.f32 %v1317_v21, %v1248_v44  ;;  %v5027_v34 = vld [vmem:[#allocation2 + $0x51] sm:$0xff] }
  0xff   : > { %v1651_v51 = vadd.f32 %v1619_v62, %v1550_v39  ;;  %v4997_v57 = vld [vmem:[#allocation2 + $0x4a] sm:$0xff]  ;;  %v1722_v62 = vmul.f32 %v4950_v9, %v4993_v55  ;;  %v991_v1 = vmax.f32 %v717_v49, 0.0  ;;  %v1823_v3 = vmul.f32 %v4940_v5, %v4995_v56  ;;  %v5031_v39 = vld [vmem:[#allocation2 + $0x52] sm:$0xff] }
 0x100   : > { %v5007_v4 = vmul.f32 %v4945_v6, %v4997_v57  ;;  %v990_v7 = vmax.f32 %v712_v58, 0.0  ;;  %v4285_v8 = vpop.f32.mrb[12].mxu0  ;;  %v1853_v10 = vadd.f32 %v1821_v35, %v1752_v60  ;;  %v1450_v12 = vadd.f32 %v1418_v47, %v1349_v61 }
 0x101   : > { %v1753_v2 = vadd.f32 %v1721_v40, %v1651_v51  ;;  %v1249_v14 = vadd.f32 %v4930_v63, %v1116_v22  ;;  %1055 = vst.msk [vmem:[#allocation2 + $0x99] sm:$0xff] %vm287_vm1, %v991_v1  ;;  %v727_v16 = vadd.f32 %v4285_v8, %v4874_v11  ;;  %v721_v17 = vpop.f32.mrb[13].mxu0  ;;  %v1318_v23 = vmul.f32 %v4893_v27, %v4922_v54 }
 0x102   : > { %v1419_v24 = vmul.f32 %v4920_v48, %v4979_v36  ;;  %1054 = vst.msk [vmem:[#allocation2 + $0x91] sm:$0xff] %vm287_vm1, %v990_v7  ;;  %v722_v63 = vadd.f32 %v4874_v11, %v721_v17  ;;  %v1954_v22 = vadd.f32 %v1922_v38, %v1853_v10  ;;  %v1551_v32 = vadd.f32 %v1519_v52, %v1450_v12 }
 0x103   : > { %v1854_v21 = vadd.f32 %v1822_v30, %v1753_v2  ;;  %v1520_v33 = vmul.f32 %v4910_v45, %v4955_v19  ;;  %v993_v30 = vmax.f32 %v727_v16, 0.0  ;;  %v1350_v37 = vadd.f32 %v1318_v23, %v1249_v14  ;;  %v5052_v14 = vld [vmem:[#allocation2 + $0x60] sm:$0xff] }
 0x104   : > { %v1621_v54 = vmul.f32 %v4915_v46, %v4957_v20  ;;  %v992_v40 = vmax.f32 %v722_v63, 0.0  ;;  %v4288_v41 = vpop.f32.mrb[14].mxu0  ;;  %v1993_v42 = vadd.f32 %v5015_v18, %v1954_v22  ;;  %v1652_v43 = vadd.f32 %v1620_v53, %v1551_v32  ;;  %v5054_v16 = vld [vmem:[#allocation2 + $0x61] sm:$0xff] }
 0x105   : > { %v1955_v35 = vadd.f32 %v1923_v31, %v1854_v21  ;;  %v1723_v38 = vmul.f32 %v4950_v9, %v5021_v29  ;;  %1057 = vst.msk [vmem:[#allocation2 + $0xb1] sm:$0xff] %vm287_vm1, %v993_v30  ;;  %v737_v44 = vadd.f32 %v4288_v41, %v4874_v11  ;;  %v731_v47 = vpop.f32.mrb[15].mxu0  ;;  %v1451_v49 = vadd.f32 %v1419_v24, %v1350_v37  ;;  %v5063_v23 = vld [vmem:[#allocation2 + $0x62] sm:$0xff] }
 0x106   : > { %v1824_v50 = vmul.f32 %v4940_v5, %v5027_v34  ;;  %1056 = vst.msk [vmem:[#allocation2 + $0xa9] sm:$0xff] %vm287_vm1, %v992_v40  ;;  %v732_v51 = vadd.f32 %v4874_v11, %v731_v47  ;;  %v2025_v52 = vmax.f32 %v1993_v42, 0.0  ;;  %v1754_v53 = vadd.f32 %v1722_v62, %v1652_v43 }
 0x107   : > { %v1994_v31 = vadd.f32 %v5015_v18, %v1955_v35  ;;  %v1925_v58 = vmul.f32 %v4945_v6, %v5031_v39  ;;  %v995_v60 = vmax.f32 %v737_v44, 0.0  ;;  %v1552_v1 = vadd.f32 %v1520_v33, %v1451_v49 }
 0x108   : > { %v1117_v2 = vmul.f32 %v4879_v13, %v4963_v25  ;;  %v994_v7 = vmax.f32 %v732_v51, 0.0  ;;  %v4291_v8 = vpop.f32.mrb[16].mxu0  ;;  %4373 = vmatprep.mubr.msk.f32.mxu0 %vm287_vm1, %v2025_v52  ;;  %v1855_v10 = vadd.f32 %v1823_v3, %v1754_v53  ;;  %v1218_v12 = vmul.f32 %v4884_v15, %v4965_v26  ;;  %v5089_v53 = vld [vmem:[#allocation2 + $0x68] sm:$0xff] }
 0x109   : > { %v2026_v61 = vmax.f32 %v1994_v31, 0.0  ;;  %v1319_v62 = vmul.f32 %v4893_v27, %v4967_v28  ;;  %1059 = vst.msk [vmem:[#allocation2 + $0xc9] sm:$0xff] %vm287_vm1, %v995_v60  ;;  %v747_v17 = vadd.f32 %v4291_v8, %v4874_v11  ;;  %v741_v25 = vpop.f32.mrb[17].mxu0  ;;  %v1653_v21 = vadd.f32 %v1621_v54, %v1552_v1  ;;  %v5093_v1 = vld [vmem:[#allocation2 + $0x69] sm:$0xff] }
 0x10a   : > { %v1420_v3 = vmul.f32 %v4920_v48, %v4993_v55  ;;  %v1521_v26 = vmul.f32 %v4910_v45, %v4995_v56  ;;  %1058 = vst.msk [vmem:[#allocation2 + $0xc1] sm:$0xff] %vm287_vm1, %v994_v7  ;;  %v742_v28 = vadd.f32 %v4874_v11, %v741_v25  ;;  %v1956_v24 = vadd.f32 %v5007_v4, %v1855_v10 }
 0x10b   : > { %4374 = vmatmul.mubr.msk.f32.vlgmr.msra.gmra.mrb[64].mxu0 %vm287_vm1, %v2026_v61  ;;  %v1250_v63 = vadd.f32 %v1218_v12, %v1117_v2  ;;  %v1622_v22 = vmul.f32 %v4915_v46, %v4997_v57  ;;  %v997_v32 = vmax.f32 %v747_v17, 0.0  ;;  %v1755_v33 = vadd.f32 %v1723_v38, %v1653_v21 }
 0x10c   : > { %v1724_v30 = vmul.f32 %v4950_v9, %v5052_v14  ;;  %v1825_v35 = vmul.f32 %v4940_v5, %v5054_v16  ;;  %v996_v37 = vmax.f32 %v742_v28, 0.0  ;;  %v4294_v54 = vpop.f32.mrb[18].mxu0  ;;  %v1995_v40 = vadd.f32 %v5015_v18, %v1956_v24 }
 0x10d   : > { %v1351_v41 = vadd.f32 %v1319_v62, %v1250_v63  ;;  %v5077_v4 = vmul.f32 %v4945_v6, %v5063_v23  ;;  %1061 = vst.msk [vmem:[#allocation2 + $0xe1] sm:$0xff] %vm287_vm1, %v997_v32  ;;  %v757_v42 = vadd.f32 %v4294_v54, %v4874_v11  ;;  %v751_v43 = vpop.f32.mrb[19].mxu0  ;;  %v1856_v38 = vadd.f32 %v1824_v50, %v1755_v33 }
 0x10e   : > { %v1118_v44 = vmul.f32 %v4879_v13, %v4979_v36  ;;  %v1219_v47 = vmul.f32 %v4884_v15, %v4955_v19  ;;  %1060 = vst.msk [vmem:[#allocation2 + $0xd9] sm:$0xff] %vm287_vm1, %v996_v37  ;;  %v2027_v31 = vmax.f32 %v1995_v40, 0.0  ;;  %v752_v49 = vadd.f32 %v4874_v11, %v751_v43  ;;  %v5095_v19 = vld [vmem:[#allocation2 + $0x6a] sm:$0xff]  ;;  %v5115_v37 = vld [vmem:[#allocation2 + $0x78] sm:$0xff] }
 0x10f   : > { %v1452_v51 = vadd.f32 %v1420_v3, %v1351_v41  ;;  %v1320_v52 = vmul.f32 %v4893_v27, %v4957_v20  ;;  %v999_v60 = vmax.f32 %v757_v42, 0.0  ;;  %v1957_v61 = vadd.f32 %v1925_v58, %v1856_v38  ;;  %v5121_v43 = vld [vmem:[#allocation2 + $0x79] sm:$0xff] }
 0x110   : > { %v1251_v50 = vadd.f32 %v1219_v47, %v1118_v44  ;;  %v1421_v36 = vmul.f32 %v4920_v48, %v5021_v29  ;;  %4376 = vmatprep.mubr.msk.f32.mxu1 %vm287_vm1, %v2027_v31  ;;  %v998_v2 = vmax.f32 %v752_v49, 0.0  ;;  %v4297_v7 = vpop.f32.mrb[20].mxu0  ;;  %v1522_v20 = vmul.f32 %v4910_v45, %v5027_v34  ;;  %v5123_v38 = vld [vmem:[#allocation2 + $0x7a] sm:$0xff] }
 0x111   : > { %v1553_v8 = vadd.f32 %v1521_v26, %v1452_v51  ;;  %v1623_v10 = vmul.f32 %v4915_v46, %v5031_v39  ;;  %1063 = vst.msk [vmem:[#allocation2 + $0xf9] sm:$0xff] %vm287_vm1, %v999_v60  ;;  %v1996_v58 = vadd.f32 %v5015_v18, %v1957_v61  ;;  %v767_v12 = vadd.f32 %v4297_v7, %v4874_v11  ;;  %v761_v62 = vpop.f32.mrb[21].mxu0  ;;  %v5149_v7 = vld [vmem:[#allocation2 + $0x80] sm:$0xff] }
 0x112   : > { %v1352_v17 = vadd.f32 %v1320_v52, %v1251_v50  ;;  %v1725_v25 = vmul.f32 %v4950_v9, %v5089_v53  ;;  %1062 = vst.msk [vmem:[#allocation2 + $0xf1] sm:$0xff] %vm287_vm1, %v998_v2  ;;  %v762_v3 = vadd.f32 %v4874_v11, %v761_v62  ;;  %v1826_v26 = vmul.f32 %v4940_v5, %v5093_v1  ;;  %v5160_v62 = vld [vmem:[#allocation2 + $0x82] sm:$0xff] }
 0x113   : > { %v1654_v21 = vadd.f32 %v1622_v22, %v1553_v8  ;;  %v1927_v28 = vmul.f32 %v4945_v6, %v5095_v19  ;;  %v2028_v24 = vmax.f32 %v1996_v58, 0.0  ;;  %v1001_v63 = vmax.f32 %v767_v12, 0.0  ;;  %v5158_v12 = vld [vmem:[#allocation2 + $0x81] sm:$0xff] }
 0x114   : > { %v1453_v32 = vadd.f32 %v1421_v36, %v1352_v17  ;;  %v1119_v33 = vmul.f32 %v4879_v13, %v4993_v55  ;;  %v1000_v40 = vmax.f32 %v762_v3, 0.0  ;;  %v4300_v41 = vpop.f32.mrb[22].mxu0  ;;  %v1220_v22 = vmul.f32 %v4884_v15, %v4995_v56 }
 0x115   : > { %v1756_v54 = vadd.f32 %v1724_v30, %v1654_v21  ;;  %v1321_v42 = vmul.f32 %v4893_v27, %v4997_v57  ;;  %4377 = vmatmul.mubr.msk.f32.vlgmr.msra.gmra.mrb[0].mxu1 %vm287_vm1, %v2028_v24  ;;  %1065 = vst.msk [vmem:[#allocation2 + $0x111] sm:$0xff] %vm287_vm1, %v1001_v63  ;;  %v777_v44 = vadd.f32 %v4300_v41, %v4874_v11  ;;  %v771_v47 = vpop.f32.mrb[23].mxu0 }
 0x116   : > { %v1554_v55 = vadd.f32 %v1522_v20, %v1453_v32  ;;  %v1422_v30 = vmul.f32 %v4920_v48, %v5052_v14  ;;  %v1523_v56 = vmul.f32 %v4910_v45, %v5054_v16  ;;  %4496 = vmatpush3.bf16.msra.mxu1 %v4826_v59  ;;  %1064 = vst.msk [vmem:[#allocation2 + $0x109] sm:$0xff] %vm287_vm1, %v1000_v40 }
 0x117   : > { %v1857_v57 = vadd.f32 %v1825_v35, %v1756_v54  ;;  %v1252_v31 = vadd.f32 %v1220_v22, %v1119_v33  ;;  %v1624_v49 = vmul.f32 %v4915_v46, %v5063_v23  ;;  %v1726_v51 = vmul.f32 %v4950_v9, %v5115_v37  ;;  %4498 = vmatprep.subr.bf16.mxu1 %v4841_v0 }
 0x118   : > { %v1655_v52 = vadd.f32 %v1623_v10, %v1554_v55  ;;  %v1003_v60 = vmax.f32 %v777_v44, 0.0  ;;  %v1827_v61 = vmul.f32 %v4940_v5, %v5121_v43  ;;  %v5142_v50 = vmul.f32 %v4945_v6, %v5123_v38  ;;  %v4303_v8 = vpop.f32.mrb[24].mxu0  ;;  %v5180_v55 = vld [vmem:[#allocation2 + $0x90] sm:$0xff] }
 0x119   : > { %v1958_v59 = vadd.f32 %v5077_v4, %v1857_v57  ;;  %v1353_v35 = vadd.f32 %v1321_v42, %v1252_v31  ;;  %v772_v36 = vadd.f32 %v4874_v11, %v771_v47  ;;  %v1120_v2 = vmul.f32 %v4879_v13, %v5021_v29  ;;  %v781_v29 = vpop.f32.mrb[25].mxu0  ;;  %v5191_v57 = vld [vmem:[#allocation2 + $0x91] sm:$0xff] }
 0x11a   : > { %v1757_v20 = vadd.f32 %v1725_v25, %v1655_v52  ;;  %1067 = vst.msk [vmem:[#allocation2 + $0x129] sm:$0xff] %vm287_vm1, %v1003_v60  ;;  %v1221_v10 = vmul.f32 %v4884_v15, %v5027_v34  ;;  %v1322_v58 = vmul.f32 %v4893_v27, %v5031_v39  ;;  %v1423_v4 = vmul.f32 %v4920_v48, %v5089_v53  ;;  %v5193_v31 = vld [vmem:[#allocation2 + $0x92] sm:$0xff] }
 0x11b   : > { %v1997_v17 = vadd.f32 %v5015_v18, %v1958_v59  ;;  %v1454_v21 = vadd.f32 %v1422_v30, %v1353_v35  ;;  %v1002_v25 = vmax.f32 %v772_v36, 0.0  ;;  %v1524_v3 = vmul.f32 %v4910_v45, %v5093_v1  ;;  %4500 = vmatpush3.bf16.msra.mxu1 %v4841_v0 }
 0x11c   : > { %v1858_v34 = vadd.f32 %v1826_v26, %v1757_v20  ;;  %v1253_v24 = vadd.f32 %v1221_v10, %v1120_v2  ;;  %v1625_v39 = vmul.f32 %v4915_v46, %v5095_v19  ;;  %v1727_v63 = vmul.f32 %v4950_v9, %v5149_v7  ;;  %v4306_v0 = vpop.f32.mrb[26].mxu0 }
 0x11d   : > { %v2029_v32 = vmax.f32 %v1997_v17, 0.0  ;;  %v1555_v33 = vadd.f32 %v1523_v56, %v1454_v21  ;;  %1066 = vst.msk [vmem:[#allocation2 + $0x121] sm:$0xff] %vm287_vm1, %v1002_v25  ;;  %v1828_v54 = vmul.f32 %v4940_v5, %v5158_v12  ;;  %v5175_v40 = vmul.f32 %v4945_v6, %v5160_v62  ;;  %v5182_v44 = vpop.f32.mrb[27].mxu0  ;;  %v5216_v25 = vld [vmem:[#allocation2 + $0x98] sm:$0xff] }
 0x11e   : > { %v1959_v26 = vadd.f32 %v1927_v28, %v1858_v34  ;;  %v1354_v41 = vadd.f32 %v1322_v58, %v1253_v24  ;;  %v787_v22 = vadd.f32 %v4303_v8, %v4874_v11  ;;  %v1121_v42 = vmul.f32 %v4879_v13, %v5052_v14 }
 0x11f   : > { %4379 = vmatprep.mubr.msk.f32.mxu1 %vm287_vm1, %v2029_v32  ;;  %v1656_v30 = vadd.f32 %v1624_v49, %v1555_v33  ;;  %v1222_v56 = vmul.f32 %v4884_v15, %v5054_v16  ;;  %v1323_v47 = vmul.f32 %v4893_v27, %v5063_v23  ;;  %v1424_v28 = vmul.f32 %v4920_v48, %v5115_v37  ;;  %v5225_v32 = vld [vmem:[#allocation2 + $0x99] sm:$0xff] }
 0x120   : > { %v1998_v14 = vadd.f32 %v5015_v18, %v1959_v26  ;;  %v1455_v52 = vadd.f32 %v1423_v4, %v1354_v41  ;;  %v1005_v60 = vmax.f32 %v787_v22, 0.0  ;;  %v1525_v49 = vmul.f32 %v4910_v45, %v5121_v43  ;;  %v5202_v36 = vpop.f32.mrb[28].mxu0 }
 0x121   : > { %v1758_v59 = vadd.f32 %v1726_v51, %v1656_v30  ;;  %v1254_v35 = vadd.f32 %v1222_v56, %v1121_v42  ;;  %v1626_v16 = vmul.f32 %v4915_v46, %v5123_v38  ;;  %v1728_v23 = vmul.f32 %v4950_v9, %v5180_v55  ;;  %v5211_v51 = vpop.f32.mrb[29].mxu0 }
 0x122   : > { %v2030_v2 = vmax.f32 %v1998_v14, 0.0  ;;  %v1556_v8 = vadd.f32 %v1524_v3, %v1455_v52  ;;  %1069 = vst.msk [vmem:[#allocation2 + $0x141] sm:$0xff] %vm287_vm1, %v1005_v60  ;;  %v1829_v20 = vmul.f32 %v4940_v5, %v5191_v57  ;;  %v5209_v10 = vmul.f32 %v4945_v6, %v5193_v31 }
 0x123   : > { %v1859_v58 = vadd.f32 %v1827_v61, %v1758_v59  ;;  %v1355_v4 = vadd.f32 %v1323_v47, %v1254_v35  ;;  %v782_v17 = vadd.f32 %v4874_v11, %v781_v29  ;;  %v1122_v21 = vmul.f32 %v4879_v13, %v5089_v53  ;;  %v5227_v29 = vld [vmem:[#allocation2 + $0x9a] sm:$0xff] }
 0x124   : > { %4380 = vmatmul.mubr.msk.f32.gmra.mrb[2].mxu1 %vm287_vm1, %v2030_v2  ;;  %v1657_v3 = vadd.f32 %v1625_v39, %v1556_v8  ;;  %v1223_v34 = vmul.f32 %v4884_v15, %v5093_v1  ;;  %v1324_v24 = vmul.f32 %v4893_v27, %v5095_v19  ;;  %v1425_v61 = vmul.f32 %v4920_v48, %v5149_v7  ;;  %v5232_v41 = vpop.f32.mrb[30].mxu0  ;;  %v5255_v8 = vld [vmem:[#allocation2 + $0xa8] sm:$0xff] }
 0x125   : > { %v1960_v53 = vadd.f32 %v5142_v50, %v1859_v58  ;;  %v1456_v33 = vadd.f32 %v1424_v28, %v1355_v4  ;;  %v1004_v26 = vmax.f32 %v782_v17, 0.0  ;;  %v1526_v39 = vmul.f32 %v4910_v45, %v5158_v12  ;;  %v5238_v30 = vpop.f32.mrb[31].mxu0  ;;  %v5257_v58 = vld [vmem:[#allocation2 + $0xa9] sm:$0xff] }
 0x126   : > { %v1759_v1 = vadd.f32 %v1727_v63, %v1657_v3  ;;  %v1255_v22 = vadd.f32 %v1223_v34, %v1122_v21  ;;  %v1627_v19 = vmul.f32 %v4915_v46, %v5160_v62  ;;  %v1729_v42 = vmul.f32 %v4950_v9, %v5216_v25 }
 0x127   : > { %v1999_v56 = vadd.f32 %v5015_v18, %v1960_v53  ;;  %v1557_v50 = vadd.f32 %v1525_v49, %v1456_v33  ;;  %1068 = vst.msk [vmem:[#allocation2 + $0x139] sm:$0xff] %vm287_vm1, %v1004_v26  ;;  %v1830_v47 = vmul.f32 %v4940_v5, %v5225_v32  ;;  %v5246_v63 = vmul.f32 %v4945_v6, %v5227_v29 }
 0x128   : > { %v1860_v28 = vadd.f32 %v1828_v54, %v1759_v1  ;;  %v1356_v14 = vadd.f32 %v1324_v24, %v1255_v22  ;;  %v797_v52 = vadd.f32 %v4306_v0, %v4874_v11  ;;  %v1123_v60 = vmul.f32 %v4879_v13, %v5115_v37  ;;  %v5259_v4 = vpop.f32.mrb[32].mxu0 }
 0x129   : > { %v2031_v59 = vmax.f32 %v1999_v56, 0.0  ;;  %v1658_v35 = vadd.f32 %v1626_v16, %v1557_v50  ;;  %v1224_v49 = vmul.f32 %v4884_v15, %v5121_v43  ;;  %v1325_v2 = vmul.f32 %v4893_v27, %v5123_v38  ;;  %v5264_v16 = vld [vmem:[#allocation2 + $0xaa] sm:$0xff]  ;;  %v5266_v21 = vpop.f32.mrb[33].mxu0 }
 0x12a   : > { %v1961_v54 = vadd.f32 %v5175_v40, %v1860_v28  ;;  %v1457_v0 = vadd.f32 %v1425_v61, %v1356_v14  ;;  %v1007_v17 = vmax.f32 %v797_v52, 0.0  ;;  %v1426_v37 = vmul.f32 %v4920_v48, %v5180_v55  ;;  %v5289_v14 = vld [vmem:[#allocation2 + $0xb0] sm:$0xff] }
 0x12b   : > { %4382 = vmatprep.mubr.msk.f32.mxu1 %vm287_vm1, %v2031_v59  ;;  %v1760_v43 = vadd.f32 %v1728_v23, %v1658_v35  ;;  %v1256_v38 = vadd.f32 %v1224_v49, %v1123_v60  ;;  %v1527_v3 = vmul.f32 %v4910_v45, %v5191_v57  ;;  %v1628_v34 = vmul.f32 %v4915_v46, %v5193_v31  ;;  %v5296_v35 = vld [vmem:[#allocation2 + $0xb1] sm:$0xff] }
 0x12c   : > { %v2000_v40 = vadd.f32 %v5015_v18, %v1961_v54  ;;  %v1558_v24 = vadd.f32 %v1526_v39, %v1457_v0  ;;  %1071 = vst.msk [vmem:[#allocation2 + $0x159] sm:$0xff] %vm287_vm1, %v1007_v17  ;;  %v1730_v61 = vmul.f32 %v4950_v9, %v5255_v8  ;;  %v1831_v53 = vmul.f32 %v4940_v5, %v5257_v58  ;;  %v5283_v22 = vpop.f32.mrb[34].mxu0 }
 0x12d   : > { %v1861_v33 = vadd.f32 %v1829_v20, %v1760_v43  ;;  %v1357_v23 = vadd.f32 %v1325_v2, %v1256_v38  ;;  %v1932_v26 = vmul.f32 %v4945_v6, %v5264_v16  ;;  %v792_v1 = vadd.f32 %v4874_v11, %v5182_v44  ;;  %v5291_v20 = vpop.f32.mrb[35].mxu0 }
 0x12e   : > { %v2032_v56 = vmax.f32 %v2000_v40, 0.0  ;;  %v1659_v39 = vadd.f32 %v1627_v19, %v1558_v24  ;;  %v1124_v50 = vmul.f32 %v4879_v13, %v5149_v7  ;;  %v1225_v28 = vmul.f32 %v4884_v15, %v5158_v12  ;;  %v5298_v19 = vld [vmem:[#allocation2 + $0xb2] sm:$0xff] }
 0x12f   : > { %v1962_v52 = vadd.f32 %v5209_v10, %v1861_v33  ;;  %v1458_v60 = vadd.f32 %v1426_v37, %v1357_v23  ;;  %v1006_v59 = vmax.f32 %v792_v1, 0.0  ;;  %v1326_v44 = vmul.f32 %v4893_v27, %v5160_v62 }
 0x130   : > { %4383 = vmatmul.mubr.msk.f32.gmra.mrb[4].mxu1 %vm287_vm1, %v2032_v56  ;;  %v1761_v7 = vadd.f32 %v1729_v42, %v1659_v39  ;;  %v1257_v49 = vadd.f32 %v1225_v28, %v1124_v50  ;;  %v1427_v12 = vmul.f32 %v4920_v48, %v5216_v25  ;;  %v1528_v2 = vmul.f32 %v4910_v45, %v5225_v32  ;;  %v5311_v17 = vpop.f32.mrb[36].mxu0  ;;  %v5328_v50 = vld [vmem:[#allocation2 + $0xc0] sm:$0xff] }
 0x131   : > { %v2001_v10 = vadd.f32 %v5015_v18, %v1962_v52  ;;  %v1559_v54 = vadd.f32 %v1527_v3, %v1458_v60  ;;  %1070 = vst.msk [vmem:[#allocation2 + $0x151] sm:$0xff] %vm287_vm1, %v1006_v59  ;;  %v1629_v62 = vmul.f32 %v4915_v46, %v5227_v29  ;;  %v1731_v0 = vmul.f32 %v4950_v9, %v5289_v14  ;;  %v5317_v40 = vpop.f32.mrb[37].mxu0  ;;  %v5330_v28 = vld [vmem:[#allocation2 + $0xc1] sm:$0xff] }
 0x132   : > { %v1862_v42 = vadd.f32 %v1830_v47, %v1761_v7  ;;  %v1358_v37 = vadd.f32 %v1326_v44, %v1257_v49  ;;  %v1832_v43 = vmul.f32 %v4940_v5, %v5296_v35  ;;  %v1933_v38 = vmul.f32 %v4945_v6, %v5298_v19 }
 0x133   : > { %v2033_v3 = vmax.f32 %v2001_v10, 0.0  ;;  %v1660_v24 = vadd.f32 %v1628_v34, %v1559_v54  ;;  %v807_v33 = vadd.f32 %v5202_v36, %v4874_v11  ;;  %v1125_v23 = vmul.f32 %v4879_v13, %v5180_v55  ;;  %v5332_v34 = vld [vmem:[#allocation2 + $0xc2] sm:$0xff] }
 0x134   : > { %v1963_v1 = vadd.f32 %v5246_v63, %v1862_v42  ;;  %v1459_v47 = vadd.f32 %v1427_v12, %v1358_v37  ;;  %v1226_v56 = vmul.f32 %v4884_v15, %v5191_v57  ;;  %v1327_v39 = vmul.f32 %v4893_v27, %v5193_v31  ;;  %v5339_v57 = vpop.f32.mrb[38].mxu0 }
 0x135   : > { %4385 = vmatprep.mubr.msk.f32.mxu1 %vm287_vm1, %v2033_v3  ;;  %v1762_v36 = vadd.f32 %v1730_v61, %v1660_v24  ;;  %v1009_v52 = vmax.f32 %v807_v33, 0.0  ;;  %v1428_v55 = vmul.f32 %v4920_v48, %v5255_v8  ;;  %v1529_v63 = vmul.f32 %v4910_v45, %v5257_v58  ;;  %v5344_v7 = vpop.f32.mrb[39].mxu0 }
 0x136   : > { %v2002_v31 = vadd.f32 %v5015_v18, %v1963_v1  ;;  %v1560_v60 = vadd.f32 %v1528_v2, %v1459_v47  ;;  %v1258_v59 = vadd.f32 %v1226_v56, %v1125_v23  ;;  %v1630_v44 = vmul.f32 %v4915_v46, %v5264_v16  ;;  %v5363_v23 = vld [vmem:[#allocation2 + $0xc8] sm:$0xff] }
 0x137   : > { %v1863_v49 = vadd.f32 %v1831_v53, %v1762_v36  ;;  %1073 = vst.msk [vmem:[#allocation2 + $0x171] sm:$0xff] %vm287_vm1, %v1009_v52  ;;  %v1732_v61 = vmul.f32 %v4950_v9, %v5328_v50  ;;  %v1833_v12 = vmul.f32 %v4940_v5, %v5330_v28  ;;  %v5353_v10 = vmul.f32 %v4945_v6, %v5332_v34  ;;  %v5365_v1 = vld [vmem:[#allocation2 + $0xc9] sm:$0xff] }
 0x138   : > { %v2034_v2 = vmax.f32 %v2002_v31, 0.0  ;;  %v1661_v54 = vadd.f32 %v1629_v62, %v1560_v60  ;;  %v1359_v42 = vadd.f32 %v1327_v39, %v1258_v59  ;;  %v802_v37 = vadd.f32 %v4874_v11, %v5211_v51  ;;  %v5367_v47 = vpop.f32.mrb[40].mxu0  ;;  %v5372_v56 = vld [vmem:[#allocation2 + $0xca] sm:$0xff] }
 0x139   : > { %v1964_v3 = vadd.f32 %v1932_v26, %v1863_v49  ;;  %v1126_v53 = vmul.f32 %v4879_v13, %v5216_v25  ;;  %v1227_v24 = vmul.f32 %v4884_v15, %v5225_v32  ;;  %v1328_v33 = vmul.f32 %v4893_v27, %v5227_v29  ;;  %v5374_v32 = vpop.f32.mrb[41].mxu0 }
 0x13a   : > { %4386 = vmatmul.mubr.msk.f32.gmra.mrb[6].mxu1 %vm287_vm1, %v2034_v2  ;;  %v1763_v62 = vadd.f32 %v1731_v0, %v1661_v54  ;;  %v1460_v51 = vadd.f32 %v1428_v55, %v1359_v42  ;;  %v1008_v26 = vmax.f32 %v802_v37, 0.0  ;;  %v1429_v25 = vmul.f32 %v4920_v48, %v5289_v14 }
 0x13b   : > { %v2003_v29 = vadd.f32 %v5015_v18, %v1964_v3  ;;  %v1259_v39 = vadd.f32 %v1227_v24, %v1126_v53  ;;  %v1530_v36 = vmul.f32 %v4910_v45, %v5296_v35  ;;  %v1631_v52 = vmul.f32 %v4915_v46, %v5298_v19  ;;  %v5398_v53 = vld [vmem:[#allocation2 + $0xd8] sm:$0xff] }
 0x13c   : > { %v1864_v31 = vadd.f32 %v1832_v43, %v1763_v62  ;;  %v1561_v0 = vadd.f32 %v1529_v63, %v1460_v51  ;;  %1072 = vst.msk [vmem:[#allocation2 + $0x169] sm:$0xff] %vm287_vm1, %v1008_v26  ;;  %v1733_v55 = vmul.f32 %v4950_v9, %v5363_v23  ;;  %v1834_v60 = vmul.f32 %v4940_v5, %v5365_v1  ;;  %v5392_v42 = vpop.f32.mrb[42].mxu0  ;;  %v5400_v24 = vld [vmem:[#allocation2 + $0xd9] sm:$0xff] }
 0x13d   : > { %v2035_v59 = vmax.f32 %v2003_v29, 0.0  ;;  %v1360_v49 = vadd.f32 %v1328_v33, %v1259_v39  ;;  %v5388_v2 = vmul.f32 %v4945_v6, %v5372_v56  ;;  %v817_v54 = vadd.f32 %v5232_v41, %v4874_v11  ;;  %v5402_v33 = vpop.f32.mrb[43].mxu0 }
 0x13e   : > { %v1965_v43 = vadd.f32 %v1933_v38, %v1864_v31  ;;  %v1662_v63 = vadd.f32 %v1630_v44, %v1561_v0  ;;  %v1127_v37 = vmul.f32 %v4879_v13, %v5255_v8  ;;  %v1228_v3 = vmul.f32 %v4884_v15, %v5257_v58  ;;  %v5409_v8 = vld [vmem:[#allocation2 + $0xda] sm:$0xff] }
 0x13f   : > { %4388 = vmatprep.mubr.msk.f32.mxu1 %vm287_vm1, %v2035_v59  ;;  %v1461_v62 = vadd.f32 %v1429_v25, %v1360_v49  ;;  %v1011_v41 = vmax.f32 %v817_v54, 0.0  ;;  %v1329_v38 = vmul.f32 %v4893_v27, %v5264_v16  ;;  %v1430_v44 = vmul.f32 %v4920_v48, %v5328_v50 }
 0x140   : > { %v2004_v58 = vadd.f32 %v5015_v18, %v1965_v43  ;;  %v1764_v51 = vadd.f32 %v1732_v61, %v1662_v63  ;;  %v1260_v26 = vadd.f32 %v1228_v3, %v1127_v37  ;;  %v1531_v29 = vmul.f32 %v4910_v45, %v5330_v28  ;;  %v5421_v0 = vpop.f32.mrb[44].mxu0 }
 0x141   : > { %v1562_v39 = vadd.f32 %v1530_v36, %v1461_v62  ;;  %1075 = vst.msk [vmem:[#allocation2 + $0x189] sm:$0xff] %vm287_vm1, %v1011_v41  ;;  %v1632_v25 = vmul.f32 %v4915_v46, %v5332_v34  ;;  %v1734_v16 = vmul.f32 %v4950_v9, %v5398_v53  ;;  %v1835_v31 = vmul.f32 %v4940_v5, %v5400_v24  ;;  %v5427_v36 = vpop.f32.mrb[45].mxu0  ;;  %v5435_v62 = vld [vmem:[#allocation2 + $0xe0] sm:$0xff] }
 0x142   : > { %v2036_v59 = vmax.f32 %v2004_v58, 0.0  ;;  %v1865_v61 = vadd.f32 %v1833_v12, %v1764_v51  ;;  %v1361_v49 = vadd.f32 %v1329_v38, %v1260_v26  ;;  %v5425_v54 = vmul.f32 %v4945_v6, %v5409_v8 }
 0x143   : > { %v1663_v43 = vadd.f32 %v1631_v52, %v1562_v39  ;;  %v812_v63 = vadd.f32 %v4874_v11, %v5238_v30  ;;  %v1128_v37 = vmul.f32 %v4879_v13, %v5289_v14  ;;  %v1229_v3 = vmul.f32 %v4884_v15, %v5296_v35  ;;  %v5443_v11 = vld [vmem:[#allocation2 + $0xe1] sm:$0xff] }
 0x144   : > { %4389 = vmatmul.mubr.msk.f32.gmra.mrb[8].mxu1 %vm287_vm1, %v2036_v59  ;;  %v1966_v12 = vadd.f32 %v5353_v10, %v1865_v61  ;;  %v1462_v41 = vadd.f32 %v1430_v44, %v1361_v49  ;;  %v1330_v38 = vmul.f32 %v4893_v27, %v5298_v19  ;;  %v1431_v52 = vmul.f32 %v4920_v48, %v5363_v23  ;;  %v5445_v30 = vld [vmem:[#allocation2 + $0xe2] sm:$0xff]  ;;  %v5449_v58 = vpop.f32.mrb[46].mxu0 }
 0x145   : > { %v1765_v13 = vadd.f32 %v1733_v55, %v1663_v43  ;;  %v1010_v14 = vmax.f32 %v812_v63, 0.0  ;;  %v1261_v15 = vadd.f32 %v1229_v3, %v1128_v37  ;;  %v1532_v35 = vmul.f32 %v4910_v45, %v5365_v1  ;;  %v5456_v26 = vpop.f32.mrb[47].mxu0  ;;  %v5468_v43 = vld [vmem:[%s7319_s4] ss:$0 sm:$0xff] }
 0x146   : > { %v2005_v10 = vadd.f32 %v5015_v18, %v1966_v12  ;;  %v1563_v44 = vadd.f32 %v1531_v29, %v1462_v41  ;;  %v1633_v19 = vmul.f32 %v4915_v46, %v5372_v56  ;;  %v1735_v51 = vmul.f32 %v4950_v9, %v5435_v62  ;;  %v5475_v63 = vld [vmem:[%s7317_s2] ss:$0 sm:$0xff] }
 0x147   : > { %v1866_v39 = vadd.f32 %v1834_v60, %v1765_v13  ;;  %1074 = vst.msk [vmem:[#allocation2 + $0x181] sm:$0xff] %vm287_vm1, %v1010_v14  ;;  %v1362_v55 = vadd.f32 %v1330_v38, %v1261_v15  ;;  %v1836_v59 = vmul.f32 %v4940_v5, %v5443_v11  ;;  %v5463_v61 = vmul.f32 %v4945_v6, %v5445_v30  ;;  %v5489_v38 = vld [vmem:[#allocation2 + $0xf0] sm:$0xff] }
 0x148   : > { %v2037_v29 = vmax.f32 %v2005_v10, 0.0  ;;  %v1664_v49 = vadd.f32 %v1632_v25, %v1563_v44  ;;  %v827_v60 = vadd.f32 %v5468_v43, %v5259_v4  ;;  %v1129_v37 = vmul.f32 %v5475_v63, %v5328_v50  ;;  %v5483_v25 = vld [vmem:[%s7317_s2 + $0x1] ss:$0 sm:$0xff]  ;;  %v5491_v13 = vld [vmem:[#allocation2 + $0xf1] sm:$0xff]  ;;  %v5495_v50 = vpop.f32.mrb[48].mxu0 }
 0x149   : > { %v1967_v3 = vadd.f32 %v5388_v2, %v1866_v39  ;;  %v1463_v12 = vadd.f32 %v1431_v52, %v1362_v55  ;;  %v1230_v41 = vmul.f32 %v5483_v25, %v5330_v28  ;;  %v1331_v4 = vmul.f32 %v4893_v27, %v5332_v34  ;;  %v5493_v14 = vld [vmem:[#allocation2 + $0xf2] sm:$0xff]  ;;  %v5502_v10 = vpop.f32.mrb[49].mxu0 }
 0x14a   : > { %4391 = vmatprep.mubr.msk.f32.mxu1 %vm287_vm1, %v2037_v29  ;;  %v1766_v2 = vadd.f32 %v1734_v16, %v1664_v49  ;;  %v1013_v52 = vmax.f32 %v827_v60, 0.0  ;;  %v1432_v15 = vmul.f32 %v4920_v48, %v5398_v53  ;;  %v1533_v28 = vmul.f32 %v4910_v45, %v5400_v24 }
 0x14b   : > { %v2006_v27 = vadd.f32 %v5015_v18, %v1967_v3  ;;  %v1564_v34 = vadd.f32 %v1532_v35, %v1463_v12  ;;  %v1262_v44 = vadd.f32 %v1230_v41, %v1129_v37  ;;  %v1634_v39 = vmul.f32 %v4915_v46, %v5409_v8  ;;  %v5530_v12 = vld [vmem:[%s7317_s2 + $0x2] ss:$0 sm:$0xff]  ;;  %v5534_v41 = vld [vmem:[#allocation2 + $0xf8] sm:$0xff] }
 0x14c   : > { %v1867_v55 = vadd.f32 %v1835_v31, %v1766_v2  ;;  %2456 = vst.msk [vmem:[#allocation2 + $0x21] sm:$0xff] %vm287_vm1, %v1013_v52  ;;  %v1736_v16 = vmul.f32 %v4950_v9, %v5489_v38  ;;  %v5512_v48 = vmul.f32 %v4940_v5, %v5491_v13  ;;  %v5516_v45 = vmul.f32 %v4945_v6, %v5493_v14  ;;  %v5520_v31 = vpop.f32.mrb[50].mxu0 }
 0x14d   : > { %v2038_v29 = vmax.f32 %v2006_v27, 0.0  ;;  %v1665_v35 = vadd.f32 %v1633_v19, %v1564_v34  ;;  %v1363_v49 = vadd.f32 %v1331_v4, %v1262_v44  ;;  %v822_v46 = vadd.f32 %v5468_v43, %v5266_v21  ;;  %7323 = vst [vmem:[#allocation3_spill] sm:$0xff] %v5520_v31  ;;  %v5536_v21 = vld [vmem:[#allocation2 + $0xf9] sm:$0xff]  ;;  %v5538_v4 = vpop.f32.mrb[51].mxu0  ;;  %v5554_v44 = vld [vmem:[%s7317_s2 + $0x4] ss:$0 sm:$0xff] }
 0x14e   : > { %v1968_v60 = vadd.f32 %v5425_v54, %v1867_v55  ;;  %v1130_v37 = vmul.f32 %v5475_v63, %v5363_v23  ;;  %v1231_v3 = vmul.f32 %v5483_v25, %v5365_v1  ;;  %v1332_v19 = vmul.f32 %v5530_v12, %v5372_v56  ;;  %7324 = vst [vmem:[#allocation4_spill] sm:$0xff] %v5538_v4  ;;  %v5544_v1 = vld [vmem:[%s7317_s2 + $0x3] ss:$0 sm:$0xff]  ;;  %v5548_v56 = vld [vmem:[#allocation2 + $0xfa] sm:$0xff] }
 0x14f   : > { %4392 = vmatmul.mubr.msk.f32.gmra.mrb[10].mxu1 %vm287_vm1, %v2038_v29  ;;  %v1767_v23 = vadd.f32 %v1735_v51, %v1665_v35  ;;  %v1464_v54 = vadd.f32 %v1432_v15, %v1363_v49  ;;  %v1012_v2 = vmax.f32 %v822_v46, 0.0  ;;  %v1433_v52 = vmul.f32 %v5544_v1, %v5435_v62  ;;  %v5561_v15 = vld [vmem:[%s7317_s2 + $0x5] ss:$0 sm:$0xff] }
 0x150   : > { %v2007_v27 = vadd.f32 %v5015_v18, %v1968_v60  ;;  %v1263_v34 = vadd.f32 %v1231_v3, %v1130_v37  ;;  %v1534_v51 = vmul.f32 %v5554_v44, %v5443_v11  ;;  %v1635_v55 = vmul.f32 %v5561_v15, %v5445_v30  ;;  %v5570_v60 = vpop.f32.mrb[52].mxu0 }
 0x151   : > { %v1868_v29 = vadd.f32 %v1836_v59, %v1767_v23  ;;  %v1565_v35 = vadd.f32 %v1533_v28, %v1464_v54  ;;  %2455 = vst.msk [vmem:[#allocation2 + $0x19] sm:$0xff] %vm287_vm1, %v1012_v2  ;;  %v1737_v49 = vmul.f32 %v4950_v9, %v5534_v41  ;;  %v1838_v46 = vmul.f32 %v4940_v5, %v5536_v21  ;;  %v5578_v28 = vpop.f32.mrb[53].mxu0  ;;  %v5585_v2 = vld [vmem:[#allocation2 + $0x108] sm:$0xff] }
 0x152   : > { %7325 = vst [vmem:[#allocation5_spill] sm:$0xff] %v5570_v60  ;;  %v2039_v37 = vmax.f32 %v2007_v27, 0.0  ;;  %v1364_v3 = vadd.f32 %v1332_v19, %v1263_v34  ;;  %v5574_v4 = vmul.f32 %v4945_v6, %v5548_v56  ;;  %v837_v59 = vadd.f32 %v5468_v43, %v5283_v22  ;;  %7326 = vst [vmem:[#allocation6_spill] sm:$0xff] %v5578_v28  ;;  %v5587_v19 = vld [vmem:[#allocation2 + $0x109] sm:$0xff] }
 0x153   : > { %v1969_v23 = vadd.f32 %v5463_v61, %v1868_v29  ;;  %v1666_v54 = vadd.f32 %v1634_v39, %v1565_v35  ;;  %v1131_v9 = vmul.f32 %v5475_v63, %v5398_v53  ;;  %v1232_v5 = vmul.f32 %v5483_v25, %v5400_v24  ;;  %v5594_v39 = vld [vmem:[#allocation2 + $0x10a] sm:$0xff] }
 0x154   : > { %4394 = vmatprep.mubr.msk.f32.mxu1 %vm287_vm1, %v2039_v37  ;;  %v1465_v6 = vadd.f32 %v1433_v52, %v1364_v3  ;;  %v1015_v27 = vmax.f32 %v837_v59, 0.0  ;;  %v1333_v22 = vmul.f32 %v5530_v12, %v5409_v8  ;;  %v1434_v61 = vmul.f32 %v5544_v1, %v5489_v38  ;;  %v5599_v35 = vpop.f32.mrb[54].mxu0  ;;  %v5607_v52 = vld [vmem:[%s7317_s2 + $0x6] ss:$0 sm:$0xff]  ;;  %v5614_v3 = vld [vmem:[%s7317_s2 + $0x7] ss:$0 sm:$0xff] }
 0x155   : > { %v2008_v53 = vadd.f32 %v5015_v18, %v1969_v23  ;;  %v1768_v34 = vadd.f32 %v1736_v16, %v1666_v54  ;;  %v1264_v24 = vadd.f32 %v1232_v5, %v1131_v9  ;;  %v1535_v29 = vmul.f32 %v5554_v44, %v5491_v13  ;;  %7327 = vst [vmem:[#allocation7_spill] sm:$0xff] %v5599_v35  ;;  %v5618_v59 = vpop.f32.mrb[55].mxu0  ;;  %v5624_v5 = vld [vmem:[%s7317_s2 + $0x8] ss:$0 sm:$0xff] }
 0x156   : > { %v1566_v37 = vadd.f32 %v1534_v51, %v1465_v6  ;;  %2458 = vst.msk [vmem:[#allocation2 + $0x39] sm:$0xff] %vm287_vm1, %v1015_v27  ;;  %v1636_v8 = vmul.f32 %v5561_v15, %v5493_v14  ;;  %v1738_v16 = vmul.f32 %v5607_v52, %v5585_v2  ;;  %v1839_v51 = vmul.f32 %v5614_v3, %v5587_v19 }
 0x157   : > { %7328 = vst [vmem:[#allocation8_spill] sm:$0xff] %v5618_v59  ;;  %v2040_v23 = vmax.f32 %v2008_v53, 0.0  ;;  %v1869_v54 = vadd.f32 %v5512_v48, %v1768_v34  ;;  %v1365_v9 = vadd.f32 %v1333_v22, %v1264_v24  ;;  %v1940_v6 = vmul.f32 %v5624_v5, %v5594_v39  ;;  %v5634_v48 = vld [vmem:[#allocation2 + $0x110] sm:$0xff] }
 0x158   : > { %v1667_v27 = vadd.f32 %v1635_v55, %v1566_v37  ;;  %v832_v35 = vadd.f32 %v5468_v43, %v5291_v20  ;;  %v1132_v28 = vmul.f32 %v5475_v63, %v5435_v62  ;;  %v1233_v53 = vmul.f32 %v5483_v25, %v5443_v11  ;;  %v5642_v20 = vld [vmem:[#allocation2 + $0x111] sm:$0xff]  ;;  %v5646_v62 = vpop.f32.mrb[56].mxu0 }
 0x159   : > { %4395 = vmatmul.mubr.msk.f32.gmra.mrb[12].mxu1 %vm287_vm1, %v2040_v23  ;;  %v1970_v22 = vadd.f32 %v5516_v45, %v1869_v54  ;;  %v1466_v34 = vadd.f32 %v1434_v61, %v1365_v9  ;;  %v1334_v24 = vmul.f32 %v5530_v12, %v5445_v30  ;;  %v1435_v55 = vmul.f32 %v5544_v1, %v5534_v41  ;;  %v5644_v37 = vld [vmem:[#allocation2 + $0x112] sm:$0xff] }
 0x15a   : > { %v1769_v11 = vadd.f32 %v1737_v49, %v1667_v27  ;;  %v1014_v59 = vmax.f32 %v832_v35, 0.0  ;;  %v1265_v60 = vadd.f32 %v1233_v53, %v1132_v28  ;;  %v1536_v23 = vmul.f32 %v5554_v44, %v5536_v21  ;;  %v5664_v53 = vpop.f32.mrb[57].mxu0 }
 0x15b   : > { %v2009_v45 = vadd.f32 %v5015_v18, %v1970_v22  ;;  %v1567_v61 = vadd.f32 %v1535_v29, %v1466_v34  ;;  %v1637_v30 = vmul.f32 %v5561_v15, %v5548_v56  ;;  %v1739_v54 = vmul.f32 %v5607_v52, %v5634_v48  ;;  %v5671_v34 = vld [vmem:[#allocation2 + $0x120] sm:$0xff] }
 0x15c   : > { %v1870_v9 = vadd.f32 %v1838_v46, %v1769_v11  ;;  %2457 = vst.msk [vmem:[#allocation2 + $0x31] sm:$0xff] %vm287_vm1, %v1014_v59  ;;  %v1366_v31 = vadd.f32 %v1334_v24, %v1265_v60  ;;  %v1840_v49 = vmul.f32 %v5614_v3, %v5642_v20  ;;  %v1941_v28 = vmul.f32 %v5624_v5, %v5644_v37  ;;  %v5675_v24 = vld [vmem:[#allocation2 + $0x122] sm:$0xff] }
 0x15d   : > { %v2041_v35 = vmax.f32 %v2009_v45, 0.0  ;;  %v1668_v27 = vadd.f32 %v1636_v8, %v1567_v61  ;;  %v847_v18 = vadd.f32 %v5468_v43, %v5311_v17  ;;  %v1133_v29 = vmul.f32 %v5475_v63, %v5489_v38  ;;  %v5673_v8 = vld [vmem:[#allocation2 + $0x121] sm:$0xff] }
 0x15e   : > { %v1971_v46 = vadd.f32 %v5574_v4, %v1870_v9  ;;  %v1467_v59 = vadd.f32 %v1435_v55, %v1366_v31  ;;  %v1234_v60 = vmul.f32 %v5483_v25, %v5491_v13  ;;  %v1335_v22 = vmul.f32 %v5530_v12, %v5493_v14  ;;  %v5685_v13 = vld [vmem:[%s7320_s5] ss:$0 sm:$0xff] }
 0x15f   : > { %4397 = vmatprep.mubr.msk.f32.mxu1 %vm287_vm1, %v2041_v35  ;;  %v1770_v17 = vadd.f32 %v1738_v16, %v1668_v27  ;;  %v1017_v38 = vmax.f32 %v847_v18, 0.0  ;;  %v1436_v4 = vmul.f32 %v5544_v1, %v5585_v2  ;;  %v1537_v31 = vmul.f32 %v5554_v44, %v5587_v19 }
 0x160   : > { %v2010_v14 = vadd.f32 %v5685_v13, %v1971_v46  ;;  %v1568_v55 = vadd.f32 %v1536_v23, %v1467_v59  ;;  %v1266_v11 = vadd.f32 %v1234_v60, %v1133_v29  ;;  %v1638_v45 = vmul.f32 %v5561_v15, %v5594_v39  ;;  %v5701_v46 = vpop.f32.mrb[58].mxu0 }
 0x161   : > { %v1871_v16 = vadd.f32 %v1839_v51, %v1770_v17  ;;  %2460 = vst.msk [vmem:[#allocation2 + $0x51] sm:$0xff] %vm287_vm1, %v1017_v38  ;;  %v1740_v61 = vmul.f32 %v5607_v52, %v5671_v34  ;;  %v1841_v9 = vmul.f32 %v5614_v3, %v5673_v8  ;;  %v5697_v35 = vmul.f32 %v5624_v5, %v5675_v24  ;;  %v5709_v38 = vld [vmem:[#allocation2 + $0x128] sm:$0xff] }
 0x162   : > { %v2042_v27 = vmax.f32 %v2010_v14, 0.0  ;;  %v1669_v18 = vadd.f32 %v1637_v30, %v1568_v55  ;;  %v1367_v23 = vadd.f32 %v1335_v22, %v1266_v11  ;;  %v842_v29 = vadd.f32 %v5468_v43, %v5317_v40  ;;  %7329 = vst [vmem:[#allocation9_spill] sm:$0xff] %v5701_v46  ;;  %v5711_v14 = vld [vmem:[#allocation2 + $0x129] sm:$0xff] }
 0x163   : > { %v1972_v51 = vadd.f32 %v1940_v6, %v1871_v16  ;;  %v1134_v59 = vmul.f32 %v5475_v63, %v5534_v41  ;;  %v1235_v60 = vmul.f32 %v5483_v25, %v5536_v21  ;;  %v1336_v17 = vmul.f32 %v5530_v12, %v5548_v56  ;;  %v5716_v55 = vld [vmem:[#allocation2 + $0x12a] sm:$0xff] }
 0x164   : > { %4398 = vmatmul.mubr.msk.f32.gmra.mrb[14].mxu1 %vm287_vm1, %v2042_v27  ;;  %v1771_v30 = vadd.f32 %v1739_v54, %v1669_v18  ;;  %v1468_v40 = vadd.f32 %v1436_v4, %v1367_v23  ;;  %v1016_v22 = vmax.f32 %v842_v29, 0.0  ;;  %v1437_v6 = vmul.f32 %v5544_v1, %v5634_v48 }
 0x165   : > { %v2011_v41 = vadd.f32 %v5685_v13, %v1972_v51  ;;  %v1267_v21 = vadd.f32 %v1235_v60, %v1134_v59  ;;  %v1538_v56 = vmul.f32 %v5554_v44, %v5642_v20  ;;  %v1639_v11 = vmul.f32 %v5561_v15, %v5644_v37  ;;  %v5734_v51 = vpop.f32.mrb[59].mxu0 }
 0x166   : > { %v1872_v16 = vadd.f32 %v1840_v49, %v1771_v30  ;;  %v1569_v46 = vadd.f32 %v1537_v31, %v1468_v40  ;;  %2459 = vst.msk [vmem:[#allocation2 + $0x49] sm:$0xff] %vm287_vm1, %v1016_v22  ;;  %v1741_v54 = vmul.f32 %v5607_v52, %v5709_v38  ;;  %v1842_v4 = vmul.f32 %v5614_v3, %v5711_v14  ;;  %v5740_v30 = vld [vmem:[#allocation2 + $0x138] sm:$0xff] }
 0x167   : > { %v2043_v27 = vmax.f32 %v2011_v41, 0.0  ;;  %v1368_v18 = vadd.f32 %v1336_v17, %v1267_v21  ;;  %v5730_v23 = vmul.f32 %v5624_v5, %v5716_v55  ;;  %v857_v29 = vadd.f32 %v5468_v43, %v5339_v57  ;;  %7330 = vst [vmem:[#allocation10_spill] sm:$0xff] %v5734_v51  ;;  %v5742_v17 = vld [vmem:[#allocation2 + $0x139] sm:$0xff] }
 0x168   : > { %v1973_v49 = vadd.f32 %v1941_v28, %v1872_v16  ;;  %v1670_v31 = vadd.f32 %v1638_v45, %v1569_v46  ;;  %v1135_v59 = vmul.f32 %v5475_v63, %v5585_v2  ;;  %v1236_v60 = vmul.f32 %v5483_v25, %v5587_v19  ;;  %v5749_v45 = vld [vmem:[#allocation2 + $0x13a] sm:$0xff] }
 0x169   : > { %4400 = vmatprep.mubr.msk.f32.mxu1 %vm287_vm1, %v2043_v27  ;;  %v1469_v40 = vadd.f32 %v1437_v6, %v1368_v18  ;;  %v1019_v22 = vmax.f32 %v857_v29, 0.0  ;;  %v1337_v57 = vmul.f32 %v5530_v12, %v5594_v39  ;;  %v1438_v28 = vmul.f32 %v5544_v1, %v5671_v34  ;;  %v3471_v6 = vld [vmem:[%s7318_s3 + $0x20] sm:$0xff]  ;;  %v3472_v39 = vld [vmem:[%s7318_s3 + $0x28] sm:$0xff] }
 0x16a   : > { %v2012_v2 = vadd.f32 %v5685_v13, %v1973_v49  ;;  %v1772_v46 = vadd.f32 %v1740_v61, %v1670_v31  ;;  %v1268_v19 = vadd.f32 %v1236_v60, %v1135_v59  ;;  %v1539_v41 = vmul.f32 %v5554_v44, %v5673_v8 }
 0x16b   : > { %v1570_v21 = vadd.f32 %v1538_v56, %v1469_v40  ;;  %2462 = vst.msk [vmem:[#allocation2 + $0x69] sm:$0xff] %vm287_vm1, %v1019_v22  ;;  %v1640_v16 = vmul.f32 %v5561_v15, %v5675_v24  ;;  %v1742_v61 = vmul.f32 %v5607_v52, %v5740_v30  ;;  %v1843_v27 = vmul.f32 %v5614_v3, %v5742_v17  ;;  %v5773_v22 = vpop.f32.mrb[60].mxu0 }
 0x16c   : > { %v2044_v18 = vmax.f32 %v2012_v2, 0.0  ;;  %v1873_v29 = vadd.f32 %v1841_v9, %v1772_v46  ;;  %v1369_v49 = vadd.f32 %v1337_v57, %v1268_v19  ;;  %v1944_v31 = vmul.f32 %v5624_v5, %v5749_v45  ;;  %v5781_v57 = vld [vmem:[#allocation2 + $0x140] sm:$0xff] }
 0x16d   : > { %v1671_v59 = vadd.f32 %v1639_v11, %v1570_v21  ;;  %v4501_v60 = vpack.c.bf16 %v3472_v39, %v3471_v6  ;;  %v852_v56 = vadd.f32 %v5468_v43, %v5344_v7  ;;  %v1136_v40 = vmul.f32 %v5475_v63, %v5634_v48  ;;  %v5783_v46 = vld [vmem:[#allocation2 + $0x141] sm:$0xff] }
 0x16e   : > { %4401 = vmatmul.mubr.msk.f32.gmra.mrb[16].mxu1 %vm287_vm1, %v2044_v18  ;;  %v1974_v51 = vadd.f32 %v5697_v35, %v1873_v29  ;;  %v1470_v2 = vadd.f32 %v1438_v28, %v1369_v49  ;;  %v1237_v9 = vmul.f32 %v5483_v25, %v5642_v20  ;;  %v1338_v11 = vmul.f32 %v5530_v12, %v5644_v37  ;;  %v5785_v7 = vld [vmem:[#allocation2 + $0x142] sm:$0xff] }
 0x16f   : > { %v1773_v48 = vadd.f32 %v1741_v54, %v1671_v59  ;;  %4502 = vmatprep.subr.bf16.mxu1 %v4501_v60  ;;  %v1018_v19 = vmax.f32 %v852_v56, 0.0  ;;  %v1439_v6 = vmul.f32 %v5544_v1, %v5709_v38  ;;  %v1540_v35 = vmul.f32 %v5554_v44, %v5711_v14 }
 0x170   : > { %v2013_v20 = vadd.f32 %v5685_v13, %v1974_v51  ;;  %v1571_v28 = vadd.f32 %v1539_v41, %v1470_v2  ;;  %v1269_v39 = vadd.f32 %v1237_v9, %v1136_v40  ;;  %v1641_v37 = vmul.f32 %v5561_v15, %v5716_v55  ;;  %4504 = vmatpush3.bf16.msra.mxu1 %v4501_v60  ;;  %v5805_v60 = vpop.f32.mrb[61].mxu0  ;;  %v5814_v9 = vld [vmem:[#allocation2 + $0x150] sm:$0xff] }
 0x171   : > { %v1874_v21 = vadd.f32 %v1842_v4, %v1773_v48  ;;  %2461 = vst.msk [vmem:[#allocation2 + $0x61] sm:$0xff] %vm287_vm1, %v1018_v19  ;;  %v1743_v54 = vmul.f32 %v5607_v52, %v5781_v57  ;;  %v1844_v18 = vmul.f32 %v5614_v3, %v5783_v46  ;;  %v5801_v29 = vmul.f32 %v5624_v5, %v5785_v7  ;;  %v5821_v19 = vld [vmem:[#allocation2 + $0x152] sm:$0xff] }
 0x172   : > { %v2045_v51 = vmax.f32 %v2013_v20, 0.0  ;;  %v1672_v41 = vadd.f32 %v1640_v16, %v1571_v28  ;;  %v1370_v49 = vadd.f32 %v1338_v11, %v1269_v39  ;;  %v867_v59 = vadd.f32 %v5468_v43, %v5367_v47  ;;  %v5816_v16 = vld [vmem:[#allocation2 + $0x151] sm:$0xff] }
 0x173   : > { %v1975_v4 = vadd.f32 %v5730_v23, %v1874_v21  ;;  %v1137_v56 = vmul.f32 %v5475_v63, %v5671_v34  ;;  %v1238_v40 = vmul.f32 %v5483_v25, %v5673_v8  ;;  %v1339_v2 = vmul.f32 %v5530_v12, %v5675_v24 }
 0x174   : > { %4403 = vmatprep.mubr.msk.f32.mxu1 %vm287_vm1, %v2045_v51  ;;  %v1774_v47 = vadd.f32 %v1742_v61, %v1672_v41  ;;  %v1471_v11 = vadd.f32 %v1439_v6, %v1370_v49  ;;  %v1021_v48 = vmax.f32 %v867_v59, 0.0  ;;  %v1440_v23 = vmul.f32 %v5544_v1, %v5740_v30  ;;  %v5837_v59 = vpop.f32.mrb[62].mxu0 }
 0x175   : > { %v2014_v34 = vadd.f32 %v5685_v13, %v1975_v4  ;;  %v1270_v8 = vadd.f32 %v1238_v40, %v1137_v56  ;;  %v1541_v24 = vmul.f32 %v5554_v44, %v5742_v17  ;;  %v1642_v20 = vmul.f32 %v5561_v15, %v5749_v45  ;;  %v5843_v40 = vld [vmem:[#allocation2 + $0x158] sm:$0xff] }
 0x176   : > { %v1875_v28 = vadd.f32 %v1843_v27, %v1774_v47  ;;  %v1572_v39 = vadd.f32 %v1540_v35, %v1471_v11  ;;  %2464 = vst.msk [vmem:[#allocation2 + $0x81] sm:$0xff] %vm287_vm1, %v1021_v48  ;;  %v1744_v61 = vmul.f32 %v5607_v52, %v5814_v9  ;;  %v1845_v6 = vmul.f32 %v5614_v3, %v5816_v16  ;;  %v5845_v47 = vld [vmem:[#allocation2 + $0x159] sm:$0xff] }
 0x177   : > { %v2046_v21 = vmax.f32 %v2014_v34, 0.0  ;;  %v1371_v51 = vadd.f32 %v1339_v2, %v1270_v8  ;;  %v1946_v41 = vmul.f32 %v5624_v5, %v5821_v19  ;;  %v862_v49 = vadd.f32 %v5468_v43, %v5374_v32 }
 0x178   : > { %v1976_v27 = vadd.f32 %v1944_v31, %v1875_v28  ;;  %v1673_v35 = vadd.f32 %v1641_v37, %v1572_v39  ;;  %v1138_v4 = vmul.f32 %v5475_v63, %v5709_v38  ;;  %v1239_v56 = vmul.f32 %v5483_v25, %v5711_v14  ;;  %v5852_v37 = vld [vmem:[#allocation2 + $0x15a] sm:$0xff] }
 0x179   : > { %4404 = vmatmul.mubr.msk.f32.gmra.mrb[18].mxu1 %vm287_vm1, %v2046_v21  ;;  %v1472_v2 = vadd.f32 %v1440_v23, %v1371_v51  ;;  %v1020_v11 = vmax.f32 %v862_v49, 0.0  ;;  %v1340_v32 = vmul.f32 %v5530_v12, %v5716_v55  ;;  %v1441_v31 = vmul.f32 %v5544_v1, %v5781_v57  ;;  %v5866_v49 = vpop.f32.mrb[63].mxu0 }
 0x17a   : > { %v2015_v38 = vadd.f32 %v5685_v13, %v1976_v27  ;;  %v1775_v48 = vadd.f32 %v1743_v54, %v1673_v35  ;;  %v1271_v14 = vadd.f32 %v1239_v56, %v1138_v4  ;;  %v1542_v34 = vmul.f32 %v5554_v44, %v5783_v46  ;;  %v5874_v56 = vld [vmem:[#allocation2 + $0x168] sm:$0xff] }
 0x17b   : > { %v1573_v8 = vadd.f32 %v1541_v24, %v1472_v2  ;;  %2463 = vst.msk [vmem:[#allocation2 + $0x79] sm:$0xff] %vm287_vm1, %v1020_v11  ;;  %v1643_v23 = vmul.f32 %v5561_v15, %v5785_v7  ;;  %v1745_v55 = vmul.f32 %v5607_v52, %v5843_v40  ;;  %v1846_v28 = vmul.f32 %v5614_v3, %v5845_v47 }
 0x17c   : > { %v2047_v39 = vmax.f32 %v2015_v38, 0.0  ;;  %v1876_v21 = vadd.f32 %v1844_v18, %v1775_v48  ;;  %v1372_v51 = vadd.f32 %v1340_v32, %v1271_v14  ;;  %v1947_v54 = vmul.f32 %v5624_v5, %v5852_v37  ;;  %v5884_v32 = vld [vmem:[#allocation2 + $0x16a] sm:$0xff] }
 0x17d   : > { %v1674_v24 = vadd.f32 %v1642_v20, %v1573_v8  ;;  %v877_v27 = vadd.f32 %v5468_v43, %v5392_v42  ;;  %v1139_v35 = vmul.f32 %v5475_v63, %v5740_v30  ;;  %v1240_v4 = vmul.f32 %v5483_v25, %v5742_v17  ;;  %v5882_v42 = vld [vmem:[#allocation2 + $0x169] sm:$0xff] }
 0x17e   : > { %4406 = vmatprep.mubr.msk.f32.mxu1 %vm287_vm1, %v2047_v39  ;;  %v1977_v18 = vadd.f32 %v5801_v29, %v1876_v21  ;;  %v1473_v2 = vadd.f32 %v1441_v31, %v1372_v51  ;;  %v1341_v11 = vmul.f32 %v5530_v12, %v5749_v45  ;;  %v1442_v20 = vmul.f32 %v5544_v1, %v5814_v9 }
 0x17f   : > { %v1776_v30 = vadd.f32 %v1744_v61, %v1674_v24  ;;  %v1023_v38 = vmax.f32 %v877_v27, 0.0  ;;  %v1272_v17 = vadd.f32 %v1240_v4, %v1139_v35  ;;  %v1543_v48 = vmul.f32 %v5554_v44, %v5816_v16 }
 0x180   : > { %v2016_v14 = vadd.f32 %v5685_v13, %v1977_v18  ;;  %v1574_v29 = vadd.f32 %v1542_v34, %v1473_v2  ;;  %v1644_v31 = vmul.f32 %v5561_v15, %v5821_v19  ;;  %v1746_v45 = vmul.f32 %v5607_v52, %v5874_v56  ;;  %v5906_v2 = vld [vmem:[#allocation2 + $0x170] sm:$0xff] }
 0x181   : > { %v1877_v8 = vadd.f32 %v1845_v6, %v1776_v30  ;;  %2466 = vst.msk [vmem:[#allocation2 + $0x99] sm:$0xff] %vm287_vm1, %v1023_v38  ;;  %v1373_v39 = vadd.f32 %v1341_v11, %v1272_v17  ;;  %v1847_v61 = vmul.f32 %v5614_v3, %v5882_v42  ;;  %v1948_v21 = vmul.f32 %v5624_v5, %v5884_v32  ;;  %v5908_v11 = vld [vmem:[#allocation2 + $0x171] sm:$0xff] }
 0x182   : > { %v2048_v51 = vmax.f32 %v2016_v14, 0.0  ;;  %v1675_v24 = vadd.f32 %v1643_v23, %v1574_v29  ;;  %v872_v34 = vadd.f32 %v5468_v43, %v5402_v33  ;;  %v1140_v27 = vmul.f32 %v5475_v63, %v5781_v57  ;;  %v5910_v30 = vld [vmem:[#allocation2 + $0x172] sm:$0xff] }
 0x183   : > { %v1978_v35 = vadd.f32 %v1946_v41, %v1877_v8  ;;  %v1474_v4 = vadd.f32 %v1442_v20, %v1373_v39  ;;  %v1241_v6 = vmul.f32 %v5483_v25, %v5783_v46  ;;  %v1342_v18 = vmul.f32 %v5530_v12, %v5785_v7 }
 0x184   : > { %4407 = vmatmul.mubr.msk.f32.gmra.mrb[20].mxu1 %vm287_vm1, %v2048_v51  ;;  %v1777_v33 = vadd.f32 %v1745_v55, %v1675_v24  ;;  %v1022_v23 = vmax.f32 %v872_v34, 0.0  ;;  %v1443_v57 = vmul.f32 %v5544_v1, %v5843_v40  ;;  %v1544_v41 = vmul.f32 %v5554_v44, %v5845_v47 }
 0x185   : > { %v2017_v46 = vadd.f32 %v5685_v13, %v1978_v35  ;;  %v1575_v20 = vadd.f32 %v1543_v48, %v1474_v4  ;;  %v1273_v7 = vadd.f32 %v1241_v6, %v1140_v27  ;;  %v1645_v38 = vmul.f32 %v5561_v15, %v5852_v37  ;;  %v1712_v35 = vld [vmem:[#allocation2 + $0x180] sm:$0xff] }
 0x186   : > { %v1878_v17 = vadd.f32 %v1846_v28, %v1777_v33  ;;  %2465 = vst.msk [vmem:[#allocation2 + $0x91] sm:$0xff] %vm287_vm1, %v1022_v23  ;;  %v1747_v55 = vmul.f32 %v5607_v52, %v5906_v2  ;;  %v1848_v14 = vmul.f32 %v5614_v3, %v5908_v11  ;;  %v1949_v29 = vmul.f32 %v5624_v5, %v5910_v30  ;;  %v1813_v4 = vld [vmem:[#allocation2 + $0x181] sm:$0xff] }
 0x187   : > { %v2049_v8 = vmax.f32 %v2017_v46, 0.0  ;;  %v1676_v39 = vadd.f32 %v1644_v31, %v1575_v20  ;;  %v1374_v51 = vadd.f32 %v1342_v18, %v1273_v7  ;;  %v887_v48 = vadd.f32 %v5468_v43, %v5421_v0 }
 0x188   : > { %v1979_v24 = vadd.f32 %v1947_v54, %v1878_v17  ;;  %v1141_v28 = vmul.f32 %v5475_v63, %v5814_v9  ;;  %v1242_v34 = vmul.f32 %v5483_v25, %v5816_v16  ;;  %v1343_v27 = vmul.f32 %v5530_v12, %v5821_v19  ;;  %v1914_v54 = vld [vmem:[#allocation2 + $0x182] sm:$0xff] }
 0x189   : > { %4409 = vmatprep.mubr.msk.f32.mxu1 %vm287_vm1, %v2049_v8  ;;  %v1778_v6 = vadd.f32 %v1746_v45, %v1676_v39  ;;  %v1475_v31 = vadd.f32 %v1443_v57, %v1374_v51  ;;  %v1025_v18 = vmax.f32 %v887_v48, 0.0  ;;  %v1444_v0 = vmul.f32 %v5544_v1, %v5874_v56 }
 0x18a   : > { %v2018_v33 = vadd.f32 %v5685_v13, %v1979_v24  ;;  %v1274_v9 = vadd.f32 %v1242_v34, %v1141_v28  ;;  %v1545_v16 = vmul.f32 %v5554_v44, %v5882_v42  ;;  %v1646_v19 = vmul.f32 %v5561_v15, %v5884_v32  ;;  %v1814_v24 = vld [vmem:[#allocation2 + $0x189] sm:$0xff] }
 0x18b   : > { %v1879_v23 = vadd.f32 %v1847_v61, %v1778_v6  ;;  %v1576_v46 = vadd.f32 %v1544_v41, %v1475_v31  ;;  %2468 = vst.msk [vmem:[#allocation2 + $0xb1] sm:$0xff] %vm287_vm1, %v1025_v18  ;;  %v1748_v45 = vmul.f32 %v5607_v52, %v1712_v35  ;;  %v1849_v57 = vmul.f32 %v5614_v3, %v1813_v4  ;;  %v1713_v41 = vld [vmem:[#allocation2 + $0x188] sm:$0xff] }
 0x18c   : > { %v2050_v20 = vmax.f32 %v2018_v33, 0.0  ;;  %v1375_v7 = vadd.f32 %v1343_v27, %v1274_v9  ;;  %v1950_v17 = vmul.f32 %v5624_v5, %v1914_v54  ;;  %v882_v8 = vadd.f32 %v5468_v43, %v5427_v36 }
 0x18d   : > { %v1980_v39 = vadd.f32 %v1948_v21, %v1879_v23  ;;  %v1677_v51 = vadd.f32 %v1645_v38, %v1576_v46  ;;  %v1142_v48 = vmul.f32 %v5475_v63, %v5843_v40  ;;  %v1243_v61 = vmul.f32 %v5483_v25, %v5845_v47  ;;  %v1915_v21 = vld [vmem:[#allocation2 + $0x18a] sm:$0xff] }
 0x18e   : > { %4410 = vmatmul.mubr.msk.f32.gmra.mrb[22].mxu1 %vm287_vm1, %v2050_v20  ;;  %v1476_v28 = vadd.f32 %v1444_v0, %v1375_v7  ;;  %v1024_v34 = vmax.f32 %v882_v8, 0.0  ;;  %v1344_v27 = vmul.f32 %v5530_v12, %v5852_v37  ;;  %v1445_v36 = vmul.f32 %v5544_v1, %v5906_v2  ;;  %v1714_v8 = vld [vmem:[#allocation2 + $0x198] sm:$0xff] }
 0x18f   : > { %v2019_v38 = vadd.f32 %v5685_v13, %v1980_v39  ;;  %v1779_v6 = vadd.f32 %v1747_v55, %v1677_v51  ;;  %v1275_v40 = vadd.f32 %v1243_v61, %v1142_v48  ;;  %v1546_v47 = vmul.f32 %v5554_v44, %v5908_v11  ;;  %v1916_v61 = vld [vmem:[#allocation2 + $0x19a] sm:$0xff] }
 0x190   : > { %v1577_v31 = vadd.f32 %v1545_v16, %v1476_v28  ;;  %2467 = vst.msk [vmem:[#allocation2 + $0xa9] sm:$0xff] %vm287_vm1, %v1024_v34  ;;  %v1647_v18 = vmul.f32 %v5561_v15, %v5910_v30  ;;  %v1749_v0 = vmul.f32 %v5607_v52, %v1713_v41  ;;  %v1850_v37 = vmul.f32 %v5614_v3, %v1814_v24 }
 0x191   : > { %v2051_v33 = vmax.f32 %v2019_v38, 0.0  ;;  %v1880_v9 = vadd.f32 %v1848_v14, %v1779_v6  ;;  %v1376_v23 = vadd.f32 %v1344_v27, %v1275_v40  ;;  %v5967_v46 = vmul.f32 %v5624_v5, %v1915_v21 }
 0x192   : > { %v1678_v55 = vadd.f32 %v1646_v19, %v1577_v31  ;;  %v897_v20 = vadd.f32 %v5468_v43, %v5449_v58  ;;  %v1143_v16 = vmul.f32 %v5475_v63, %v5874_v56  ;;  %v1244_v7 = vmul.f32 %v5483_v25, %v5882_v42  ;;  %v1815_v19 = vld [vmem:[#allocation2 + $0x199] sm:$0xff] }
 0x193   : > { %4412 = vmatprep.mubr.msk.f32.mxu1 %vm287_vm1, %v2051_v33  ;;  %v1981_v39 = vadd.f32 %v1949_v29, %v1880_v9  ;;  %v1477_v51 = vadd.f32 %v1445_v36, %v1376_v23  ;;  %v1345_v14 = vmul.f32 %v5530_v12, %v5884_v32  ;;  %v1446_v48 = vmul.f32 %v5544_v1, %v1712_v35  ;;  %v1715_v9 = vld [vmem:[#allocation2 + $0x1a0] sm:$0xff] }
 0x194   : > { %v1780_v28 = vadd.f32 %v1748_v45, %v1678_v55  ;;  %v1027_v58 = vmax.f32 %v897_v20, 0.0  ;;  %v1276_v34 = vadd.f32 %v1244_v7, %v1143_v16  ;;  %v1547_v56 = vmul.f32 %v5554_v44, %v1813_v4  ;;  %v1816_v23 = vld [vmem:[#allocation2 + $0x1a1] sm:$0xff] }
 0x195   : > { %v2020_v27 = vadd.f32 %v5685_v13, %v1981_v39  ;;  %v1578_v42 = vadd.f32 %v1546_v47, %v1477_v51  ;;  %v1648_v38 = vmul.f32 %v5561_v15, %v1914_v54  ;;  %v1750_v29 = vmul.f32 %v5607_v52, %v1714_v8  ;;  %v1917_v55 = vld [vmem:[#allocation2 + $0x1a2] sm:$0xff] }
 0x196   : > { %v1881_v36 = vadd.f32 %v1849_v57, %v1780_v28  ;;  %2470 = vst.msk [vmem:[#allocation2 + $0xc9] sm:$0xff] %vm287_vm1, %v1027_v58  ;;  %v1377_v32 = vadd.f32 %v1345_v14, %v1276_v34  ;;  %v5985_v35 = vmul.f32 %v5614_v3, %v1815_v19  ;;  %v5988_v45 = vmul.f32 %v5624_v5, %v1916_v61  ;;  %v6036_v39 = vld [vmem:[%s7317_s2 + $0x4] ss:$0 sm:$0xff]  ;;  %v6052_v19 = vld [vmem:[%s7317_s2 + $0x7] ss:$0 sm:$0xff] }
 0x197   : > { %v2052_v6 = vmax.f32 %v2020_v27, 0.0  ;;  %v1679_v40 = vadd.f32 %v1647_v18, %v1578_v42  ;;  %v892_v4 = vadd.f32 %v5468_v43, %v5456_v26  ;;  %v1144_v54 = vmul.f32 %v5475_v63, %v5906_v2  ;;  %v6001_v18 = vld [vmem:[%s7317_s2] ss:$0 sm:$0xff]  ;;  %v6065_v27 = vld [vmem:[#allocation2 + $0x31] sm:$0xff] }
 0x198   : > { %v1982_v47 = vadd.f32 %v1950_v17, %v1881_v36  ;;  %v1478_v31 = vadd.f32 %v1446_v48, %v1377_v32  ;;  %v1245_v57 = vmul.f32 %v5483_v25, %v5908_v11  ;;  %v1346_v33 = vmul.f32 %v5530_v12, %v5910_v30  ;;  %v2488_v25 = vld [vmem:[#allocation2] sm:$0xff]  ;;  %v6073_v32 = vld [vmem:[%s7317_s2 + $0x8] ss:$0 sm:$0xff] }
 0x199   : > { %4413 = vmatmul.mubr.msk.f32.gmra.mrb[24].mxu1 %vm287_vm1, %v2052_v6  ;;  %v1781_v26 = vadd.f32 %v1749_v0, %v1679_v40  ;;  %v1026_v63 = vmax.f32 %v892_v4, 0.0  ;;  %v1447_v2 = vmul.f32 %v5544_v1, %v1713_v41  ;;  %v1548_v17 = vmul.f32 %v5554_v44, %v1814_v24  ;;  %v6009_v12 = vld [vmem:[%s7317_s2 + $0x1] ss:$0 sm:$0xff]  ;;  %v6016_v0 = vld [vmem:[%s7317_s2 + $0x2] ss:$0 sm:$0xff]  ;;  %v6075_v6 = vld [vmem:[#allocation2 + $0x32] sm:$0xff] }
 0x19a   : > { %v2589_v11 = vld [vmem:[#allocation2 + $0x1] sm:$0xff]  ;;  %v2021_v30 = vadd.f32 %v5685_v13, %v1982_v47  ;;  %v1579_v20 = vadd.f32 %v1547_v56, %v1478_v31  ;;  %v1277_v16 = vadd.f32 %v1245_v57, %v1144_v54  ;;  %v1649_v7 = vmul.f32 %v5561_v15, %v1915_v21  ;;  %v6031_v21 = vld [vmem:[#allocation2 + $0x18] sm:$0xff]  ;;  %v6063_v56 = vld [vmem:[#allocation2 + $0x30] sm:$0xff] }
 0x19b   : > { %v2690_v1 = vld [vmem:[#allocation2 + $0x2] sm:$0xff]  ;;  %v1882_v41 = vadd.f32 %v1850_v37, %v1781_v26  ;;  %2469 = vst.msk [vmem:[#allocation2 + $0xc1] sm:$0xff] %vm287_vm1, %v1026_v63  ;;  %v1751_v24 = vmul.f32 %v5607_v52, %v1715_v9  ;;  %v6026_v8 = vmul.f32 %v5614_v3, %v1816_v23  ;;  %v6029_v15 = vmul.f32 %v5624_v5, %v1917_v55  ;;  %v6045_v5 = vld [vmem:[#allocation2 + $0x19] sm:$0xff]  ;;  %v2691_v55 = vld [vmem:[#allocation2 + $0xa] sm:$0xff] }
 0x19c   : > { %v6021_v44 = vld [vmem:[%s7317_s2 + $0x3] ss:$0 sm:$0xff]  ;;  %v6041_v37 = vld [vmem:[%s7317_s2 + $0x5] ss:$0 sm:$0xff]  ;;  %v2053_v51 = vmax.f32 %v2021_v30, 0.0  ;;  %v1680_v52 = vadd.f32 %v1648_v38, %v1579_v20  ;;  %v1378_v14 = vadd.f32 %v1346_v33, %v1277_v16  ;;  %v907_v3 = vadd.f32 %v5468_v43, %v5495_v50  ;;  %v6047_v48 = vld [vmem:[#allocation2 + $0x1a] sm:$0xff] }
 0x19d   : > { %v1983_v61 = vadd.f32 %v5967_v46, %v1882_v41  ;;  %v2524_v28 = vmul.f32 %v6001_v18, %v2488_v25  ;;  %v2625_v58 = vmul.f32 %v6009_v12, %v2589_v11  ;;  %v2726_v34 = vmul.f32 %v6016_v0, %v2690_v1  ;;  %v6061_v50 = vld [vmem:[%s7317_s2 + $0x6] ss:$0 sm:$0xff]  ;;  %v2489_v47 = vld [vmem:[#allocation2 + $0x8] sm:$0xff]  ;;  %v6095_v41 = vld [vmem:[#allocation2 + $0x38] sm:$0xff] }
 0x19e   : > { %4415 = vmatprep.mubr.msk.f32.mxu1 %vm287_vm1, %v2053_v51  ;;  %v1782_v42 = vadd.f32 %v1750_v29, %v1680_v52  ;;  %v1479_v38 = vadd.f32 %v1447_v2, %v1378_v14  ;;  %v1029_v46 = vmax.f32 %v907_v3, 0.0  ;;  %v2827_v36 = vmul.f32 %v6021_v44, %v6031_v21  ;;  %v2590_v31 = vld [vmem:[#allocation2 + $0x9] sm:$0xff]  ;;  %v2792_v26 = vld [vmem:[#allocation2 + $0x20] sm:$0xff] }
 0x19f   : > { %v2022_v40 = vadd.f32 %v5685_v13, %v1983_v61  ;;  %v2657_v4 = vadd.f32 %v2625_v58, %v2524_v28  ;;  %v2928_v54 = vmul.f32 %v6036_v39, %v6045_v5  ;;  %v3029_v29 = vmul.f32 %v6041_v37, %v6047_v48  ;;  %v2994_v1 = vld [vmem:[#allocation2 + $0x22] sm:$0xff]  ;;  %v6097_v51 = vld [vmem:[#allocation2 + $0x39] sm:$0xff] }
 0x1a0   : > { %v1883_v57 = vadd.f32 %v5985_v35, %v1782_v42  ;;  %v1580_v33 = vadd.f32 %v1548_v17, %v1479_v38  ;;  %2472 = vst.msk [vmem:[#allocation2 + $0xe1] sm:$0xff] %vm287_vm1, %v1029_v46  ;;  %v3130_v9 = vmul.f32 %v6061_v50, %v6063_v56  ;;  %v3231_v23 = vmul.f32 %v6052_v19, %v6065_v27  ;;  %v2893_v35 = vld [vmem:[#allocation2 + $0x21] sm:$0xff] }
 0x1a1   : > { %v2054_v63 = vmax.f32 %v2022_v40, 0.0  ;;  %v2758_v2 = vadd.f32 %v2726_v34, %v2657_v4  ;;  %v3332_v25 = vmul.f32 %v6073_v32, %v6075_v6  ;;  %v902_v11 = vadd.f32 %v5468_v43, %v5502_v10  ;;  %v6102_v61 = vld [vmem:[#allocation2 + $0x3a] sm:$0xff] }
 0x1a2   : > { %v1984_v17 = vadd.f32 %v5988_v45, %v1883_v57  ;;  %v1681_v30 = vadd.f32 %v1649_v7, %v1580_v33  ;;  %v2525_v20 = vmul.f32 %v6001_v18, %v2489_v47  ;;  %v2626_v16 = vmul.f32 %v6009_v12, %v2590_v31  ;;  %v7331_v31 = vld [vmem:[#allocation3_spill] sm:$0xff] }
 0x1a3   : > { %4416 = vmatmul.mubr.msk.f32.gmra.mrb[26].mxu1 %vm287_vm1, %v2054_v63  ;;  %v2859_v52 = vadd.f32 %v2827_v36, %v2758_v2  ;;  %v1028_v14 = vmax.f32 %v902_v11, 0.0  ;;  %v2727_v3 = vmul.f32 %v6016_v0, %v2691_v55  ;;  %v2828_v10 = vmul.f32 %v6021_v44, %v2792_v26  ;;  %v6121_v55 = vld [vmem:[#allocation2 + $0x48] sm:$0xff] }
 0x1a4   : > { %v2023_v45 = vadd.f32 %v5685_v13, %v1984_v17  ;;  %v1783_v7 = vadd.f32 %v1751_v24, %v1681_v30  ;;  %v2658_v28 = vadd.f32 %v2626_v16, %v2525_v20  ;;  %v2929_v58 = vmul.f32 %v6036_v39, %v2893_v35  ;;  %v6131_v11 = vld [vmem:[#allocation2 + $0x4a] sm:$0xff] }
 0x1a5   : > { %v2960_v34 = vadd.f32 %v2928_v54, %v2859_v52  ;;  %2471 = vst.msk [vmem:[#allocation2 + $0xd9] sm:$0xff] %vm287_vm1, %v1028_v14  ;;  %v3030_v42 = vmul.f32 %v6041_v37, %v2994_v1  ;;  %v3131_v38 = vmul.f32 %v6061_v50, %v6095_v41  ;;  %v3232_v46 = vmul.f32 %v6052_v19, %v6097_v51 }
 0x1a6   : > { %v2055_v36 = vmax.f32 %v2023_v45, 0.0  ;;  %v1884_v40 = vadd.f32 %v6026_v8, %v1783_v7  ;;  %v2759_v4 = vadd.f32 %v2727_v3, %v2658_v28  ;;  %v3333_v24 = vmul.f32 %v6073_v32, %v6102_v61  ;;  %v7332_v7 = vld [vmem:[#allocation4_spill] sm:$0xff] }
 0x1a7   : > { %v3061_v47 = vadd.f32 %v3029_v29, %v2960_v34  ;;  %v917_v54 = vadd.f32 %v5468_v43, %v7331_v31  ;;  %v2526_v57 = vmul.f32 %v6001_v18, %v6031_v21  ;;  %v2627_v33 = vmul.f32 %v6009_v12, %v6045_v5  ;;  %v6129_v43 = vld [vmem:[#allocation2 + $0x49] sm:$0xff]  ;;  %v6162_v31 = vld [vmem:[#allocation2 + $0x51] sm:$0xff] }
 0x1a8   : > { %4418 = vmatprep.mubr.msk.f32.mxu1 %vm287_vm1, %v2055_v36  ;;  %v1985_v8 = vadd.f32 %v6029_v15, %v1884_v40  ;;  %v2860_v63 = vadd.f32 %v2828_v10, %v2759_v4  ;;  %v2728_v2 = vmul.f32 %v6016_v0, %v6047_v48  ;;  %v2829_v29 = vmul.f32 %v6021_v44, %v6063_v56 }
 0x1a9   : > { %v3162_v21 = vadd.f32 %v3130_v9, %v3061_v47  ;;  %v1031_v17 = vmax.f32 %v917_v54, 0.0  ;;  %v2659_v5 = vadd.f32 %v2627_v33, %v2526_v57  ;;  %v2930_v30 = vmul.f32 %v6036_v39, %v6065_v27  ;;  %v6160_v47 = vld [vmem:[#allocation2 + $0x50] sm:$0xff] }
 0x1aa   : > { %v2024_v20 = vadd.f32 %v5685_v13, %v1985_v8  ;;  %v2961_v15 = vadd.f32 %v2929_v58, %v2860_v63  ;;  %v3031_v16 = vmul.f32 %v6041_v37, %v6075_v6  ;;  %v3132_v48 = vmul.f32 %v6061_v50, %v6121_v55  ;;  %v6148_v13 = vld [vmem:[%s7320_s5] ss:$0 sm:$0xff] }
 0x1ab   : > { %v3263_v52 = vadd.f32 %v3231_v23, %v3162_v21  ;;  %2474 = vst.msk [vmem:[#allocation2 + $0xf9] sm:$0xff] %vm287_vm1, %v1031_v17  ;;  %v2760_v14 = vadd.f32 %v2728_v2, %v2659_v5  ;;  %v3233_v9 = vmul.f32 %v6052_v19, %v6129_v43  ;;  %v3334_v3 = vmul.f32 %v6073_v32, %v6131_v11  ;;  %v6153_v23 = vld [vmem:[%s7319_s4] ss:$0 sm:$0xff] }
 0x1ac   : > { %v2056_v10 = vmax.f32 %v2024_v20, 0.0  ;;  %v3062_v45 = vadd.f32 %v3030_v42, %v2961_v15  ;;  %v912_v28 = vadd.f32 %v6153_v23, %v7332_v7  ;;  %v2527_v58 = vmul.f32 %v6001_v18, %v2792_v26  ;;  %v6164_v42 = vld [vmem:[#allocation2 + $0x52] sm:$0xff] }
 0x1ad   : > { %v3364_v34 = vadd.f32 %v3332_v25, %v3263_v52  ;;  %v2861_v36 = vadd.f32 %v2829_v29, %v2760_v14  ;;  %v2628_v40 = vmul.f32 %v6009_v12, %v2893_v35  ;;  %v2729_v4 = vmul.f32 %v6016_v0, %v2994_v1 }
 0x1ae   : > { %4419 = vmatmul.mubr.msk.f32.gmra.mrb[28].mxu1 %vm287_vm1, %v2056_v10  ;;  %v3163_v54 = vadd.f32 %v3131_v38, %v3062_v45  ;;  %v1030_v57 = vmax.f32 %v912_v28, 0.0  ;;  %v2830_v33 = vmul.f32 %v6021_v44, %v6095_v41  ;;  %v2931_v26 = vmul.f32 %v6036_v39, %v6097_v51  ;;  %v6189_v10 = vld [vmem:[#allocation2 + $0x60] sm:$0xff] }
 0x1af   : > { %v3403_v25 = vadd.f32 %v6148_v13, %v3364_v34  ;;  %v2962_v35 = vadd.f32 %v2930_v30, %v2861_v36  ;;  %v2660_v1 = vadd.f32 %v2628_v40, %v2527_v58  ;;  %v3032_v8 = vmul.f32 %v6041_v37, %v6102_v61  ;;  %v7333_v30 = vld [vmem:[#allocation5_spill] sm:$0xff] }
 0x1b0   : > { %v3264_v63 = vadd.f32 %v3232_v46, %v3163_v54  ;;  %2473 = vst.msk [vmem:[#allocation2 + $0xf1] sm:$0xff] %vm287_vm1, %v1030_v57  ;;  %v3133_v38 = vmul.f32 %v6061_v50, %v6160_v47  ;;  %v3234_v2 = vmul.f32 %v6052_v19, %v6162_v31  ;;  %v3335_v29 = vmul.f32 %v6073_v32, %v6164_v42  ;;  %v6191_v45 = vld [vmem:[#allocation2 + $0x61] sm:$0xff] }
 0x1b1   : > { %v3435_v21 = vmax.f32 %v3403_v25, 0.0  ;;  %v3063_v17 = vadd.f32 %v3031_v16, %v2962_v35  ;;  %v2761_v5 = vadd.f32 %v2729_v4, %v2660_v1  ;;  %v927_v20 = vadd.f32 %v6153_v23, %v7333_v30  ;;  %v6196_v58 = vld [vmem:[#allocation2 + $0x62] sm:$0xff] }
 0x1b2   : > { %v3365_v15 = vadd.f32 %v3333_v24, %v3264_v63  ;;  %v2528_v46 = vmul.f32 %v6001_v18, %v6063_v56  ;;  %v2629_v52 = vmul.f32 %v6009_v12, %v6065_v27  ;;  %v2730_v14 = vmul.f32 %v6016_v0, %v6075_v6  ;;  %v7334_v25 = vld [vmem:[#allocation6_spill] sm:$0xff] }
 0x1b3   : > { %4433 = vmatprep.mubr.msk.f32.mxu1 %vm287_vm1, %v3435_v21  ;;  %v3164_v16 = vadd.f32 %v3132_v48, %v3063_v17  ;;  %v2862_v7 = vadd.f32 %v2830_v33, %v2761_v5  ;;  %v1033_v28 = vmax.f32 %v927_v20, 0.0  ;;  %v2831_v24 = vmul.f32 %v6021_v44, %v6121_v55  ;;  %v6216_v21 = vld [vmem:[#allocation2 + $0x68] sm:$0xff] }
 0x1b4   : > { %v3404_v56 = vadd.f32 %v6148_v13, %v3365_v15  ;;  %v2661_v27 = vadd.f32 %v2629_v52, %v2528_v46  ;;  %v2932_v6 = vmul.f32 %v6036_v39, %v6129_v43  ;;  %v3033_v34 = vmul.f32 %v6041_v37, %v6131_v11  ;;  %v6218_v17 = vld [vmem:[#allocation2 + $0x69] sm:$0xff] }
 0x1b5   : > { %v3265_v36 = vadd.f32 %v3233_v9, %v3164_v16  ;;  %v2963_v40 = vadd.f32 %v2931_v26, %v2862_v7  ;;  %2476 = vst.msk [vmem:[#allocation2 + $0x111] sm:$0xff] %vm287_vm1, %v1033_v28  ;;  %v3134_v48 = vmul.f32 %v6061_v50, %v6189_v10  ;;  %v3235_v4 = vmul.f32 %v6052_v19, %v6191_v45 }
 0x1b6   : > { %v3436_v54 = vmax.f32 %v3404_v56, 0.0  ;;  %v2762_v57 = vadd.f32 %v2730_v14, %v2661_v27  ;;  %v3336_v33 = vmul.f32 %v6073_v32, %v6196_v58  ;;  %v922_v35 = vadd.f32 %v6153_v23, %v7334_v25  ;;  %v7335_v27 = vld [vmem:[#allocation7_spill] sm:$0xff] }
 0x1b7   : > { %v3366_v1 = vadd.f32 %v3334_v3, %v3265_v36  ;;  %v3064_v63 = vadd.f32 %v3032_v8, %v2963_v40  ;;  %v2529_v9 = vmul.f32 %v6001_v18, %v6095_v41  ;;  %v2630_v26 = vmul.f32 %v6009_v12, %v6097_v51  ;;  %v6225_v8 = vld [vmem:[#allocation2 + $0x6a] sm:$0xff] }
 0x1b8   : > { %4434 = vmatmul.mubr.msk.f32.vlgmr.msra.gmra.mrb[30].mxu1 %vm287_vm1, %v3436_v54  ;;  %v2863_v5 = vadd.f32 %v2831_v24, %v2762_v57  ;;  %v1032_v30 = vmax.f32 %v922_v35, 0.0  ;;  %v2731_v20 = vmul.f32 %v6016_v0, %v6102_v61  ;;  %v2832_v3 = vmul.f32 %v6021_v44, %v6160_v47  ;;  %v6245_v54 = vld [vmem:[#allocation2 + $0x78] sm:$0xff] }
 0x1b9   : > { %v3405_v41 = vadd.f32 %v6148_v13, %v3366_v1  ;;  %v3165_v15 = vadd.f32 %v3133_v38, %v3064_v63  ;;  %v2662_v51 = vadd.f32 %v2630_v26, %v2529_v9  ;;  %v2933_v46 = vmul.f32 %v6036_v39, %v6162_v31  ;;  %v6252_v35 = vld [vmem:[#allocation2 + $0x79] sm:$0xff] }
 0x1ba   : > { %v2964_v52 = vadd.f32 %v2932_v6, %v2863_v5  ;;  %2475 = vst.msk [vmem:[#allocation2 + $0x109] sm:$0xff] %vm287_vm1, %v1032_v30  ;;  %v3034_v14 = vmul.f32 %v6041_v37, %v6164_v42  ;;  %v3135_v61 = vmul.f32 %v6061_v50, %v6216_v21  ;;  %v3236_v16 = vmul.f32 %v6052_v19, %v6218_v17  ;;  %v6254_v1 = vld [vmem:[#allocation2 + $0x7a] sm:$0xff] }
 0x1bb   : > { %v3437_v7 = vmax.f32 %v3405_v41, 0.0  ;;  %v3266_v28 = vadd.f32 %v3234_v2, %v3165_v15  ;;  %v2763_v24 = vadd.f32 %v2731_v20, %v2662_v51  ;;  %v3337_v38 = vmul.f32 %v6073_v32, %v6225_v8  ;;  %v7336_v51 = vld [vmem:[#allocation8_spill] sm:$0xff] }
 0x1bc   : > { %v3065_v56 = vadd.f32 %v3033_v34, %v2964_v52  ;;  %v937_v6 = vadd.f32 %v6153_v23, %v7335_v27  ;;  %v2530_v36 = vmul.f32 %v6001_v18, %v6121_v55  ;;  %v2631_v40 = vmul.f32 %v6009_v12, %v6129_v43  ;;  %v6278_v27 = vld [vmem:[#allocation2 + $0x81] sm:$0xff] }
 0x1bd   : > { %4436 = vmatprep.mubr.msk.f32.mxu1 %vm287_vm1, %v3437_v7  ;;  %v3367_v57 = vadd.f32 %v3335_v29, %v3266_v28  ;;  %v2864_v2 = vadd.f32 %v2832_v3, %v2763_v24  ;;  %v2732_v25 = vmul.f32 %v6016_v0, %v6131_v11  ;;  %v2833_v34 = vmul.f32 %v6021_v44, %v6189_v10 }
 0x1be   : > { %v3166_v55 = vadd.f32 %v3134_v48, %v3065_v56  ;;  %v1035_v63 = vmax.f32 %v937_v6, 0.0  ;;  %v2663_v9 = vadd.f32 %v2631_v40, %v2530_v36  ;;  %v2934_v43 = vmul.f32 %v6036_v39, %v6191_v45  ;;  %v6276_v56 = vld [vmem:[#allocation2 + $0x80] sm:$0xff] }
 0x1bf   : > { %v3406_v26 = vadd.f32 %v6148_v13, %v3367_v57  ;;  %v2965_v29 = vadd.f32 %v2933_v46, %v2864_v2  ;;  %v3035_v5 = vmul.f32 %v6041_v37, %v6196_v58  ;;  %v3136_v11 = vmul.f32 %v6061_v50, %v6245_v54  ;;  %v6280_v6 = vld [vmem:[#allocation2 + $0x82] sm:$0xff] }
 0x1c0   : > { %v3267_v30 = vadd.f32 %v3235_v4, %v3166_v55  ;;  %2478 = vst.msk [vmem:[#allocation2 + $0x129] sm:$0xff] %vm287_vm1, %v1035_v63  ;;  %v2764_v20 = vadd.f32 %v2732_v25, %v2663_v9  ;;  %v3237_v48 = vmul.f32 %v6052_v19, %v6252_v35  ;;  %v3338_v3 = vmul.f32 %v6073_v32, %v6254_v1 }
 0x1c1   : > { %v3438_v41 = vmax.f32 %v3406_v26, 0.0  ;;  %v3066_v15 = vadd.f32 %v3034_v14, %v2965_v29  ;;  %v932_v46 = vadd.f32 %v6153_v23, %v7336_v51  ;;  %v2531_v52 = vmul.f32 %v6001_v18, %v6160_v47 }
 0x1c2   : > { %v3368_v7 = vadd.f32 %v3336_v33, %v3267_v30  ;;  %v2865_v28 = vadd.f32 %v2833_v34, %v2764_v20  ;;  %v2632_v4 = vmul.f32 %v6009_v12, %v6162_v31  ;;  %v2733_v24 = vmul.f32 %v6016_v0, %v6164_v42  ;;  %v6305_v20 = vld [vmem:[#allocation2 + $0x90] sm:$0xff] }
 0x1c3   : > { %4437 = vmatmul.mubr.msk.f32.gmra.mrb[32].mxu1 %vm287_vm1, %v3438_v41  ;;  %v3167_v14 = vadd.f32 %v3135_v61, %v3066_v15  ;;  %v1034_v36 = vmax.f32 %v932_v46, 0.0  ;;  %v2834_v47 = vmul.f32 %v6021_v44, %v6216_v21  ;;  %v2935_v33 = vmul.f32 %v6036_v39, %v6218_v17  ;;  %v6307_v41 = vld [vmem:[#allocation2 + $0x91] sm:$0xff] }
 0x1c4   : > { %v3407_v31 = vadd.f32 %v6148_v13, %v3368_v7  ;;  %v2966_v40 = vadd.f32 %v2934_v43, %v2865_v28  ;;  %v2664_v42 = vadd.f32 %v2632_v4, %v2531_v52  ;;  %v3036_v57 = vmul.f32 %v6041_v37, %v6225_v8 }
 0x1c5   : > { %v3268_v2 = vadd.f32 %v3236_v16, %v3167_v14  ;;  %2477 = vst.msk [vmem:[#allocation2 + $0x121] sm:$0xff] %vm287_vm1, %v1034_v36  ;;  %v3137_v61 = vmul.f32 %v6061_v50, %v6276_v56  ;;  %v3238_v25 = vmul.f32 %v6052_v19, %v6278_v27  ;;  %v3339_v34 = vmul.f32 %v6073_v32, %v6280_v6 }
 0x1c6   : > { %v3439_v55 = vmax.f32 %v3407_v31, 0.0  ;;  %v3067_v63 = vadd.f32 %v3035_v5, %v2966_v40  ;;  %v2765_v9 = vadd.f32 %v2733_v24, %v2664_v42  ;;  %v947_v43 = vadd.f32 %v6153_v23, %v5646_v62  ;;  %v6332_v40 = vld [vmem:[#allocation2 + $0x98] sm:$0xff] }
 0x1c7   : > { %v3369_v26 = vadd.f32 %v3337_v38, %v3268_v2  ;;  %v2532_v16 = vmul.f32 %v6001_v18, %v6189_v10  ;;  %v2633_v29 = vmul.f32 %v6009_v12, %v6191_v45  ;;  %v2734_v30 = vmul.f32 %v6016_v0, %v6196_v58  ;;  %v6312_v38 = vld [vmem:[#allocation2 + $0x92] sm:$0xff] }
 0x1c8   : > { %4439 = vmatprep.mubr.msk.f32.mxu1 %vm287_vm1, %v3439_v55  ;;  %v3168_v5 = vadd.f32 %v3136_v11, %v3067_v63  ;;  %v2866_v15 = vadd.f32 %v2834_v47, %v2765_v9  ;;  %v1037_v51 = vmax.f32 %v947_v43, 0.0  ;;  %v2835_v62 = vmul.f32 %v6021_v44, %v6245_v54  ;;  %v6334_v42 = vld [vmem:[#allocation2 + $0x99] sm:$0xff] }
 0x1c9   : > { %v3408_v10 = vadd.f32 %v6148_v13, %v3369_v26  ;;  %v2665_v45 = vadd.f32 %v2633_v29, %v2532_v16  ;;  %v2936_v58 = vmul.f32 %v6036_v39, %v6252_v35  ;;  %v3037_v46 = vmul.f32 %v6041_v37, %v6254_v1 }
 0x1ca   : > { %v3269_v52 = vadd.f32 %v3237_v48, %v3168_v5  ;;  %v2967_v7 = vadd.f32 %v2935_v33, %v2866_v15  ;;  %2480 = vst.msk [vmem:[#allocation2 + $0x141] sm:$0xff] %vm287_vm1, %v1037_v51  ;;  %v3138_v11 = vmul.f32 %v6061_v50, %v6305_v20  ;;  %v3239_v28 = vmul.f32 %v6052_v19, %v6307_v41  ;;  %v7337_v51 = vld [vmem:[#allocation9_spill] sm:$0xff] }
 0x1cb   : > { %v3440_v4 = vmax.f32 %v3408_v10, 0.0  ;;  %v2766_v24 = vadd.f32 %v2734_v30, %v2665_v45  ;;  %v3340_v14 = vmul.f32 %v6073_v32, %v6312_v38  ;;  %v942_v36 = vadd.f32 %v6153_v23, %v5664_v53 }
 0x1cc   : > { %v3370_v47 = vadd.f32 %v3338_v3, %v3269_v52  ;;  %v3068_v31 = vadd.f32 %v3036_v57, %v2967_v7  ;;  %v2533_v48 = vmul.f32 %v6001_v18, %v6216_v21  ;;  %v2634_v33 = vmul.f32 %v6009_v12, %v6218_v17  ;;  %v6341_v3 = vld [vmem:[#allocation2 + $0x9a] sm:$0xff] }
 0x1cd   : > { %4440 = vmatmul.mubr.msk.f32.gmra.mrb[34].mxu1 %vm287_vm1, %v3440_v4  ;;  %v2867_v2 = vadd.f32 %v2835_v62, %v2766_v24  ;;  %v1036_v55 = vmax.f32 %v942_v36, 0.0  ;;  %v2735_v63 = vmul.f32 %v6016_v0, %v6225_v8  ;;  %v2836_v53 = vmul.f32 %v6021_v44, %v6276_v56  ;;  %v6368_v4 = vld [vmem:[#allocation2 + $0xa9] sm:$0xff] }
 0x1ce   : > { %v3409_v21 = vadd.f32 %v6148_v13, %v3370_v47  ;;  %v3169_v57 = vadd.f32 %v3137_v61, %v3068_v31  ;;  %v2666_v17 = vadd.f32 %v2634_v33, %v2533_v48  ;;  %v2937_v9 = vmul.f32 %v6036_v39, %v6278_v27  ;;  %v6370_v24 = vld [vmem:[#allocation2 + $0xaa] sm:$0xff] }
 0x1cf   : > { %v2968_v43 = vadd.f32 %v2936_v58, %v2867_v2  ;;  %2479 = vst.msk [vmem:[#allocation2 + $0x139] sm:$0xff] %vm287_vm1, %v1036_v55  ;;  %v3038_v26 = vmul.f32 %v6041_v37, %v6280_v6  ;;  %v3139_v8 = vmul.f32 %v6061_v50, %v6332_v40  ;;  %v3240_v16 = vmul.f32 %v6052_v19, %v6334_v42  ;;  %v6361_v58 = vld [vmem:[#allocation2 + $0xa8] sm:$0xff] }
 0x1d0   : > { %v3441_v29 = vmax.f32 %v3409_v21, 0.0  ;;  %v3270_v30 = vadd.f32 %v3238_v25, %v3169_v57  ;;  %v2767_v5 = vadd.f32 %v2735_v63, %v2666_v17  ;;  %v3341_v61 = vmul.f32 %v6073_v32, %v6341_v3  ;;  %v7338_v21 = vld [vmem:[#allocation10_spill] sm:$0xff] }
 0x1d1   : > { %v3069_v15 = vadd.f32 %v3037_v46, %v2968_v43  ;;  %v957_v62 = vadd.f32 %v6153_v23, %v7337_v51  ;;  %v2534_v10 = vmul.f32 %v6001_v18, %v6245_v54  ;;  %v2635_v45 = vmul.f32 %v6009_v12, %v6252_v35 }
 0x1d2   : > { %4442 = vmatprep.mubr.msk.f32.mxu1 %vm287_vm1, %v3441_v29  ;;  %v3371_v52 = vadd.f32 %v3339_v34, %v3270_v30  ;;  %v2868_v25 = vadd.f32 %v2836_v53, %v2767_v5  ;;  %v2736_v7 = vmul.f32 %v6016_v0, %v6254_v1  ;;  %v2837_v46 = vmul.f32 %v6021_v44, %v6305_v20  ;;  %v6392_v30 = vld [vmem:[#allocation2 + $0xb0] sm:$0xff] }
 0x1d3   : > { %v3170_v54 = vadd.f32 %v3138_v11, %v3069_v15  ;;  %v1039_v36 = vmax.f32 %v957_v62, 0.0  ;;  %v2667_v47 = vadd.f32 %v2635_v45, %v2534_v10  ;;  %v2938_v35 = vmul.f32 %v6036_v39, %v6307_v41  ;;  %v6394_v5 = vld [vmem:[#allocation2 + $0xb1] sm:$0xff] }
 0x1d4   : > { %v3410_v31 = vadd.f32 %v6148_v13, %v3371_v52  ;;  %v2969_v34 = vadd.f32 %v2937_v9, %v2868_v25  ;;  %v3039_v48 = vmul.f32 %v6041_v37, %v6312_v38  ;;  %v3140_v1 = vmul.f32 %v6061_v50, %v6361_v58  ;;  %v6396_v15 = vld [vmem:[#allocation2 + $0xb2] sm:$0xff] }
 0x1d5   : > { %v3271_v33 = vadd.f32 %v3239_v28, %v3170_v54  ;;  %2482 = vst.msk [vmem:[#allocation2 + $0x159] sm:$0xff] %vm287_vm1, %v1039_v36  ;;  %v2768_v2 = vadd.f32 %v2736_v7, %v2667_v47  ;;  %v3241_v11 = vmul.f32 %v6052_v19, %v6368_v4  ;;  %v3342_v55 = vmul.f32 %v6073_v32, %v6370_v24 }
 0x1d6   : > { %v3442_v63 = vmax.f32 %v3410_v31, 0.0  ;;  %v3070_v53 = vadd.f32 %v3038_v26, %v2969_v34  ;;  %v952_v57 = vadd.f32 %v6153_v23, %v7338_v21  ;;  %v2535_v17 = vmul.f32 %v6001_v18, %v6276_v56  ;;  %v6423_v34 = vld [vmem:[#allocation2 + $0xc0] sm:$0xff] }
 0x1d7   : > { %v3372_v9 = vadd.f32 %v3340_v14, %v3271_v33  ;;  %v2869_v43 = vadd.f32 %v2837_v46, %v2768_v2  ;;  %v2636_v28 = vmul.f32 %v6009_v12, %v6278_v27  ;;  %v2737_v29 = vmul.f32 %v6016_v0, %v6280_v6  ;;  %v6425_v33 = vld [vmem:[#allocation2 + $0xc1] sm:$0xff] }
 0x1d8   : > { %4443 = vmatmul.mubr.msk.f32.gmra.mrb[36].mxu1 %vm287_vm1, %v3442_v63  ;;  %v3171_v26 = vadd.f32 %v3139_v8, %v3070_v53  ;;  %v1038_v51 = vmax.f32 %v952_v57, 0.0  ;;  %v2838_v56 = vmul.f32 %v6021_v44, %v6332_v40  ;;  %v2939_v14 = vmul.f32 %v6036_v39, %v6334_v42 }
 0x1d9   : > { %v3411_v27 = vadd.f32 %v6148_v13, %v3372_v9  ;;  %v2970_v62 = vadd.f32 %v2938_v35, %v2869_v43  ;;  %v2668_v6 = vadd.f32 %v2636_v28, %v2535_v17  ;;  %v3040_v10 = vmul.f32 %v6041_v37, %v6341_v3 }
 0x1da   : > { %v3272_v45 = vadd.f32 %v3240_v16, %v3171_v26  ;;  %2481 = vst.msk [vmem:[#allocation2 + $0x151] sm:$0xff] %vm287_vm1, %v1038_v51  ;;  %v3141_v8 = vmul.f32 %v6061_v50, %v6392_v30  ;;  %v3242_v52 = vmul.f32 %v6052_v19, %v6394_v5  ;;  %v6413_v25 = vmul.f32 %v6073_v32, %v6396_v15 }
 0x1db   : > { %v3443_v7 = vmax.f32 %v3411_v27, 0.0  ;;  %v3071_v46 = vadd.f32 %v3039_v48, %v2970_v62  ;;  %v2769_v54 = vadd.f32 %v2737_v29, %v2668_v6  ;;  %v967_v36 = vadd.f32 %v6153_v23, %v5773_v22  ;;  %v6454_v62 = vld [vmem:[#allocation2 + $0xc8] sm:$0xff] }
 0x1dc   : > { %v3373_v47 = vadd.f32 %v3341_v61, %v3272_v45  ;;  %v2536_v16 = vmul.f32 %v6001_v18, %v6305_v20  ;;  %v2637_v35 = vmul.f32 %v6009_v12, %v6307_v41  ;;  %v2738_v31 = vmul.f32 %v6016_v0, %v6312_v38  ;;  %v6430_v61 = vld [vmem:[#allocation2 + $0xc2] sm:$0xff] }
 0x1dd   : > { %4445 = vmatprep.mubr.msk.f32.mxu1 %vm287_vm1, %v3443_v7  ;;  %v3172_v48 = vadd.f32 %v3140_v1, %v3071_v46  ;;  %v2870_v2 = vadd.f32 %v2838_v56, %v2769_v54  ;;  %v1041_v63 = vmax.f32 %v967_v36, 0.0  ;;  %v2839_v22 = vmul.f32 %v6021_v44, %v6361_v58  ;;  %v6456_v6 = vld [vmem:[#allocation2 + $0xc9] sm:$0xff] }
 0x1de   : > { %v6432_v20 = vpop.f32.mrb[64].mxu0  ;;  %v3412_v41 = vadd.f32 %v6148_v13, %v3373_v47  ;;  %v2669_v53 = vadd.f32 %v2637_v35, %v2536_v16  ;;  %v2940_v38 = vmul.f32 %v6036_v39, %v6368_v4  ;;  %v3041_v21 = vmul.f32 %v6041_v37, %v6370_v24 }
 0x1df   : > { %v6439_v57 = vpop.f32.mrb[65].mxu0  ;;  %v3273_v1 = vadd.f32 %v3241_v11, %v3172_v48  ;;  %v2971_v17 = vadd.f32 %v2939_v14, %v2870_v2  ;;  %2484 = vst.msk [vmem:[#allocation2 + $0x171] sm:$0xff] %vm287_vm1, %v1041_v63  ;;  %v3142_v9 = vmul.f32 %v6061_v50, %v6423_v34  ;;  %v3243_v43 = vmul.f32 %v6052_v19, %v6425_v33 }
 0x1e0   : > { %v3444_v28 = vmax.f32 %v3412_v41, 0.0  ;;  %v2770_v29 = vadd.f32 %v2738_v31, %v2669_v53  ;;  %v3344_v26 = vmul.f32 %v6073_v32, %v6430_v61  ;;  %v962_v51 = vadd.f32 %v6153_v23, %v5805_v60  ;;  %v6483_v53 = vld [vmem:[#allocation2 + $0xd8] sm:$0xff] }
 0x1e1   : > { %v3374_v56 = vadd.f32 %v3342_v55, %v3273_v1  ;;  %v3072_v27 = vadd.f32 %v3040_v10, %v2971_v17  ;;  %v2537_v11 = vmul.f32 %v6001_v18, %v6332_v40  ;;  %v2638_v14 = vmul.f32 %v6009_v12, %v6334_v42  ;;  %v6463_v55 = vld [vmem:[#allocation2 + $0xca] sm:$0xff]  ;;  %v6493_v17 = vld [vmem:[#allocation2 + $0xda] sm:$0xff] }
 0x1e2   : > { %4446 = vmatmul.mubr.msk.f32.gmra.mrb[38].mxu1 %vm287_vm1, %v3444_v28  ;;  %v2871_v45 = vadd.f32 %v2839_v22, %v2770_v29  ;;  %v1040_v7 = vmax.f32 %v962_v51, 0.0  ;;  %v2739_v46 = vmul.f32 %v6016_v0, %v6341_v3  ;;  %v2840_v60 = vmul.f32 %v6021_v44, %v6392_v30 }
 0x1e3   : > { %v3413_v40 = vadd.f32 %v6148_v13, %v3374_v56  ;;  %v3173_v10 = vadd.f32 %v3141_v8, %v3072_v27  ;;  %v2670_v42 = vadd.f32 %v2638_v14, %v2537_v11  ;;  %v2941_v54 = vmul.f32 %v6036_v39, %v6394_v5 }
 0x1e4   : > { %v2972_v36 = vadd.f32 %v2940_v38, %v2871_v45  ;;  %2483 = vst.msk [vmem:[#allocation2 + $0x169] sm:$0xff] %vm287_vm1, %v1040_v7  ;;  %v3042_v47 = vmul.f32 %v6041_v37, %v6396_v15  ;;  %v3143_v3 = vmul.f32 %v6061_v50, %v6454_v62  ;;  %v3244_v16 = vmul.f32 %v6052_v19, %v6456_v6 }
 0x1e5   : > { %v3445_v35 = vmax.f32 %v3413_v40, 0.0  ;;  %v3274_v31 = vadd.f32 %v3242_v52, %v3173_v10  ;;  %v2771_v48 = vadd.f32 %v2739_v46, %v2670_v42  ;;  %v3345_v8 = vmul.f32 %v6073_v32, %v6463_v55 }
 0x1e6   : > { %v3073_v2 = vadd.f32 %v3041_v21, %v2972_v36  ;;  %v977_v63 = vadd.f32 %v6153_v23, %v5837_v59  ;;  %v2538_v22 = vmul.f32 %v6001_v18, %v6361_v58  ;;  %v2639_v41 = vmul.f32 %v6009_v12, %v6368_v4  ;;  %v6491_v59 = vld [vmem:[#allocation2 + $0xd9] sm:$0xff] }
 0x1e7   : > { %4448 = vmatprep.mubr.msk.f32.mxu1 %vm287_vm1, %v3445_v35  ;;  %v3375_v52 = vadd.f32 %v6413_v25, %v3274_v31  ;;  %v2872_v38 = vadd.f32 %v2840_v60, %v2771_v48  ;;  %v2740_v1 = vmul.f32 %v6016_v0, %v6370_v24  ;;  %v2841_v21 = vmul.f32 %v6021_v44, %v6423_v34  ;;  %v6519_v35 = vld [vmem:[#allocation2 + $0xe0] sm:$0xff] }
 0x1e8   : > { %v3174_v58 = vadd.f32 %v3142_v9, %v3073_v2  ;;  %v1043_v28 = vmax.f32 %v977_v63, 0.0  ;;  %v2671_v4 = vadd.f32 %v2639_v41, %v2538_v22  ;;  %v2942_v29 = vmul.f32 %v6036_v39, %v6425_v33  ;;  %v6502_v27 = vpop.f32.mrb[0].mxu1  ;;  %v6521_v31 = vld [vmem:[#allocation2 + $0xe1] sm:$0xff] }
 0x1e9   : > { %v3414_v51 = vadd.f32 %v6148_v13, %v3375_v52  ;;  %v2973_v25 = vadd.f32 %v2941_v54, %v2872_v38  ;;  %v3043_v56 = vmul.f32 %v6041_v37, %v6430_v61  ;;  %v3144_v24 = vmul.f32 %v6061_v50, %v6483_v53  ;;  %v6509_v7 = vpop.f32.mrb[1].mxu1  ;;  %v6523_v48 = vld [vmem:[#allocation2 + $0xe2] sm:$0xff] }
 0x1ea   : > { %v3275_v11 = vadd.f32 %v3243_v43, %v3174_v58  ;;  %2486 = vst.msk [vmem:[#allocation2 + $0x189] sm:$0xff] %vm287_vm1, %v1043_v28  ;;  %v2772_v9 = vadd.f32 %v2740_v1, %v2671_v4  ;;  %v3245_v14 = vmul.f32 %v6052_v19, %v6491_v59  ;;  %v3346_v45 = vmul.f32 %v6073_v32, %v6493_v17  ;;  %v6544_v58 = vld [vmem:[#allocation2 + $0xf0] sm:$0xff] }
 0x1eb   : > { %v3446_v46 = vmax.f32 %v3414_v51, 0.0  ;;  %v3074_v60 = vadd.f32 %v3042_v47, %v2973_v25  ;;  %v972_v40 = vadd.f32 %v6153_v23, %v5866_v49  ;;  %v2539_v10 = vmul.f32 %v6001_v18, %v6392_v30  ;;  %v6554_v25 = vld [vmem:[#allocation2 + $0xf2] sm:$0xff] }
 0x1ec   : > { %v3376_v43 = vadd.f32 %v3344_v26, %v3275_v11  ;;  %v2873_v42 = vadd.f32 %v2841_v21, %v2772_v9  ;;  %v2640_v54 = vmul.f32 %v6009_v12, %v6394_v5  ;;  %v2741_v36 = vmul.f32 %v6016_v0, %v6396_v15 }
 0x1ed   : > { %4449 = vmatmul.mubr.msk.f32.gmra.mrb[40].mxu1 %vm287_vm1, %v3446_v46  ;;  %v3175_v49 = vadd.f32 %v3143_v3, %v3074_v60  ;;  %v1042_v23 = vmax.f32 %v972_v40, 0.0  ;;  %v2842_v30 = vmul.f32 %v6021_v44, %v6454_v62  ;;  %v2943_v26 = vmul.f32 %v6036_v39, %v6456_v6 }
 0x1ee   : > { %v3415_v5 = vadd.f32 %v6148_v13, %v3376_v43  ;;  %v2974_v47 = vadd.f32 %v2942_v29, %v2873_v42  ;;  %v2672_v15 = vadd.f32 %v2640_v54, %v2539_v10  ;;  %v3044_v2 = vmul.f32 %v6041_v37, %v6463_v55  ;;  %v6572_v43 = vld [vmem:[#allocation2 + $0xf8] sm:$0xff] }
 0x1ef   : > { %v3276_v63 = vadd.f32 %v3244_v16, %v3175_v49  ;;  %2485 = vst.msk [vmem:[#allocation2 + $0x181] sm:$0xff] %vm287_vm1, %v1042_v23  ;;  %v3145_v3 = vmul.f32 %v6061_v50, %v6519_v35  ;;  %v3246_v22 = vmul.f32 %v6052_v19, %v6521_v31  ;;  %v6540_v41 = vmul.f32 %v6073_v32, %v6523_v48  ;;  %v6546_v16 = vld [vmem:[#allocation2 + $0xf1] sm:$0xff]  ;;  %v6578_v23 = vld [vmem:[#allocation2 + $0xf9] sm:$0xff] }
 0x1f0   : > { %v3447_v52 = vmax.f32 %v3415_v5, 0.0  ;;  %v3075_v38 = vadd.f32 %v3043_v56, %v2974_v47  ;;  %v2773_v1 = vadd.f32 %v2741_v36, %v2672_v15  ;;  %v2540_v21 = vmul.f32 %v6001_v18, %v6423_v34 }
 0x1f1   : > { %v3377_v28 = vadd.f32 %v3345_v8, %v3276_v63  ;;  %v2641_v4 = vmul.f32 %v6009_v12, %v6425_v33  ;;  %v2742_v29 = vmul.f32 %v6016_v0, %v6430_v61  ;;  %v2843_v51 = vmul.f32 %v6021_v44, %v6483_v53 }
 0x1f2   : > { %4451 = vmatprep.mubr.msk.f32.mxu1 %vm287_vm1, %v3447_v52  ;;  %v3176_v56 = vadd.f32 %v3144_v24, %v3075_v38  ;;  %v2874_v34 = vadd.f32 %v2842_v30, %v2773_v1  ;;  %v2944_v11 = vmul.f32 %v6036_v39, %v6491_v59  ;;  %v3045_v8 = vmul.f32 %v6041_v37, %v6493_v17 }
 0x1f3   : > { %v3416_v33 = vadd.f32 %v6148_v13, %v3377_v28  ;;  %v2673_v9 = vadd.f32 %v2641_v4, %v2540_v21  ;;  %v3146_v61 = vmul.f32 %v6061_v50, %v6544_v58  ;;  %v3247_v46 = vmul.f32 %v6052_v19, %v6546_v16 }
 0x1f4   : > { %v3277_v60 = vadd.f32 %v3245_v14, %v3176_v56  ;;  %v2975_v40 = vadd.f32 %v2943_v26, %v2874_v34  ;;  %v6568_v24 = vmul.f32 %v6073_v32, %v6554_v25  ;;  %v2541_v10 = vmul.f32 %v6001_v18, %v6454_v62  ;;  %v6580_v14 = vld [vmem:[#allocation2 + $0xfa] sm:$0xff] }
 0x1f5   : > { %v3448_v42 = vmax.f32 %v3416_v33, 0.0  ;;  %v2774_v54 = vadd.f32 %v2742_v29, %v2673_v9  ;;  %v2642_v36 = vmul.f32 %v6009_v12, %v6456_v6  ;;  %v2743_v49 = vmul.f32 %v6016_v0, %v6463_v55 }
 0x1f6   : > { %v3378_v30 = vadd.f32 %v3346_v45, %v3277_v60  ;;  %v3076_v26 = vadd.f32 %v3044_v2, %v2975_v40  ;;  %v2844_v5 = vmul.f32 %v6021_v44, %v6519_v35  ;;  %v2945_v62 = vmul.f32 %v6036_v39, %v6521_v31 }
 0x1f7   : > { %4452 = vmatmul.mubr.msk.f32.gmra.mrb[42].mxu1 %vm287_vm1, %v3448_v42  ;;  %v2875_v47 = vadd.f32 %v2843_v51, %v2774_v54  ;;  %v2674_v15 = vadd.f32 %v2642_v36, %v2541_v10  ;;  %v3046_v6 = vmul.f32 %v6041_v37, %v6523_v48  ;;  %v3147_v55 = vmul.f32 %v6061_v50, %v6572_v43  ;;  %v6591_v63 = vpop.f32.mrb[2].mxu1  ;;  %v6606_v51 = vld [vmem:[#allocation2 + $0x108] sm:$0xff]  ;;  %v6648_v42 = vld [vmem:[%s7317_s2 + $0x2] ss:$0 sm:$0xff]  ;;  %v6652_v36 = vld [vmem:[#allocation2 + $0x110] sm:$0xff] }
 0x1f8   : > { %v3417_v45 = vadd.f32 %v6148_v13, %v3378_v30  ;;  %v3177_v2 = vadd.f32 %v3145_v3, %v3076_v26  ;;  %v3248_v52 = vmul.f32 %v6052_v19, %v6578_v23  ;;  %v6598_v38 = vmul.f32 %v6073_v32, %v6580_v14  ;;  %v6600_v1 = vpop.f32.mrb[3].mxu1  ;;  %v6608_v3 = vld [vmem:[#allocation2 + $0x109] sm:$0xff]  ;;  %v6657_v26 = vld [vmem:[%s7317_s2 + $0x3] ss:$0 sm:$0xff] }
 0x1f9   : > { %v2976_v21 = vadd.f32 %v2944_v11, %v2875_v47  ;;  %v2775_v28 = vadd.f32 %v2743_v49, %v2674_v15  ;;  %v2542_v4 = vmul.f32 %v6001_v18, %v6483_v53  ;;  %v2643_v29 = vmul.f32 %v6009_v12, %v6491_v59  ;;  %v6614_v11 = vld [vmem:[#allocation2 + $0x10a] sm:$0xff] }
 0x1fa   : > { %v3449_v56 = vmax.f32 %v3417_v45, 0.0  ;;  %v3278_v34 = vadd.f32 %v3246_v22, %v3177_v2  ;;  %v2744_v33 = vmul.f32 %v6016_v0, %v6493_v17  ;;  %v2845_v9 = vmul.f32 %v6021_v44, %v6544_v58 }
 0x1fb   : > { %v3077_v60 = vadd.f32 %v3045_v8, %v2976_v21  ;;  %v2876_v40 = vadd.f32 %v2844_v5, %v2775_v28  ;;  %v2675_v18 = vadd.f32 %v2643_v29, %v2542_v4  ;;  %v2946_v12 = vmul.f32 %v6036_v39, %v6546_v16  ;;  %v6661_v5 = vld [vmem:[#allocation2 + $0x111] sm:$0xff] }
 0x1fc   : > { %4454 = vmatprep.mubr.msk.f32.mxu1 %vm287_vm1, %v3449_v56  ;;  %v3379_v53 = vadd.f32 %v6540_v41, %v3278_v34  ;;  %v3047_v59 = vmul.f32 %v6041_v37, %v6554_v25  ;;  %v3148_v0 = vmul.f32 %v6061_v50, %v6606_v51  ;;  %v3249_v44 = vmul.f32 %v6052_v19, %v6608_v3  ;;  %v6634_v41 = vld [vmem:[%s7317_s2] ss:$0 sm:$0xff]  ;;  %v6641_v19 = vld [vmem:[%s7317_s2 + $0x1] ss:$0 sm:$0xff]  ;;  %v6686_v56 = vld [vmem:[%s7317_s2 + $0x7] ss:$0 sm:$0xff] }
 0x1fd   : > { %v3178_v17 = vadd.f32 %v3146_v61, %v3077_v60  ;;  %v2977_v22 = vadd.f32 %v2945_v62, %v2876_v40  ;;  %v2776_v8 = vadd.f32 %v2744_v33, %v2675_v18  ;;  %v6628_v10 = vmul.f32 %v6073_v32, %v6614_v11  ;;  %v6663_v62 = vld [vmem:[#allocation2 + $0x112] sm:$0xff]  ;;  %v6697_v40 = vld [vmem:[#allocation2 + $0x120] sm:$0xff] }
 0x1fe   : > { %v3418_v39 = vadd.f32 %v6148_v13, %v3379_v53  ;;  %v2543_v37 = vmul.f32 %v6634_v41, %v6519_v35  ;;  %v2644_v61 = vmul.f32 %v6641_v19, %v6521_v31  ;;  %v2745_v54 = vmul.f32 %v6648_v42, %v6523_v48  ;;  %v6668_v48 = vld [vmem:[%s7317_s2 + $0x4] ss:$0 sm:$0xff] }
 0x1ff   : > { %v3279_v49 = vadd.f32 %v3247_v46, %v3178_v17  ;;  %v3078_v35 = vadd.f32 %v3046_v6, %v2977_v22  ;;  %v2877_v30 = vadd.f32 %v2845_v9, %v2776_v8  ;;  %v2846_v31 = vmul.f32 %v6657_v26, %v6572_v43  ;;  %v6675_v6 = vld [vmem:[%s7317_s2 + $0x5] ss:$0 sm:$0xff] }
 0x200   : > { %v3450_v47 = vmax.f32 %v3418_v39, 0.0  ;;  %v2676_v15 = vadd.f32 %v2644_v61, %v2543_v37  ;;  %v2947_v46 = vmul.f32 %v6668_v48, %v6578_v23  ;;  %v3048_v45 = vmul.f32 %v6675_v6, %v6580_v14  ;;  %v6699_v18 = vld [vmem:[#allocation2 + $0x121] sm:$0xff] }
 0x201   : > { %v3380_v2 = vadd.f32 %v6568_v24, %v3279_v49  ;;  %v3179_v21 = vadd.f32 %v3147_v55, %v3078_v35  ;;  %v2978_v28 = vadd.f32 %v2946_v12, %v2877_v30  ;;  %v3149_v4 = vmul.f32 %v6061_v50, %v6652_v36  ;;  %v6730_v30 = vld [vmem:[%s7317_s2 + $0x8] ss:$0 sm:$0xff] }
 0x202   : > { %4455 = vmatmul.mubr.msk.f32.gmra.mrb[44].mxu1 %vm287_vm1, %v3450_v47  ;;  %v2777_v29 = vadd.f32 %v2745_v54, %v2676_v15  ;;  %v3250_v34 = vmul.f32 %v6686_v56, %v6661_v5  ;;  %v3351_v33 = vmul.f32 %v6073_v32, %v6663_v62  ;;  %v2544_v24 = vmul.f32 %v6634_v41, %v6544_v58 }
 0x203   : > { %v3419_v55 = vadd.f32 %v6148_v13, %v3380_v2  ;;  %v3280_v50 = vadd.f32 %v3248_v52, %v3179_v21  ;;  %v3079_v9 = vadd.f32 %v3047_v59, %v2978_v28  ;;  %v2645_v60 = vmul.f32 %v6641_v19, %v6546_v16  ;;  %v6701_v12 = vpop.f32.mrb[4].mxu1  ;;  %v6709_v59 = vld [vmem:[#allocation2 + $0x122] sm:$0xff] }
 0x204   : > { %v2878_v53 = vadd.f32 %v2846_v31, %v2777_v29  ;;  %v2746_v32 = vmul.f32 %v6648_v42, %v6554_v25  ;;  %v2847_v58 = vmul.f32 %v6657_v26, %v6606_v51  ;;  %v2948_v52 = vmul.f32 %v6668_v48, %v6608_v3  ;;  %v6711_v17 = vpop.f32.mrb[5].mxu1  ;;  %v6719_v25 = vld [vmem:[%s7317_s2 + $0x6] ss:$0 sm:$0xff]  ;;  %v6742_v21 = vld [vmem:[#allocation2 + $0x129] sm:$0xff] }
 0x205   : > { %v3451_v16 = vmax.f32 %v3419_v55, 0.0  ;;  %v3381_v22 = vadd.f32 %v6598_v38, %v3280_v50  ;;  %v3180_v8 = vadd.f32 %v3148_v0, %v3079_v9  ;;  %v2677_v39 = vadd.f32 %v2645_v60, %v2544_v24  ;;  %v6747_v55 = vld [vmem:[#allocation2 + $0x12a] sm:$0xff] }
 0x206   : > { %v2979_v37 = vadd.f32 %v2947_v46, %v2878_v53  ;;  %v3049_v61 = vmul.f32 %v6675_v6, %v6614_v11  ;;  %v3150_v54 = vmul.f32 %v6719_v25, %v6697_v40  ;;  %v3251_v49 = vmul.f32 %v6686_v56, %v6699_v18 }
 0x207   : > { %4457 = vmatprep.mubr.msk.f32.mxu1 %vm287_vm1, %v3451_v16  ;;  %v3420_v38 = vadd.f32 %v6148_v13, %v3381_v22  ;;  %v3281_v0 = vadd.f32 %v3249_v44, %v3180_v8  ;;  %v2778_v35 = vadd.f32 %v2746_v32, %v2677_v39  ;;  %v3352_v31 = vmul.f32 %v6730_v30, %v6709_v59  ;;  %v6740_v44 = vld [vmem:[#allocation2 + $0x128] sm:$0xff]  ;;  %v6763_v22 = vld [vmem:[#allocation2 + $0x138] sm:$0xff] }
 0x208   : > { %v3080_v47 = vadd.f32 %v3048_v45, %v2979_v37  ;;  %v2545_v15 = vmul.f32 %v6634_v41, %v6572_v43  ;;  %v2646_v46 = vmul.f32 %v6641_v19, %v6578_v23  ;;  %v2747_v2 = vmul.f32 %v6648_v42, %v6580_v14 }
 0x209   : > { %v3452_v28 = vmax.f32 %v3420_v38, 0.0  ;;  %v3382_v29 = vadd.f32 %v6628_v10, %v3281_v0  ;;  %v2879_v24 = vadd.f32 %v2847_v58, %v2778_v35  ;;  %v2848_v45 = vmul.f32 %v6657_v26, %v6652_v36  ;;  %v6769_v38 = vld [vmem:[#allocation2 + $0x139] sm:$0xff] }
 0x20a   : > { %v3181_v43 = vadd.f32 %v3149_v4, %v3080_v47  ;;  %v2678_v50 = vadd.f32 %v2646_v46, %v2545_v15  ;;  %v2949_v23 = vmul.f32 %v6668_v48, %v6661_v5  ;;  %v3050_v14 = vmul.f32 %v6675_v6, %v6663_v62 }
 0x20b   : > { %4458 = vmatmul.mubr.msk.f32.gmra.mrb[46].mxu1 %vm287_vm1, %v3452_v28  ;;  %v3421_v9 = vadd.f32 %v6148_v13, %v3382_v29  ;;  %v2980_v60 = vadd.f32 %v2948_v52, %v2879_v24  ;;  %v3151_v10 = vmul.f32 %v6719_v25, %v6740_v44  ;;  %v3252_v53 = vmul.f32 %v6686_v56, %v6742_v21 }
 0x20c   : > { %v3282_v32 = vadd.f32 %v3250_v34, %v3181_v43  ;;  %v2779_v4 = vadd.f32 %v2747_v2, %v2678_v50  ;;  %v3353_v58 = vmul.f32 %v6730_v30, %v6747_v55  ;;  %v2546_v16 = vmul.f32 %v6634_v41, %v6606_v51  ;;  %v6771_v34 = vld [vmem:[#allocation2 + $0x13a] sm:$0xff] }
 0x20d   : > { %v3453_v8 = vmax.f32 %v3421_v9, 0.0  ;;  %v3081_v39 = vadd.f32 %v3049_v61, %v2980_v60  ;;  %v2647_v52 = vmul.f32 %v6641_v19, %v6608_v3  ;;  %v2748_v37 = vmul.f32 %v6648_v42, %v6614_v11  ;;  %v6773_v0 = vpop.f32.mrb[6].mxu1  ;;  %v6797_v9 = vld [vmem:[#allocation2 + $0x140] sm:$0xff] }
 0x20e   : > { %v3383_v35 = vadd.f32 %v3351_v33, %v3282_v32  ;;  %v2880_v47 = vadd.f32 %v2848_v45, %v2779_v4  ;;  %v2849_v51 = vmul.f32 %v6657_v26, %v6697_v40  ;;  %v2950_v61 = vmul.f32 %v6668_v48, %v6699_v18  ;;  %v6779_v15 = vpop.f32.mrb[7].mxu1  ;;  %v6799_v60 = vld [vmem:[#allocation2 + $0x141] sm:$0xff] }
 0x20f   : > { %4460 = vmatprep.mubr.msk.f32.mxu1 %vm287_vm1, %v3453_v8  ;;  %v3182_v3 = vadd.f32 %v3150_v54, %v3081_v39  ;;  %v2679_v11 = vadd.f32 %v2647_v52, %v2546_v16  ;;  %v3051_v46 = vmul.f32 %v6675_v6, %v6709_v59  ;;  %v3152_v2 = vmul.f32 %v6719_v25, %v6763_v22 }
 0x210   : > { %v3422_v33 = vadd.f32 %v6148_v13, %v3383_v35  ;;  %v2981_v28 = vadd.f32 %v2949_v23, %v2880_v47  ;;  %v3253_v29 = vmul.f32 %v6686_v56, %v6769_v38  ;;  %v6791_v24 = vmul.f32 %v6730_v30, %v6771_v34 }
 0x211   : > { %v3283_v45 = vadd.f32 %v3251_v49, %v3182_v3  ;;  %v2780_v43 = vadd.f32 %v2748_v37, %v2679_v11  ;;  %v2547_v54 = vmul.f32 %v6634_v41, %v6652_v36  ;;  %v2648_v50 = vmul.f32 %v6641_v19, %v6661_v5  ;;  %v6805_v49 = vld [vmem:[#allocation2 + $0x142] sm:$0xff] }
 0x212   : > { %v3454_v13 = vmax.f32 %v3422_v33, 0.0  ;;  %v3082_v23 = vadd.f32 %v3050_v14, %v2981_v28  ;;  %v2749_v32 = vmul.f32 %v6648_v42, %v6663_v62  ;;  %v2850_v4 = vmul.f32 %v6657_v26, %v6740_v44  ;;  %v6830_v28 = vld [vmem:[#allocation2 + $0x150] sm:$0xff] }
 0x213   : > { %v3384_v16 = vadd.f32 %v3352_v31, %v3283_v45  ;;  %v2881_v8 = vadd.f32 %v2849_v51, %v2780_v43  ;;  %v2680_v36 = vadd.f32 %v2648_v50, %v2547_v54  ;;  %v2951_v5 = vmul.f32 %v6668_v48, %v6742_v21  ;;  %v6819_v31 = vld [vmem:[%s7320_s5] ss:$0 sm:$0xff]  ;;  %v6832_v45 = vld [vmem:[#allocation2 + $0x151] sm:$0xff] }
 0x214   : > { %4461 = vmatmul.mubr.msk.f32.gmra.mrb[48].mxu1 %vm287_vm1, %v3454_v13  ;;  %v3183_v39 = vadd.f32 %v3151_v10, %v3082_v23  ;;  %v3052_v14 = vmul.f32 %v6675_v6, %v6747_v55  ;;  %v3153_v62 = vmul.f32 %v6719_v25, %v6797_v9  ;;  %v3254_v52 = vmul.f32 %v6686_v56, %v6799_v60 }
 0x215   : > { %v3423_v37 = vadd.f32 %v6819_v31, %v3384_v16  ;;  %v2982_v35 = vadd.f32 %v2950_v61, %v2881_v8  ;;  %v2781_v47 = vadd.f32 %v2749_v32, %v2680_v36  ;;  %v3355_v10 = vmul.f32 %v6730_v30, %v6805_v49 }
 0x216   : > { %v3284_v51 = vadd.f32 %v3252_v53, %v3183_v39  ;;  %v2548_v3 = vmul.f32 %v6634_v41, %v6697_v40  ;;  %v2649_v11 = vmul.f32 %v6641_v19, %v6699_v18  ;;  %v2750_v33 = vmul.f32 %v6648_v42, %v6709_v59  ;;  %v6836_v53 = vld [vmem:[#allocation2 + $0x152] sm:$0xff] }
 0x217   : > { %v3455_v43 = vmax.f32 %v3423_v37, 0.0  ;;  %v3083_v61 = vadd.f32 %v3051_v46, %v2982_v35  ;;  %v2882_v54 = vadd.f32 %v2850_v4, %v2781_v47  ;;  %v2851_v50 = vmul.f32 %v6657_v26, %v6763_v22  ;;  %v6838_v13 = vpop.f32.mrb[8].mxu1 }
 0x218   : > { %v3385_v40 = vadd.f32 %v3353_v58, %v3284_v51  ;;  %v2681_v23 = vadd.f32 %v2649_v11, %v2548_v3  ;;  %v2952_v18 = vmul.f32 %v6668_v48, %v6769_v38  ;;  %v3053_v59 = vmul.f32 %v6675_v6, %v6771_v34  ;;  %v6844_v32 = vpop.f32.mrb[9].mxu1  ;;  %v6860_v51 = vld [vmem:[#allocation2 + $0x158] sm:$0xff] }
 0x219   : > { %4463 = vmatprep.mubr.msk.f32.mxu1 %vm287_vm1, %v3455_v43  ;;  %v3184_v46 = vadd.f32 %v3152_v2, %v3083_v61  ;;  %v2983_v4 = vadd.f32 %v2951_v5, %v2882_v54  ;;  %v3154_v16 = vmul.f32 %v6719_v25, %v6830_v28  ;;  %v3255_v8 = vmul.f32 %v6686_v56, %v6832_v45  ;;  %v6862_v3 = vld [vmem:[#allocation2 + $0x159] sm:$0xff] }
 0x21a   : > { %v3424_v58 = vadd.f32 %v6819_v31, %v3385_v40  ;;  %v2782_v36 = vadd.f32 %v2750_v33, %v2681_v23  ;;  %v3356_v39 = vmul.f32 %v6730_v30, %v6836_v53  ;;  %v2549_v37 = vmul.f32 %v6634_v41, %v6740_v44  ;;  %v6864_v11 = vld [vmem:[#allocation2 + $0x15a] sm:$0xff] }
 0x21b   : > { %v3285_v35 = vadd.f32 %v3253_v29, %v3184_v46  ;;  %v3084_v47 = vadd.f32 %v3052_v14, %v2983_v4  ;;  %v2650_v2 = vmul.f32 %v6641_v19, %v6742_v21  ;;  %v2751_v5 = vmul.f32 %v6648_v42, %v6747_v55 }
 0x21c   : > { %v3456_v33 = vmax.f32 %v3424_v58, 0.0  ;;  %v2883_v43 = vadd.f32 %v2851_v50, %v2782_v36  ;;  %v2852_v61 = vmul.f32 %v6657_v26, %v6797_v9  ;;  %v2953_v44 = vmul.f32 %v6668_v48, %v6799_v60  ;;  %v6883_v58 = vld [vmem:[#allocation2 + $0x168] sm:$0xff] }
 0x21d   : > { %v3386_v29 = vadd.f32 %v6791_v24, %v3285_v35  ;;  %v3185_v21 = vadd.f32 %v3153_v62, %v3084_v47  ;;  %v2682_v14 = vadd.f32 %v2650_v2, %v2549_v37  ;;  %v3054_v55 = vmul.f32 %v6675_v6, %v6805_v49  ;;  %v6891_v47 = vld [vmem:[#allocation2 + $0x169] sm:$0xff] }
 0x21e   : > { %4464 = vmatmul.mubr.msk.f32.gmra.mrb[50].mxu1 %vm287_vm1, %v3456_v33  ;;  %v2984_v54 = vadd.f32 %v2952_v18, %v2883_v43  ;;  %v3155_v40 = vmul.f32 %v6719_v25, %v6860_v51  ;;  %v3256_v50 = vmul.f32 %v6686_v56, %v6862_v3  ;;  %v3357_v23 = vmul.f32 %v6730_v30, %v6864_v11  ;;  %v6893_v2 = vld [vmem:[#allocation2 + $0x16a] sm:$0xff] }
 0x21f   : > { %v3425_v46 = vadd.f32 %v6819_v31, %v3386_v29  ;;  %v3286_v24 = vadd.f32 %v3254_v52, %v3185_v21  ;;  %v2783_v62 = vadd.f32 %v2751_v5, %v2682_v14  ;;  %v2550_v4 = vmul.f32 %v6634_v41, %v6763_v22 }
 0x220   : > { %v3085_v36 = vadd.f32 %v3053_v59, %v2984_v54  ;;  %v2651_v18 = vmul.f32 %v6641_v19, %v6769_v38  ;;  %v2752_v37 = vmul.f32 %v6648_v42, %v6771_v34  ;;  %v2853_v35 = vmul.f32 %v6657_v26, %v6830_v28 }
 0x221   : > { %v3457_v52 = vmax.f32 %v3425_v46, 0.0  ;;  %v3387_v5 = vadd.f32 %v3355_v10, %v3286_v24  ;;  %v2884_v33 = vadd.f32 %v2852_v61, %v2783_v62  ;;  %v2954_v22 = vmul.f32 %v6668_v48, %v6832_v45 }
 0x222   : > { %v3186_v59 = vadd.f32 %v3154_v16, %v3085_v36  ;;  %v2683_v43 = vadd.f32 %v2651_v18, %v2550_v4  ;;  %v3055_v38 = vmul.f32 %v6675_v6, %v6836_v53  ;;  %v3156_v34 = vmul.f32 %v6719_v25, %v6883_v58  ;;  %v6901_v29 = vpop.f32.mrb[10].mxu1  ;;  %v6917_v4 = vld [vmem:[#allocation2 + $0x170] sm:$0xff] }
 0x223   : > { %7339 = vst [vmem:[#allocation3_spill] sm:$0xff] %v6901_v29  ;;  %4466 = vmatprep.mubr.msk.f32.mxu1 %vm287_vm1, %v3457_v52  ;;  %v3426_v21 = vadd.f32 %v6819_v31, %v3387_v5  ;;  %v2985_v14 = vadd.f32 %v2953_v44, %v2884_v33  ;;  %v3257_v10 = vmul.f32 %v6686_v56, %v6891_v47  ;;  %v6911_v61 = vpop.f32.mrb[11].mxu1  ;;  %v6919_v44 = vld [vmem:[#allocation2 + $0x171] sm:$0xff] }
 0x224   : > { %v6909_v16 = vmul.f32 %v6730_v30, %v6893_v2  ;;  %7340 = vst [vmem:[#allocation4_spill] sm:$0xff] %v6911_v61  ;;  %v3287_v54 = vadd.f32 %v3255_v8, %v3186_v59  ;;  %v2784_v46 = vadd.f32 %v2752_v37, %v2683_v43  ;;  %v2551_v24 = vmul.f32 %v6634_v41, %v6797_v9  ;;  %v6925_v8 = vld [vmem:[#allocation2 + $0x172] sm:$0xff] }
 0x225   : > { %v2652_v62 = vmul.f32 %v6641_v19, %v6799_v60  ;;  %v3458_v36 = vmax.f32 %v3426_v21, 0.0  ;;  %v3086_v18 = vadd.f32 %v3054_v55, %v2985_v14  ;;  %v2753_v52 = vmul.f32 %v6648_v42, %v6805_v49 }
 0x226   : > { %v2854_v5 = vmul.f32 %v6657_v26, %v6860_v51  ;;  %v3388_v37 = vadd.f32 %v3356_v39, %v3287_v54  ;;  %v2885_v33 = vadd.f32 %v2853_v35, %v2784_v46  ;;  %v2955_v60 = vmul.f32 %v6668_v48, %v6862_v3 }
 0x227   : > { %v2684_v9 = vadd.f32 %v2652_v62, %v2551_v24  ;;  %4467 = vmatmul.mubr.msk.f32.gmra.mrb[52].mxu1 %vm287_vm1, %v3458_v36  ;;  %v3187_v59 = vadd.f32 %v3155_v40, %v3086_v18  ;;  %v3056_v55 = vmul.f32 %v6675_v6, %v6864_v11  ;;  %v3157_v49 = vmul.f32 %v6719_v25, %v6917_v4  ;;  %v3122_v62 = vld [vmem:[#allocation2 + $0x180] sm:$0xff] }
 0x228   : > { %v3258_v43 = vmul.f32 %v6686_v56, %v6919_v44  ;;  %v3427_v21 = vadd.f32 %v6819_v31, %v3388_v37  ;;  %v2986_v39 = vadd.f32 %v2954_v22, %v2885_v33  ;;  %v3359_v14 = vmul.f32 %v6730_v30, %v6925_v8  ;;  %v3223_v36 = vld [vmem:[#allocation2 + $0x181] sm:$0xff] }
 0x229   : > { %v2785_v35 = vadd.f32 %v2753_v52, %v2684_v9  ;;  %v3288_v54 = vadd.f32 %v3256_v50, %v3187_v59  ;;  %v2552_v40 = vmul.f32 %v6634_v41, %v6830_v28  ;;  %v2653_v46 = vmul.f32 %v6641_v19, %v6832_v45  ;;  %v3324_v52 = vld [vmem:[#allocation2 + $0x182] sm:$0xff] }
 0x22a   : > { %v2754_v24 = vmul.f32 %v6648_v42, %v6836_v53  ;;  %v3459_v18 = vmax.f32 %v3427_v21, 0.0  ;;  %v3087_v61 = vadd.f32 %v3055_v38, %v2986_v39  ;;  %v2855_v22 = vmul.f32 %v6657_v26, %v6883_v58 }
 0x22b   : > { %v2886_v37 = vadd.f32 %v2854_v5, %v2785_v35  ;;  %v3389_v33 = vadd.f32 %v3357_v23, %v3288_v54  ;;  %v2685_v50 = vadd.f32 %v2653_v46, %v2552_v40  ;;  %v2956_v28 = vmul.f32 %v6668_v48, %v6891_v47 }
 0x22c   : > { %v3057_v45 = vmul.f32 %v6675_v6, %v6893_v2  ;;  %4469 = vmatprep.mubr.msk.f32.mxu1 %vm287_vm1, %v3459_v18  ;;  %v3188_v53 = vadd.f32 %v3156_v34, %v3087_v61  ;;  %v3158_v59 = vmul.f32 %v6719_v25, %v3122_v62  ;;  %v3259_v38 = vmul.f32 %v6686_v56, %v3223_v36  ;;  %v6954_v5 = vpop.f32.mrb[12].mxu1  ;;  %v3224_v18 = vld [vmem:[#allocation2 + $0x189] sm:$0xff] }
 0x22d   : > { %v2987_v9 = vadd.f32 %v2955_v60, %v2886_v37  ;;  %7341 = vst [vmem:[#allocation5_spill] sm:$0xff] %v6954_v5  ;;  %v3428_v21 = vadd.f32 %v6819_v31, %v3389_v33  ;;  %v2786_v23 = vadd.f32 %v2754_v24, %v2685_v50  ;;  %v3360_v39 = vmul.f32 %v6730_v30, %v3324_v52  ;;  %v6960_v54 = vpop.f32.mrb[13].mxu1  ;;  %v3123_v60 = vld [vmem:[#allocation2 + $0x188] sm:$0xff] }
 0x22e   : > { %v2553_v35 = vmul.f32 %v6634_v41, %v6860_v51  ;;  %7342 = vst [vmem:[#allocation6_spill] sm:$0xff] %v6960_v54  ;;  %v3289_v40 = vadd.f32 %v3257_v10, %v3188_v53  ;;  %v2654_v34 = vmul.f32 %v6641_v19, %v6862_v3  ;;  %v2755_v61 = vmul.f32 %v6648_v42, %v6864_v11  ;;  %v3325_v37 = vld [vmem:[#allocation2 + $0x18a] sm:$0xff] }
 0x22f   : > { %v3088_v46 = vadd.f32 %v3056_v55, %v2987_v9  ;;  %v3460_v33 = vmax.f32 %v3428_v21, 0.0  ;;  %v2887_v24 = vadd.f32 %v2855_v22, %v2786_v23  ;;  %v2856_v50 = vmul.f32 %v6657_v26, %v6917_v4 }
 0x230   : > { %v2957_v51 = vmul.f32 %v6668_v48, %v6919_v44  ;;  %v3390_v10 = vadd.f32 %v6909_v16, %v3289_v40  ;;  %v2686_v53 = vadd.f32 %v2654_v34, %v2553_v35  ;;  %v3058_v3 = vmul.f32 %v6675_v6, %v6925_v8  ;;  %v3225_v34 = vld [vmem:[#allocation2 + $0x199] sm:$0xff] }
 0x231   : > { %v3189_v55 = vadd.f32 %v3157_v49, %v3088_v46  ;;  %4470 = vmatmul.mubr.msk.f32.gmra.mrb[54].mxu1 %vm287_vm1, %v3460_v33  ;;  %v2988_v11 = vadd.f32 %v2956_v28, %v2887_v24  ;;  %v3159_v9 = vmul.f32 %v6719_v25, %v3123_v60  ;;  %v3260_v22 = vmul.f32 %v6686_v56, %v3224_v18  ;;  %v3124_v49 = vld [vmem:[#allocation2 + $0x198] sm:$0xff] }
 0x232   : > { %v3361_v21 = vmul.f32 %v6730_v30, %v3325_v37  ;;  %v3429_v23 = vadd.f32 %v6819_v31, %v3390_v10  ;;  %v2787_v5 = vadd.f32 %v2755_v61, %v2686_v53  ;;  %v2554_v16 = vmul.f32 %v6634_v41, %v6883_v58  ;;  %v3326_v33 = vld [vmem:[#allocation2 + $0x19a] sm:$0xff] }
 0x233   : > { %v3290_v54 = vadd.f32 %v3258_v43, %v3189_v55  ;;  %v3089_v35 = vadd.f32 %v3057_v45, %v2988_v11  ;;  %v2655_v40 = vmul.f32 %v6641_v19, %v6891_v47  ;;  %v2756_v28 = vmul.f32 %v6648_v42, %v6893_v2 }
 0x234   : > { %v2857_v46 = vmul.f32 %v6657_v26, %v3122_v62  ;;  %v3461_v24 = vmax.f32 %v3429_v23, 0.0  ;;  %v2888_v10 = vadd.f32 %v2856_v50, %v2787_v5  ;;  %v2958_v43 = vmul.f32 %v6668_v48, %v3223_v36 }
 0x235   : > { %v3391_v29 = vadd.f32 %v3359_v14, %v3290_v54  ;;  %v3190_v61 = vadd.f32 %v3158_v59, %v3089_v35  ;;  %v2687_v55 = vadd.f32 %v2655_v40, %v2554_v16  ;;  %v3059_v58 = vmul.f32 %v6675_v6, %v3324_v52  ;;  %v3125_v59 = vld [vmem:[#allocation2 + $0x1a0] sm:$0xff] }
 0x236   : > { %v3160_v45 = vmul.f32 %v6719_v25, %v3124_v49  ;;  %4472 = vmatprep.mubr.msk.f32.mxu1 %vm287_vm1, %v3461_v24  ;;  %v2989_v2 = vadd.f32 %v2957_v51, %v2888_v10  ;;  %v3261_v62 = vmul.f32 %v6686_v56, %v3225_v34  ;;  %v6992_v53 = vmul.f32 %v6730_v30, %v3326_v33  ;;  %v3226_v54 = vld [vmem:[#allocation2 + $0x1a1] sm:$0xff]  ;;  %v4545_v10 = vld [vmem:[%s4674_s9 + $0x10] sm:$0xff] }
 0x237   : > { %v3430_v47 = vadd.f32 %v6819_v31, %v3391_v29  ;;  %v3291_v14 = vadd.f32 %v3259_v38, %v3190_v61  ;;  %v2788_v5 = vadd.f32 %v2756_v28, %v2687_v55  ;;  %v2555_v36 = vmul.f32 %v6634_v41, %v6917_v4  ;;  %v6998_v50 = vpop.f32.mrb[14].mxu1  ;;  %v3327_v16 = vld [vmem:[#allocation2 + $0x1a2] sm:$0xff]  ;;  %v7009_v4 = vld [vmem:[%s7321_s6] ss:$0 sm:$0xff] }
 0x238   : > { %v2656_v52 = vmul.f32 %v6641_v19, %v6919_v44  ;;  %v3090_v29 = vadd.f32 %v3058_v3, %v2989_v2  ;;  %v2757_v51 = vmul.f32 %v6648_v42, %v6925_v8  ;;  %v2858_v23 = vmul.f32 %v6657_v26, %v3123_v60  ;;  %v7003_v38 = vpop.f32.mrb[15].mxu1 }
 0x239   : > { %v3462_v11 = vmax.f32 %v3430_v47, 0.0  ;;  %v3392_v49 = vadd.f32 %v3360_v39, %v3291_v14  ;;  %v2889_v35 = vadd.f32 %v2857_v46, %v2788_v5  ;;  %v2959_v19 = vmul.f32 %v6668_v48, %v3224_v18  ;;  %v4544_v46 = vld [vmem:[%s4674_s9 + $0x18] sm:$0xff]  ;;  %v4546_v47 = vld [vmem:[%s4674_s9 + $0x28] sm:$0xff] }
 0x23a   : > { %v2688_v41 = vadd.f32 %v2656_v52, %v2555_v36  ;;  %v3191_v44 = vadd.f32 %v3159_v9, %v3090_v29  ;;  %v3060_v42 = vmul.f32 %v6675_v6, %v3325_v37  ;;  %v3161_v26 = vmul.f32 %v6719_v25, %v3125_v59  ;;  %v4547_v36 = vld [vmem:[%s4674_s9 + $0x20] sm:$0xff]  ;;  %v4548_v52 = vld [vmem:[%s4674_s9 + $0x38] sm:$0xff] }
 0x23b   : > { %4473 = vmatmul.mubr.msk.f32.gmra.mrb[56].mxu1 %vm287_vm1, %v3462_v11  ;;  %v7015_v8 = vmul.f32 %v6686_v56, %v3226_v54  ;;  %v3431_v39 = vadd.f32 %v6819_v31, %v3392_v49  ;;  %v2990_v48 = vadd.f32 %v2958_v43, %v2889_v35  ;;  %v7019_v18 = vmul.f32 %v6730_v30, %v3327_v16  ;;  %v7343_v49 = vld [vmem:[#allocation3_spill] sm:$0xff]  ;;  %v7344_v35 = vld [vmem:[#allocation4_spill] sm:$0xff] }
 0x23c   : > { %v2789_v60 = vadd.f32 %v2757_v51, %v2688_v41  ;;  %v3292_v3 = vadd.f32 %v3260_v22, %v3191_v44  ;;  %v2238_v9 = vadd.f32 %v6432_v20, %v7009_v4  ;;  %v2233_v6 = vadd.f32 %v7009_v4, %v6439_v57  ;;  %v4542_v57 = vld [vmem:[%s4674_s9 + $0x8] sm:$0xff] }
 0x23d   : > { %v2248_v56 = vadd.f32 %v6502_v27, %v7009_v4  ;;  %v3463_v25 = vmax.f32 %v3431_v39, 0.0  ;;  %v3091_v30 = vadd.f32 %v3059_v58, %v2990_v48  ;;  %v2243_v20 = vadd.f32 %v7009_v4, %v6509_v7  ;;  %v4543_v27 = vld [vmem:[%s4674_s9] sm:$0xff]  ;;  %v4552_v39 = vld [vmem:[%s4674_s9 + $0x58] sm:$0xff] }
 0x23e   : > { %v2890_v37 = vadd.f32 %v2858_v23, %v2789_v60  ;;  %v3393_v22 = vadd.f32 %v3361_v21, %v3292_v3  ;;  %v2392_v40 = vadd.f32 %v4542_v57, %v2238_v9  ;;  %v2391_v28 = vadd.f32 %v4543_v27, %v2233_v6  ;;  %v4553_v60 = vld [vmem:[%s4674_s9 + $0x50] sm:$0xff]  ;;  %v4554_v9 = vld [vmem:[%s4674_s9 + $0x68] sm:$0xff] }
 0x23f   : > { %v2394_v34 = vadd.f32 %v4544_v46, %v2248_v56  ;;  %4475 = vmatprep.mubr.msk.f32.mxu1 %vm287_vm1, %v3463_v25  ;;  %v3192_v33 = vadd.f32 %v3160_v45, %v3091_v30  ;;  %v2393_v43 = vadd.f32 %v4545_v10, %v2243_v20  ;;  %v2258_v7 = vadd.f32 %v6591_v63, %v7009_v4  ;;  %v4555_v56 = vld [vmem:[%s4674_s9 + $0x60] sm:$0xff] }
 0x240   : > { %v2991_v24 = vadd.f32 %v2959_v19, %v2890_v37  ;;  %v3432_v21 = vadd.f32 %v6819_v31, %v3393_v22  ;;  %2424 = vst.msk [vmem:[%s7032_s21 + $0x8] sm:$0xff] %vm402_vm0, %v2392_v40  ;;  %2423 = vst.msk [vmem:[%s7032_s21] sm:$0xff] %vm402_vm0, %v2391_v28  ;;  %v2253_v61 = vadd.f32 %v7009_v4, %v6600_v1  ;;  %v4556_v37 = vld [vmem:[%s4674_s9 + $0x78] sm:$0xff]  ;;  %v7346_v22 = vld [vmem:[#allocation6_spill] sm:$0xff] }
 0x241   : > { %2426 = vst.msk [vmem:[%s7032_s21 + $0x18] sm:$0xff] %vm402_vm0, %v2394_v34  ;;  %v2268_v55 = vadd.f32 %v6701_v12, %v7009_v4  ;;  %v2263_v63 = vadd.f32 %v7009_v4, %v6711_v17  ;;  %v3293_v58 = vadd.f32 %v3261_v62, %v3192_v33  ;;  %2425 = vst.msk [vmem:[%s7032_s21 + $0x10] sm:$0xff] %vm402_vm0, %v2393_v43  ;;  %v4402_v5 = vpop.f32.mrb[16].mxu1  ;;  %v4549_v62 = vld [vmem:[%s4674_s9 + $0x30] sm:$0xff]  ;;  %v4558_v33 = vld [vmem:[%s4674_s9 + $0x88] sm:$0xff] }
 0x242   : > { %v3092_v45 = vadd.f32 %v3060_v42, %v2991_v24  ;;  %v2396_v2 = vadd.f32 %v4546_v47, %v2258_v7  ;;  %v2278_v14 = vadd.f32 %v6773_v0, %v7009_v4  ;;  %v3464_v1 = vmax.f32 %v3432_v21, 0.0  ;;  %v2322_v54 = vpop.f32.mrb[17].mxu1  ;;  %v4550_v0 = vld [vmem:[%s4674_s9 + $0x48] sm:$0xff]  ;;  %v4551_v42 = vld [vmem:[%s4674_s9 + $0x40] sm:$0xff]  ;;  %v4557_v34 = vld [vmem:[%s4674_s9 + $0x70] sm:$0xff] }
 0x243   : > { %v2395_v12 = vadd.f32 %v4547_v36, %v2253_v61  ;;  %v2398_v17 = vadd.f32 %v4548_v52, %v2268_v55  ;;  %v2397_v59 = vadd.f32 %v4549_v62, %v2263_v63  ;;  %v3394_v11 = vadd.f32 %v6992_v53, %v3293_v58  ;;  %v4560_v43 = vld [vmem:[%s4674_s9 + $0x98] sm:$0xff]  ;;  %v4561_v21 = vld [vmem:[%s4674_s9 + $0x90] sm:$0xff]  ;;  %v4562_v47 = vld [vmem:[%s4674_s9 + $0xa8] sm:$0xff] }
 0x244   : > { %v3193_v29 = vadd.f32 %v3161_v26, %v3092_v45  ;;  %2428 = vst.msk [vmem:[%s7032_s21 + $0x28] sm:$0xff] %vm402_vm0, %v2396_v2  ;;  %v2400_v51 = vadd.f32 %v4550_v0, %v2278_v14  ;;  %v2273_v23 = vadd.f32 %v7009_v4, %v6779_v15  ;;  %4476 = vmatmul.mubr.msk.f32.gmra.mrb[58].mxu1 %vm287_vm1, %v3464_v1  ;;  %v7345_v26 = vld [vmem:[#allocation5_spill] sm:$0xff] }
 0x245   : > { %2427 = vst.msk [vmem:[%s7032_s21 + $0x20] sm:$0xff] %vm402_vm0, %v2395_v12  ;;  %2430 = vst.msk [vmem:[%s7032_s21 + $0x38] sm:$0xff] %vm402_vm0, %v2398_v17  ;;  %v2288_v53 = vadd.f32 %v6838_v13, %v7009_v4  ;;  %v2283_v16 = vadd.f32 %v7009_v4, %v6844_v32  ;;  %v2298_v15 = vadd.f32 %v7343_v49, %v7009_v4  ;;  %v4563_v14 = vld [vmem:[%s4674_s9 + $0xa0] sm:$0xff]  ;;  %v4564_v17 = vld [vmem:[%s4674_s9 + $0xb8] sm:$0xff] }
 0x246   : > { %2429 = vst.msk [vmem:[%s7032_s21 + $0x30] sm:$0xff] %vm402_vm0, %v2397_v59  ;;  %v2293_v41 = vadd.f32 %v7009_v4, %v7344_v35  ;;  %v3433_v19 = vadd.f32 %v6819_v31, %v3394_v11  ;;  %v3294_v44 = vadd.f32 %v7015_v8, %v3193_v29  ;;  %2432 = vst.msk [vmem:[%s7032_s21 + $0x48] sm:$0xff] %vm402_vm0, %v2400_v51  ;;  %v4565_v59 = vld [vmem:[%s4674_s9 + $0xb0] sm:$0xff] }
 0x247   : > { %v2399_v13 = vadd.f32 %v4551_v42, %v2273_v23  ;;  %v2308_v32 = vadd.f32 %v7345_v26, %v7009_v4  ;;  %v2402_v48 = vadd.f32 %v4552_v39, %v2288_v53  ;;  %v2401_v3 = vadd.f32 %v4553_v60, %v2283_v16  ;;  %v4566_v23 = vld [vmem:[%s4674_s9 + $0xc8] sm:$0xff]  ;;  %v4567_v16 = vld [vmem:[%s4674_s9 + $0xc0] sm:$0xff] }
 0x248   : > { %v2404_v6 = vadd.f32 %v4554_v9, %v2298_v15  ;;  %v2403_v8 = vadd.f32 %v4555_v56, %v2293_v41  ;;  %v3465_v25 = vmax.f32 %v3433_v19, 0.0  ;;  %v3395_v30 = vadd.f32 %v7019_v18, %v3294_v44  ;;  %v4568_v44 = vld [vmem:[%s4674_s9 + $0xd8] sm:$0xff] }
 0x249   : > { %2431 = vst.msk [vmem:[%s7032_s21 + $0x40] sm:$0xff] %vm402_vm0, %v2399_v13  ;;  %v2406_v20 = vadd.f32 %v4556_v37, %v2308_v32  ;;  %v2303_v57 = vadd.f32 %v7009_v4, %v7346_v22  ;;  %2434 = vst.msk [vmem:[%s7032_s21 + $0x58] sm:$0xff] %vm402_vm0, %v2402_v48  ;;  %v2318_v18 = vadd.f32 %v6998_v50, %v7009_v4  ;;  %v4569_v13 = vld [vmem:[%s4674_s9 + $0xd0] sm:$0xff] }
 0x24a   : > { %2433 = vst.msk [vmem:[%s7032_s21 + $0x50] sm:$0xff] %vm402_vm0, %v2401_v3  ;;  %2436 = vst.msk [vmem:[%s7032_s21 + $0x68] sm:$0xff] %vm402_vm0, %v2404_v6  ;;  %v2313_v40 = vadd.f32 %v7009_v4, %v7003_v38  ;;  %v2328_v27 = vadd.f32 %v4402_v5, %v7009_v4  ;;  %v2323_v28 = vadd.f32 %v7009_v4, %v2322_v54  ;;  %4478 = vmatprep.mubr.msk.f32.mxu1 %vm287_vm1, %v3465_v25  ;;  %v4559_v38 = vld [vmem:[%s4674_s9 + $0x80] sm:$0xff]  ;;  %v4570_v3 = vld [vmem:[%s4674_s9 + $0xe8] sm:$0xff] }
 0x24b   : > { %2435 = vst.msk [vmem:[%s7032_s21 + $0x60] sm:$0xff] %vm402_vm0, %v2403_v8  ;;  %v3434_v46 = vadd.f32 %v6819_v31, %v3395_v30  ;;  %2438 = vst.msk [vmem:[%s7032_s21 + $0x78] sm:$0xff] %vm402_vm0, %v2406_v20  ;;  %v2405_v50 = vadd.f32 %v4557_v34, %v2303_v57  ;;  %v2408_v24 = vadd.f32 %v4558_v33, %v2318_v18  ;;  %v4571_v6 = vld [vmem:[%s4674_s9 + $0xe0] sm:$0xff]  ;;  %v4572_v20 = vld [vmem:[%s4674_s9 + $0xf8] sm:$0xff] }
 0x24c   : > { %v2407_v10 = vadd.f32 %v4559_v38, %v2313_v40  ;;  %v2410_v7 = vadd.f32 %v4560_v43, %v2328_v27  ;;  %v2409_v61 = vadd.f32 %v4561_v21, %v2323_v28  ;;  %v4405_v31 = vpop.f32.mrb[18].mxu1  ;;  %v4573_v57 = vld [vmem:[%s4674_s9 + $0xf0] sm:$0xff]  ;;  %v4574_v34 = vld [vmem:[%s4674_s9 + $0x108] sm:$0xff]  ;;  %v4575_v33 = vld [vmem:[%s4674_s9 + $0x100] sm:$0xff] }
 0x24d   : > { %v3466_v55 = vmax.f32 %v3434_v46, 0.0  ;;  %2437 = vst.msk [vmem:[%s7032_s21 + $0x70] sm:$0xff] %vm402_vm0, %v2405_v50  ;;  %2440 = vst.msk [vmem:[%s7032_s21 + $0x88] sm:$0xff] %vm402_vm0, %v2408_v24  ;;  %v2338_v63 = vadd.f32 %v4405_v31, %v7009_v4  ;;  %v2332_v58 = vpop.f32.mrb[19].mxu1  ;;  %v4576_v21 = vld [vmem:[%s4674_s9 + $0x118] sm:$0xff] }
 0x24e   : > { %2439 = vst.msk [vmem:[%s7032_s21 + $0x80] sm:$0xff] %vm402_vm0, %v2407_v10  ;;  %2442 = vst.msk [vmem:[%s7032_s21 + $0x98] sm:$0xff] %vm402_vm0, %v2410_v7  ;;  %v2333_v45 = vadd.f32 %v7009_v4, %v2332_v58 }
 0x24f   : > { %2441 = vst.msk [vmem:[%s7032_s21 + $0x90] sm:$0xff] %vm402_vm0, %v2409_v61  ;;  %4479 = vmatmul.mubr.msk.f32.gmra.mrb[60].mxu1 %vm287_vm1, %v3466_v55  ;;  %v2412_v2 = vadd.f32 %v4562_v47, %v2338_v63  ;;  %v4577_v55 = vld [vmem:[%s4674_s9 + $0x110] sm:$0xff] }
 0x250   : > { %v2411_v5 = vadd.f32 %v4563_v14, %v2333_v45 }
 0x251   : > { %2444 = vst.msk [vmem:[%s7032_s21 + $0xa8] sm:$0xff] %vm402_vm0, %v2412_v2  ;;  %v4578_v2 = vld [vmem:[%s4674_s9 + $0x128] sm:$0xff] }
 0x252   : > { %2443 = vst.msk [vmem:[%s7032_s21 + $0xa0] sm:$0xff] %vm402_vm0, %v2411_v5  ;;  %v4579_v5 = vld [vmem:[%s4674_s9 + $0x120] sm:$0xff] }
 0x257   : > { %v4408_v1 = vpop.f32.mrb[20].mxu1 }
 0x258   : > { %v2348_v36 = vadd.f32 %v4408_v1, %v7009_v4  ;;  %v2342_v12 = vpop.f32.mrb[21].mxu1 }
 0x259   : > { %v2343_v52 = vadd.f32 %v7009_v4, %v2342_v12 }
 0x25a   : > { %v2414_v62 = vadd.f32 %v4564_v17, %v2348_v36 }
 0x25b   : > { %v2413_v54 = vadd.f32 %v4565_v59, %v2343_v52 }
 0x25c   : > { %2446 = vst.msk [vmem:[%s7032_s21 + $0xb8] sm:$0xff] %vm402_vm0, %v2414_v62  ;;  %v4580_v62 = vld [vmem:[%s4674_s9 + $0x138] sm:$0xff] }
 0x25d   : > { %2445 = vst.msk [vmem:[%s7032_s21 + $0xb0] sm:$0xff] %vm402_vm0, %v2413_v54  ;;  %v4581_v54 = vld [vmem:[%s4674_s9 + $0x130] sm:$0xff] }
 0x261   : > { %v4411_v11 = vpop.f32.mrb[22].mxu1 }
 0x262   : > { %v2358_v29 = vadd.f32 %v4411_v11, %v7009_v4  ;;  %v2352_v0 = vpop.f32.mrb[23].mxu1 }
 0x263   : > { %v2353_v51 = vadd.f32 %v7009_v4, %v2352_v0 }
 0x264   : > { %v2416_v53 = vadd.f32 %v4566_v23, %v2358_v29 }
 0x265   : > { %v2415_v49 = vadd.f32 %v4567_v16, %v2353_v51 }
 0x266   : > { %2448 = vst.msk [vmem:[%s7032_s21 + $0xc8] sm:$0xff] %vm402_vm0, %v2416_v53  ;;  %v4582_v53 = vld [vmem:[%s4674_s9 + $0x148] sm:$0xff] }
 0x267   : > { %2447 = vst.msk [vmem:[%s7032_s21 + $0xc0] sm:$0xff] %vm402_vm0, %v2415_v49  ;;  %v4583_v49 = vld [vmem:[%s4674_s9 + $0x140] sm:$0xff] }
 0x26c   : > { %v4414_v15 = vpop.f32.mrb[24].mxu1 }
 0x26d   : > { %v2368_v35 = vadd.f32 %v4414_v15, %v7009_v4  ;;  %v2362_v41 = vpop.f32.mrb[25].mxu1 }
 0x26e   : > { %v2363_v19 = vadd.f32 %v7009_v4, %v2362_v41 }
 0x26f   : > { %v2418_v42 = vadd.f32 %v4568_v44, %v2368_v35 }
 0x270   : > { %v2417_v26 = vadd.f32 %v4569_v13, %v2363_v19 }
 0x271   : > { %2450 = vst.msk [vmem:[%s7032_s21 + $0xd8] sm:$0xff] %vm402_vm0, %v2418_v42  ;;  %v4584_v42 = vld [vmem:[%s4674_s9 + $0x158] sm:$0xff] }
 0x272   : > { %2449 = vst.msk [vmem:[%s7032_s21 + $0xd0] sm:$0xff] %vm402_vm0, %v2417_v26  ;;  %v4585_v26 = vld [vmem:[%s4674_s9 + $0x150] sm:$0xff] }
 0x276   : > { %v4417_v32 = vpop.f32.mrb[26].mxu1 }
 0x277   : > { %v2378_v39 = vadd.f32 %v4417_v32, %v7009_v4  ;;  %v2372_v48 = vpop.f32.mrb[27].mxu1 }
 0x278   : > { %v2373_v60 = vadd.f32 %v7009_v4, %v2372_v48 }
 0x279   : > { %v2420_v9 = vadd.f32 %v4570_v3, %v2378_v39 }
 0x27a   : > { %v2419_v56 = vadd.f32 %v4571_v6, %v2373_v60 }
 0x27b   : > { %2452 = vst.msk [vmem:[%s7032_s21 + $0xe8] sm:$0xff] %vm402_vm0, %v2420_v9  ;;  %v4586_v9 = vld [vmem:[%s4674_s9 + $0x168] sm:$0xff] }
 0x27c   : > { %2451 = vst.msk [vmem:[%s7032_s21 + $0xe0] sm:$0xff] %vm402_vm0, %v2419_v56  ;;  %v4587_v56 = vld [vmem:[%s4674_s9 + $0x160] sm:$0xff] }
 0x281   : > { %v4420_v8 = vpop.f32.mrb[28].mxu1 }
 0x282   : > { %v2388_v25 = vadd.f32 %v4420_v8, %v7009_v4  ;;  %v2382_v30 = vpop.f32.mrb[29].mxu1 }
 0x283   : > { %v2383_v37 = vadd.f32 %v7009_v4, %v2382_v30 }
 0x284   : > { %v2422_v22 = vadd.f32 %v4572_v20, %v2388_v25 }
 0x285   : > { %v2421_v18 = vadd.f32 %v4573_v57, %v2383_v37 }
 0x286   : > { %2454 = vst.msk [vmem:[%s7032_s21 + $0xf8] sm:$0xff] %vm402_vm0, %v2422_v22  ;;  %v4588_v22 = vld [vmem:[%s4674_s9 + $0x178] sm:$0xff] }
 0x287   : > { %2453 = vst.msk [vmem:[%s7032_s21 + $0xf0] sm:$0xff] %vm402_vm0, %v2421_v18  ;;  %v4589_v18 = vld [vmem:[%s4674_s9 + $0x170] sm:$0xff] }
 0x28b   : > { %v4435_v40 = vpop.f32.mrb[30].mxu1 }
 0x28c   : > { %v3648_v27 = vadd.f32 %v4435_v40, %v7009_v4  ;;  %v3642_v28 = vpop.f32.mrb[31].mxu1 }
 0x28d   : > { %v3643_v46 = vadd.f32 %v7009_v4, %v3642_v28 }
 0x28e   : > { %v3802_v50 = vadd.f32 %v4574_v34, %v3648_v27 }
 0x28f   : > { %v3801_v24 = vadd.f32 %v4575_v33, %v3643_v46 }
 0x290   : > { %4087 = vst.msk [vmem:[%s7032_s21 + $0x108] sm:$0xff] %vm402_vm0, %v3802_v50  ;;  %v4590_v50 = vld [vmem:[%s4674_s9 + $0x188] sm:$0xff] }
 0x291   : > { %4086 = vst.msk [vmem:[%s7032_s21 + $0x100] sm:$0xff] %vm402_vm0, %v3801_v24  ;;  %v4591_v24 = vld [vmem:[%s4674_s9 + $0x180] sm:$0xff] }
 0x296   : > { %v4438_v38 = vpop.f32.mrb[32].mxu1 }
 0x297   : > { %v3658_v10 = vadd.f32 %v4438_v38, %v7009_v4  ;;  %v3652_v43 = vpop.f32.mrb[33].mxu1 }
 0x298   : > { %v3653_v7 = vadd.f32 %v7009_v4, %v3652_v43 }
 0x299   : > { %v3804_v61 = vadd.f32 %v4576_v21, %v3658_v10 }
 0x29a   : > { %v3803_v31 = vadd.f32 %v4577_v55, %v3653_v7 }
 0x29b   : > { %4089 = vst.msk [vmem:[%s7032_s21 + $0x118] sm:$0xff] %vm402_vm0, %v3804_v61  ;;  %v4592_v61 = vld [vmem:[%s4674_s9 + $0x198] sm:$0xff] }
 0x29c   : > { %4088 = vst.msk [vmem:[%s7032_s21 + $0x110] sm:$0xff] %vm402_vm0, %v3803_v31  ;;  %v4593_v31 = vld [vmem:[%s4674_s9 + $0x190] sm:$0xff] }
 0x2a0   : > { %v4441_v63 = vpop.f32.mrb[34].mxu1 }
 0x2a1   : > { %v3668_v58 = vadd.f32 %v4441_v63, %v7009_v4  ;;  %v3662_v45 = vpop.f32.mrb[35].mxu1 }
 0x2a2   : > { %v3663_v47 = vadd.f32 %v7009_v4, %v3662_v45 }
 0x2a3   : > { %v3806_v14 = vadd.f32 %v4578_v2, %v3668_v58 }
 0x2a4   : > { %v3805_v1 = vadd.f32 %v4579_v5, %v3663_v47 }
 0x2a5   : > { %4091 = vst.msk [vmem:[%s7032_s21 + $0x128] sm:$0xff] %vm402_vm0, %v3806_v14  ;;  %v4594_v14 = vld [vmem:[%s4674_s9 + $0x1a8] sm:$0xff] }
 0x2a6   : > { %4090 = vst.msk [vmem:[%s7032_s21 + $0x120] sm:$0xff] %vm402_vm0, %v3805_v1  ;;  %v4595_v1 = vld [vmem:[%s4674_s9 + $0x1a0] sm:$0xff] }
 0x2ab   : > { %v4444_v36 = vpop.f32.mrb[36].mxu1 }
 0x2ac   : > { %v3678_v12 = vadd.f32 %v4444_v36, %v7009_v4  ;;  %v3672_v52 = vpop.f32.mrb[37].mxu1 }
 0x2ad   : > { %v3673_v17 = vadd.f32 %v7009_v4, %v3672_v52 }
 0x2ae   : > { %v3808_v59 = vadd.f32 %v4580_v62, %v3678_v12 }
 0x2af   : > { %v3807_v11 = vadd.f32 %v4581_v54, %v3673_v17 }
 0x2b0   : > { %4093 = vst.msk [vmem:[%s7032_s21 + $0x138] sm:$0xff] %vm402_vm0, %v3808_v59  ;;  %v4596_v59 = vld [vmem:[%s4674_s9 + $0x1b8] sm:$0xff] }
 0x2b1   : > { %4092 = vst.msk [vmem:[%s7032_s21 + $0x130] sm:$0xff] %vm402_vm0, %v3807_v11  ;;  %v4597_v11 = vld [vmem:[%s4674_s9 + $0x1b0] sm:$0xff] }
 0x2b5   : > { %v4447_v29 = vpop.f32.mrb[38].mxu1 }
 0x2b6   : > { %v3688_v0 = vadd.f32 %v4447_v29, %v7009_v4  ;;  %v3682_v51 = vpop.f32.mrb[39].mxu1 }
 0x2b7   : > { %v3683_v23 = vadd.f32 %v7009_v4, %v3682_v51 }
 0x2b8   : > { %v3810_v16 = vadd.f32 %v4582_v53, %v3688_v0 }
 0x2b9   : > { %v3809_v15 = vadd.f32 %v4583_v49, %v3683_v23 }
 0x2ba   : > { %4095 = vst.msk [vmem:[%s7032_s21 + $0x148] sm:$0xff] %vm402_vm0, %v3810_v16  ;;  %v4598_v16 = vld [vmem:[%s4674_s9 + $0x1c8] sm:$0xff] }
 0x2bb   : > { %4094 = vst.msk [vmem:[%s7032_s21 + $0x140] sm:$0xff] %vm402_vm0, %v3809_v15  ;;  %v4599_v15 = vld [vmem:[%s4674_s9 + $0x1c0] sm:$0xff] }
 0x2c0   : > { %v4450_v35 = vpop.f32.mrb[40].mxu1 }
 0x2c1   : > { %v3698_v41 = vadd.f32 %v4450_v35, %v7009_v4  ;;  %v3692_v19 = vpop.f32.mrb[41].mxu1 }
 0x2c2   : > { %v3693_v44 = vadd.f32 %v7009_v4, %v3692_v19 }
 0x2c3   : > { %v3812_v13 = vadd.f32 %v4584_v42, %v3698_v41 }
 0x2c4   : > { %v3811_v32 = vadd.f32 %v4585_v26, %v3693_v44 }
 0x2c5   : > { %4097 = vst.msk [vmem:[%s7032_s21 + $0x158] sm:$0xff] %vm402_vm0, %v3812_v13  ;;  %v4600_v13 = vld [vmem:[%s4674_s9 + $0x1d8] sm:$0xff] }
 0x2c6   : > { %4096 = vst.msk [vmem:[%s7032_s21 + $0x150] sm:$0xff] %vm402_vm0, %v3811_v32  ;;  %v4601_v32 = vld [vmem:[%s4674_s9 + $0x1d0] sm:$0xff] }
 0x2ca   : > { %v4453_v39 = vpop.f32.mrb[42].mxu1 }
 0x2cb   : > { %v3708_v48 = vadd.f32 %v4453_v39, %v7009_v4  ;;  %v3702_v60 = vpop.f32.mrb[43].mxu1 }
 0x2cc   : > { %v3703_v3 = vadd.f32 %v7009_v4, %v3702_v60 }
 0x2cd   : > { %v3814_v6 = vadd.f32 %v4586_v9, %v3708_v48 }
 0x2ce   : > { %v3813_v8 = vadd.f32 %v4587_v56, %v3703_v3 }
 0x2cf   : > { %4099 = vst.msk [vmem:[%s7032_s21 + $0x168] sm:$0xff] %vm402_vm0, %v3814_v6  ;;  %v4602_v6 = vld [vmem:[%s4674_s9 + $0x1e8] sm:$0xff] }
 0x2d0   : > { %4098 = vst.msk [vmem:[%s7032_s21 + $0x160] sm:$0xff] %vm402_vm0, %v3813_v8  ;;  %v4603_v8 = vld [vmem:[%s4674_s9 + $0x1e0] sm:$0xff] }
 0x2d5   : > { %v4456_v25 = vpop.f32.mrb[44].mxu1 }
 0x2d6   : > { %v3718_v30 = vadd.f32 %v4456_v25, %v7009_v4  ;;  %v3712_v37 = vpop.f32.mrb[45].mxu1 }
 0x2d7   : > { %v3713_v20 = vadd.f32 %v7009_v4, %v3712_v37 }
 0x2d8   : > { %v3816_v57 = vadd.f32 %v4588_v22, %v3718_v30 }
 0x2d9   : > { %v3815_v40 = vadd.f32 %v4589_v18, %v3713_v20 }
 0x2da   : > { %4101 = vst.msk [vmem:[%s7032_s21 + $0x178] sm:$0xff] %vm402_vm0, %v3816_v57  ;;  %v4604_v57 = vld [vmem:[%s4674_s9 + $0x1f8] sm:$0xff] }
 0x2db   : > { %4100 = vst.msk [vmem:[%s7032_s21 + $0x170] sm:$0xff] %vm402_vm0, %v3815_v40  ;;  %v4605_v40 = vld [vmem:[%s4674_s9 + $0x1f0] sm:$0xff] }
 0x2de   : > { %v4459_v27 = vpop.f32.mrb[46].mxu1 }
 0x2df   : > { %v3728_v28 = vadd.f32 %v4459_v27, %v7009_v4  ;;  %v3722_v46 = vpop.f32.mrb[47].mxu1 }
 0x2e0   : > { %v3723_v34 = vadd.f32 %v7009_v4, %v3722_v46 }
 0x2e1   : > { %v3818_v33 = vadd.f32 %v4590_v50, %v3728_v28 }
 0x2e2   : > { %v3817_v38 = vadd.f32 %v4591_v24, %v3723_v34 }
 0x2e3   : > { %4103 = vst.msk [vmem:[%s7032_s21 + $0x188] sm:$0xff] %vm402_vm0, %v3818_v33 }
 0x2e4   : > { %4102 = vst.msk [vmem:[%s7032_s21 + $0x180] sm:$0xff] %vm402_vm0, %v3817_v38 }
 0x2e7   : > { %v4462_v10 = vpop.f32.mrb[48].mxu1 }
 0x2e8   : > { %v3738_v43 = vadd.f32 %v4462_v10, %v7009_v4  ;;  %v3732_v7 = vpop.f32.mrb[49].mxu1 }
 0x2e9   : > { %v3733_v21 = vadd.f32 %v7009_v4, %v3732_v7 }
 0x2ea   : > { %v3820_v55 = vadd.f32 %v4592_v61, %v3738_v43 }
 0x2eb   : > { %v3819_v63 = vadd.f32 %v4593_v31, %v3733_v21 }
 0x2ec   : > { %4105 = vst.msk [vmem:[%s7032_s21 + $0x198] sm:$0xff] %vm402_vm0, %v3820_v55 }
 0x2ed   : > { %4104 = vst.msk [vmem:[%s7032_s21 + $0x190] sm:$0xff] %vm402_vm0, %v3819_v63 }
 0x2f1   : > { %v4465_v58 = vpop.f32.mrb[50].mxu1 }
 0x2f2   : > { %v3748_v45 = vadd.f32 %v4465_v58, %v7009_v4  ;;  %v3742_v47 = vpop.f32.mrb[51].mxu1 }
 0x2f3   : > { %v3743_v2 = vadd.f32 %v7009_v4, %v3742_v47 }
 0x2f4   : > { %v3822_v5 = vadd.f32 %v4594_v14, %v3748_v45 }
 0x2f5   : > { %v3821_v36 = vadd.f32 %v4595_v1, %v3743_v2 }
 0x2f6   : > { %4107 = vst.msk [vmem:[%s7032_s21 + $0x1a8] sm:$0xff] %vm402_vm0, %v3822_v5 }
 0x2f7   : > { %4106 = vst.msk [vmem:[%s7032_s21 + $0x1a0] sm:$0xff] %vm402_vm0, %v3821_v36 }
 0x2fa   : > { %v4468_v12 = vpop.f32.mrb[52].mxu1 }
 0x2fb   : > { %v3758_v52 = vadd.f32 %v4468_v12, %v7009_v4  ;;  %v3752_v17 = vpop.f32.mrb[53].mxu1 }
 0x2fc   : > { %v3753_v62 = vadd.f32 %v7009_v4, %v3752_v17 }
 0x2fd   : > { %v3824_v54 = vadd.f32 %v4596_v59, %v3758_v52 }
 0x2fe   : > { %v3823_v29 = vadd.f32 %v4597_v11, %v3753_v62 }
 0x2ff   : > { %4109 = vst.msk [vmem:[%s7032_s21 + $0x1b8] sm:$0xff] %vm402_vm0, %v3824_v54 }
 0x300   : > { %4108 = vst.msk [vmem:[%s7032_s21 + $0x1b0] sm:$0xff] %vm402_vm0, %v3823_v29 }
 0x304   : > { %v4471_v0 = vpop.f32.mrb[54].mxu1 }
 0x305   : > { %v3768_v51 = vadd.f32 %v4471_v0, %v7009_v4  ;;  %v3762_v23 = vpop.f32.mrb[55].mxu1 }
 0x306   : > { %v3763_v53 = vadd.f32 %v7009_v4, %v3762_v23 }
 0x307   : > { %v3826_v49 = vadd.f32 %v4598_v16, %v3768_v51 }
 0x308   : > { %v3825_v35 = vadd.f32 %v4599_v15, %v3763_v53 }
 0x309   : > { %4111 = vst.msk [vmem:[%s7032_s21 + $0x1c8] sm:$0xff] %vm402_vm0, %v3826_v49 }
 0x30a   : > { %4110 = vst.msk [vmem:[%s7032_s21 + $0x1c0] sm:$0xff] %vm402_vm0, %v3825_v35 }
 0x30e   : > { %v4474_v41 = vpop.f32.mrb[56].mxu1 }
 0x30f   : > { %v3778_v19 = vadd.f32 %v4474_v41, %v7009_v4  ;;  %v3772_v44 = vpop.f32.mrb[57].mxu1 }
 0x310   : > { %v3773_v42 = vadd.f32 %v7009_v4, %v3772_v44 }
 0x311   : > { %v3828_v26 = vadd.f32 %v4600_v13, %v3778_v19 }
 0x312   : > { %v3827_v39 = vadd.f32 %v4601_v32, %v3773_v42 }
 0x313   : > { %4113 = vst.msk [vmem:[%s7032_s21 + $0x1d8] sm:$0xff] %vm402_vm0, %v3828_v26 }
 0x314   : > { %4112 = vst.msk [vmem:[%s7032_s21 + $0x1d0] sm:$0xff] %vm402_vm0, %v3827_v39 }
 0x317   : > { %v4477_v48 = vpop.f32.mrb[58].mxu1 }
 0x318   : > { %v3788_v60 = vadd.f32 %v4477_v48, %v7009_v4  ;;  %v3782_v3 = vpop.f32.mrb[59].mxu1 }
 0x319   : > { %v3783_v9 = vadd.f32 %v7009_v4, %v3782_v3 }
 0x31a   : > { %v3830_v56 = vadd.f32 %v4602_v6, %v3788_v60 }
 0x31b   : > { %v3829_v25 = vadd.f32 %v4603_v8, %v3783_v9 }
 0x31c   : > { %4115 = vst.msk [vmem:[%s7032_s21 + $0x1e8] sm:$0xff] %vm402_vm0, %v3830_v56 }
 0x31d   : > { %4114 = vst.msk [vmem:[%s7032_s21 + $0x1e0] sm:$0xff] %vm402_vm0, %v3829_v25 }
 0x322   : > { %v4480_v30 = vpop.f32.mrb[60].mxu1 }
 0x323   : > { %v3798_v37 = vadd.f32 %v4480_v30, %v7009_v4  ;;  %v3792_v20 = vpop.f32.mrb[61].mxu1 }
 0x324   : > { %v3793_v22 = vadd.f32 %v7009_v4, %v3792_v20 }
 0x325   : > { %v3832_v18 = vadd.f32 %v4604_v57, %v3798_v37 }
 0x326   : > { %v3831_v27 = vadd.f32 %v4605_v40, %v3793_v22 }
 0x327   : > { %4117 = vst.msk [vmem:[%s7032_s21 + $0x1f8] sm:$0xff] %vm402_vm0, %v3832_v18 }
 0x328   : > { %4116 = vst.msk [vmem:[%s7032_s21 + $0x1f0] sm:$0xff] %vm402_vm0, %v3831_v27 }
 0x329 PF: > { %s17_s24 = sadd.s32 1, %s4612_s24  }
 0x32a   : > { %p14_p4 = scmp.ge.s32.totalorder %s17_s24, 4  }
 0x32c   :  { %16 = sbr.rel (!%p14_p4) target bundleno = 1 (0x1), region = 82 }

</bundles_post_ra>
